<compile_context>
chip_gen: v5e
topology: v5e:2x2
jax: 0.10.0
libtpu: 0.0.40
codegen_flags: <defaults>
</compile_context>

<pallas_src>
import functools
import math

import jax
import jax.numpy as jnp
from jax import lax
from jax.experimental import pallas as pl
from jax.experimental.pallas import tpu as pltpu

EPS = 1e-5
TM_TARGET = 1024          # target output lanes per conv tile
MAX_UNROLL = 32           # cap on unrolled spatial tiles per batch step
VMEM_LIMIT = 48 << 20     # > scoped defaults everywhere, headroom on v7x (64 MiB phys)


def _pick_row_tile(ho, wo):
    """Rows per tile: a divisor of Ho, preferring 128-aligned tro*wo, ~TM_TARGET lanes."""
    target = max(TM_TARGET, -(-(ho * wo) // MAX_UNROLL))
    divs = [t for t in range(1, ho + 1) if ho % t == 0]
    aligned = [t for t in divs if (t * wo) % 128 == 0] or divs
    fitting = [t for t in aligned if t * wo <= target]
    return max(fitting) if fitting else min(aligned)


def _activate(y, activation):
    if activation == "LeakyReLU":
        return jnp.where(y > 0, y, 0.2 * y)
    if activation == "ReLU":
        return jnp.maximum(y, 0.0)
    if activation == "GeLU":
        return jax.nn.gelu(y, approximate=False)   # PyTorch nn.GELU() is exact erf
    if activation == "Tanh":
        return jnp.tanh(y)
    raise ValueError(f"unsupported activation: {activation!r}")


# -----------------------------------------------------------------------------
# Fused kernel: one grid step == one batch element.
#   pass 1: per spatial tile -> build im2col patch, one K=k*k*Cin matmul, (+bias),
#           store into the resident lane-dense output block, accumulate sum/sumsq.
#   pass 2: (instance norm only) normalize + activate the VMEM-resident output
#           in place, chunk by chunk, before the single HBM writeback.
# -----------------------------------------------------------------------------
def _sfconv_kernel(x_ref, w_ref, b_ref, o_ref, *, s, kc, taps, tro, wo, n_rt,
                   inv_m, norm, activation, apply_bias):
    cin = x_ref.shape[2]
    cout = w_ref.shape[0]
    tm = tro * wo

    w = w_ref[...]                                  # (C_out, n_taps*C_in) bf16
    b = b_ref[...]                                  # (C_out, 1) f32

    s1 = jnp.zeros((cout, 1), jnp.float32)
    s2 = jnp.zeros((cout, 1), jnp.float32)

    for rt in range(n_rt):                          # static unroll, bounded by MAX_UNROLL
        row0 = rt * tro
        parts = []
        for di in range(s):
            for dj in range(s):
                ptaps = [(ii, jj) for (tdi, tdj, ii, jj) in taps
                         if tdi == di and tdj == dj]
                if not ptaps:
                    continue
                # (C_in, TRo + kc - 1, Wph) window of this stride-phase plane.
                win = x_ref[0, di * s + dj, :, row0:row0 + tro + kc - 1, :]
                for (ii, jj) in ptaps:
                    parts.append(win[:, ii:ii + tro, jj:jj + wo])   # (C_in, TRo, Wo)
        # Leading-dim concat (layout-trivial) then a single minor-dims collapse:
        # one (k*k*C_in, TM) bf16 patch -> one MXU dot per tile.
        patch = jnp.concatenate(parts, axis=0).reshape(len(taps) * cin, tm)
        acc = jnp.dot(w, patch, preferred_element_type=jnp.float32)  # (C_out, TM) f32
        if apply_bias:
            acc = acc + b

        if norm == "instance":
            s1 = s1 + jnp.sum(acc, axis=-1, keepdims=True)
            s2 = s2 + jnp.sum(acc * acc, axis=-1, keepdims=True)
            o_ref[0, :, rt * tm:(rt + 1) * tm] = acc
        else:
            o_ref[0, :, rt * tm:(rt + 1) * tm] = _activate(acc, activation)

    if norm == "instance":
        mean = s1 * inv_m
        var = jnp.maximum(s2 * inv_m - mean * mean, 0.0)   # guard E[x^2]-mean^2 < 0
        scale = lax.rsqrt(var + EPS)
        for rt in range(n_rt):
            y = o_ref[0, :, rt * tm:(rt + 1) * tm]
            o_ref[0, :, rt * tm:(rt + 1) * tm] = _activate((y - mean) * scale,
                                                           activation)


# -----------------------------------------------------------------------------
# Wrapper (PyTorch NCHW in / NCHW out, PyTorch weight layout).
# -----------------------------------------------------------------------------
def sf_conv2d_block(x, weight, bias=None, *, kernel_size=4, stride=2, padding=1,
                    activation="LeakyReLU", norm="instance"):
    """x: (B, C_in, H, W); weight: (C_out, C_in, k, k); bias: (C_out,) or None."""
    if norm == "batch":
        # TODO(synk): BatchNorm2d needs cross-batch batch statistics; not implemented.
        raise NotImplementedError("norm='batch' is not implemented")

    k, s, p = kernel_size, stride, padding
    B, cin, H, W = x.shape
    cout = weight.shape[0]
    ho = (H + 2 * p - k) // s + 1
    wo = (W + 2 * p - k) // s + 1
    kc = -(-k // s)                           # taps per stride phase
    hph, wph = ho + kc - 1, wo + kc - 1       # canonical stride-phase plane size
    M = ho * wo

    # Valid taps (di, dj, ii, jj) with ki = di + s*ii < k, kj = dj + s*jj < k.
    # This order defines the shared contraction-dim layout (kernel patch & weights).
    taps = tuple((di, dj, ii, jj)
                 for di in range(s) for dj in range(s)
                 for ii in range(kc) for jj in range(kc)
                 if di + s * ii < k and dj + s * jj < k)

    # JAX-side layout plumbing only (no k^2 expansion in HBM): pad, stride-phase
    # split into s*s channels-first planes, bf16 cast for the MXU.
    xp = jnp.pad(x, ((0, 0), (0, 0), (p, p), (p, p)))
    planes = []
    for di in range(s):
        for dj in range(s):
            pp = xp[:, :, di::s, dj::s][:, :, :hph, :wph]
            pp = jnp.pad(pp, ((0, 0), (0, 0),
                              (0, hph - pp.shape[2]), (0, wph - pp.shape[3])))
            planes.append(pp)
    phases = jnp.stack(planes, axis=1).astype(jnp.bfloat16)  # (B, s*s, Cin, Hph, Wph)

    # Weights pre-concatenated along the contraction dim, tap-major / cin-minor,
    # matching the in-kernel patch build order: (C_out, n_taps * C_in) bf16.
    w_cat = jnp.concatenate(
        [weight[:, :, di + s * ii, dj + s * jj] for (di, dj, ii, jj) in taps],
        axis=1).astype(jnp.bfloat16)
    k_dim = w_cat.shape[1]

    # InstanceNorm cancels a per-channel bias exactly -> skip it in that case.
    apply_bias = (norm != "instance") and (bias is not None)
    b_col = bias if bias is not None else jnp.zeros((cout,), jnp.float32)
    b_col = b_col.astype(jnp.float32).reshape(cout, 1)

    tro = _pick_row_tile(ho, wo)
    n_rt = ho // tro

    kernel = functools.partial(
        _sfconv_kernel, s=s, kc=kc, taps=taps, tro=tro, wo=wo, n_rt=n_rt,
        inv_m=1.0 / M, norm=norm, activation=activation, apply_bias=apply_bias)

    out = pl.pallas_call(
        kernel,
        out_shape=jax.ShapeDtypeStruct((B, cout, M), jnp.float32),
        grid=(B,),
        in_specs=[
            pl.BlockSpec((1, s * s, cin, hph, wph), lambda b: (b, 0, 0, 0, 0)),
            pl.BlockSpec((cout, k_dim), lambda b: (0, 0)),
            pl.BlockSpec((cout, 1), lambda b: (0, 0)),
        ],
        out_specs=pl.BlockSpec((1, cout, M), lambda b: (b, 0, 0)),
        compiler_params=pltpu.CompilerParams(
            dimension_semantics=("parallel",),
            vmem_limit_bytes=VMEM_LIMIT),
    )(phases, w_cat, b_col)

    return out.reshape(B, cout, ho, wo)     # NCHW, matches PyTorch


# -----------------------------------------------------------------------------
# Pure-JAX reference with matching bf16-operand / f32-accumulate numerics.
# -----------------------------------------------------------------------------
def _reference(x, weight, bias, *, k, s, p, activation, norm):
    xb = x.astype(jnp.bfloat16).astype(jnp.float32)
    wb = weight.astype(jnp.bfloat16).astype(jnp.float32)
    y = lax.conv_general_dilated(xb, wb, (s, s), [(p, p), (p, p)],
                                 dimension_numbers=("NCHW", "OIHW", "NCHW"))
    if bias is not None:
        y = y + bias.reshape(1, -1, 1, 1)
    if norm == "instance":
        mean = jnp.mean(y, axis=(2, 3), keepdims=True)
        var = jnp.mean((y - mean) ** 2, axis=(2, 3), keepdims=True)
        y = (y - mean) * lax.rsqrt(var + EPS)
    return _activate(y, activation)


if __name__ == "__main__":
    key = jax.random.PRNGKey(0)
    kx, kw, kb, kx2 = jax.random.split(key, 4)

    K, S, P = 4, 2, 1                          # SFConv2DBlock defaults
    B, C_IN, C_OUT = 2, 4, 16
    fan_in = C_IN * K * K

    weight = jax.random.normal(kw, (C_OUT, C_IN, K, K), jnp.float32) / math.sqrt(fan_in)
    bias = jax.random.normal(kb, (C_OUT,), jnp.float32) * 0.1

    def check(x, activation, norm):
        fwd = jax.jit(functools.partial(sf_conv2d_block, kernel_size=K, stride=S,
                                        padding=P, activation=activation, norm=norm))
        out = fwd(x, weight, bias)
        jax.block_until_ready(out)
        ref = _reference(x, weight, bias, k=K, s=S, p=P,
                         activation=activation, norm=norm)
        assert out.shape == ref.shape, (out.shape, ref.shape)
        assert bool(jnp.all(jnp.isfinite(out)))
        assert bool(jnp.allclose(out, ref, atol=3e-2, rtol=3e-2)), float(
            jnp.max(jnp.abs(out - ref)))

    # Primary config: module defaults (InstanceNorm + LeakyReLU), single spatial tile.
    x1 = jax.random.normal(kx, (B, C_IN, 64, 64), jnp.float32)
    check(x1, "LeakyReLU", "instance")

    # Multi-tile spatial path (n_rt > 1: tile accumulation + chunked epilogue).
    x2 = jax.random.normal(kx2, (B, C_IN, 96, 96), jnp.float32)
    check(x2, "ReLU", "instance")

    # norm='none' path (bias applied in-kernel, no normalization epilogue).
    check(x1, "Tanh", "none")

    print("KERNEL_OK")
</pallas_src>

<mosaic_0001>
module attributes {stable_mosaic.version = 11 : i64} {
  func.func @_sfconv_kernel(%arg0: i32, %arg1: memref<1x4x4x33x33xbf16, #tpu.memory_space<vmem>>, %arg2: memref<16x64xbf16, #tpu.memory_space<vmem>>, %arg3: memref<16x1xf32, #tpu.memory_space<vmem>>, %arg4: memref<1x16x1024xf32, #tpu.memory_space<vmem>>) attributes {dimension_semantics = [#tpu.dimension_semantics<parallel>], iteration_bounds = array<i64: 2>, scalar_prefetch = 0 : i64, scratch_operands = 0 : i64, tpu.core_type = #tpu.core_type<tc>, window_params = [{transform_indices = @transform_0, window_bounds = array<i64: 1, 4, 4, 33, 33>}, {pipeline_mode = #tpu.pipeline_mode<synchronous>, transform_indices = @transform_1, window_bounds = array<i64: 16, 64>}, {pipeline_mode = #tpu.pipeline_mode<synchronous>, transform_indices = @transform_2, window_bounds = array<i64: 16, 1>}, {transform_indices = @transform_3, window_bounds = array<i64: 1, 16, 1024>}]} {
    %c0 = arith.constant 0 : index
    %c0_0 = arith.constant 0 : index
    %0 = vector.load %arg2[%c0, %c0_0] : memref<16x64xbf16, #tpu.memory_space<vmem>>, vector<16x64xbf16>
    %cst = arith.constant 0.000000e+00 : f32
    %1 = vector.broadcast %cst : f32 to vector<16x1xf32>
    %cst_1 = arith.constant 0.000000e+00 : f32
    %2 = vector.broadcast %cst_1 : f32 to vector<16x1xf32>
    %c0_2 = arith.constant 0 : index
    %c0_3 = arith.constant 0 : index
    %c0_4 = arith.constant 0 : index
    %c0_5 = arith.constant 0 : index
    %c0_6 = arith.constant 0 : index
    %3 = vector.load %arg1[%c0_2, %c0_3, %c0_4, %c0_5, %c0_6] : memref<1x4x4x33x33xbf16, #tpu.memory_space<vmem>>, vector<1x1x4x33x33xbf16>
    %4 = vector.shape_cast %3 : vector<1x1x4x33x33xbf16> to vector<4x33x33xbf16>
    %5 = vector.extract_strided_slice %4 {offsets = [0, 0, 0], sizes = [4, 32, 32], strides = [1, 1, 1]} : vector<4x33x33xbf16> to vector<4x32x32xbf16>
    %6 = vector.extract_strided_slice %4 {offsets = [0, 0, 1], sizes = [4, 32, 32], strides = [1, 1, 1]} : vector<4x33x33xbf16> to vector<4x32x32xbf16>
    %7 = vector.extract_strided_slice %4 {offsets = [0, 1, 0], sizes = [4, 32, 32], strides = [1, 1, 1]} : vector<4x33x33xbf16> to vector<4x32x32xbf16>
    %8 = vector.extract_strided_slice %4 {offsets = [0, 1, 1], sizes = [4, 32, 32], strides = [1, 1, 1]} : vector<4x33x33xbf16> to vector<4x32x32xbf16>
    %c0_7 = arith.constant 0 : index
    %c1 = arith.constant 1 : index
    %c0_8 = arith.constant 0 : index
    %c0_9 = arith.constant 0 : index
    %c0_10 = arith.constant 0 : index
    %9 = vector.load %arg1[%c0_7, %c1, %c0_8, %c0_9, %c0_10] : memref<1x4x4x33x33xbf16, #tpu.memory_space<vmem>>, vector<1x1x4x33x33xbf16>
    %10 = vector.shape_cast %9 : vector<1x1x4x33x33xbf16> to vector<4x33x33xbf16>
    %11 = vector.extract_strided_slice %10 {offsets = [0, 0, 0], sizes = [4, 32, 32], strides = [1, 1, 1]} : vector<4x33x33xbf16> to vector<4x32x32xbf16>
    %12 = vector.extract_strided_slice %10 {offsets = [0, 0, 1], sizes = [4, 32, 32], strides = [1, 1, 1]} : vector<4x33x33xbf16> to vector<4x32x32xbf16>
    %13 = vector.extract_strided_slice %10 {offsets = [0, 1, 0], sizes = [4, 32, 32], strides = [1, 1, 1]} : vector<4x33x33xbf16> to vector<4x32x32xbf16>
    %14 = vector.extract_strided_slice %10 {offsets = [0, 1, 1], sizes = [4, 32, 32], strides = [1, 1, 1]} : vector<4x33x33xbf16> to vector<4x32x32xbf16>
    %c0_11 = arith.constant 0 : index
    %c2 = arith.constant 2 : index
    %c0_12 = arith.constant 0 : index
    %c0_13 = arith.constant 0 : index
    %c0_14 = arith.constant 0 : index
    %15 = vector.load %arg1[%c0_11, %c2, %c0_12, %c0_13, %c0_14] : memref<1x4x4x33x33xbf16, #tpu.memory_space<vmem>>, vector<1x1x4x33x33xbf16>
    %16 = vector.shape_cast %15 : vector<1x1x4x33x33xbf16> to vector<4x33x33xbf16>
    %17 = vector.extract_strided_slice %16 {offsets = [0, 0, 0], sizes = [4, 32, 32], strides = [1, 1, 1]} : vector<4x33x33xbf16> to vector<4x32x32xbf16>
    %18 = vector.extract_strided_slice %16 {offsets = [0, 0, 1], sizes = [4, 32, 32], strides = [1, 1, 1]} : vector<4x33x33xbf16> to vector<4x32x32xbf16>
    %19 = vector.extract_strided_slice %16 {offsets = [0, 1, 0], sizes = [4, 32, 32], strides = [1, 1, 1]} : vector<4x33x33xbf16> to vector<4x32x32xbf16>
    %20 = vector.extract_strided_slice %16 {offsets = [0, 1, 1], sizes = [4, 32, 32], strides = [1, 1, 1]} : vector<4x33x33xbf16> to vector<4x32x32xbf16>
    %c0_15 = arith.constant 0 : index
    %c3 = arith.constant 3 : index
    %c0_16 = arith.constant 0 : index
    %c0_17 = arith.constant 0 : index
    %c0_18 = arith.constant 0 : index
    %21 = vector.load %arg1[%c0_15, %c3, %c0_16, %c0_17, %c0_18] : memref<1x4x4x33x33xbf16, #tpu.memory_space<vmem>>, vector<1x1x4x33x33xbf16>
    %22 = vector.shape_cast %21 : vector<1x1x4x33x33xbf16> to vector<4x33x33xbf16>
    %23 = vector.extract_strided_slice %22 {offsets = [0, 0, 0], sizes = [4, 32, 32], strides = [1, 1, 1]} : vector<4x33x33xbf16> to vector<4x32x32xbf16>
    %24 = vector.extract_strided_slice %22 {offsets = [0, 0, 1], sizes = [4, 32, 32], strides = [1, 1, 1]} : vector<4x33x33xbf16> to vector<4x32x32xbf16>
    %25 = vector.extract_strided_slice %22 {offsets = [0, 1, 0], sizes = [4, 32, 32], strides = [1, 1, 1]} : vector<4x33x33xbf16> to vector<4x32x32xbf16>
    %26 = vector.extract_strided_slice %22 {offsets = [0, 1, 1], sizes = [4, 32, 32], strides = [1, 1, 1]} : vector<4x33x33xbf16> to vector<4x32x32xbf16>
    %27 = tpu.concatenate %5, %6, %7, %8, %11, %12, %13, %14, %17, %18, %19, %20, %23, %24, %25, %26 in 0 : vector<4x32x32xbf16>, vector<4x32x32xbf16>, vector<4x32x32xbf16>, vector<4x32x32xbf16>, vector<4x32x32xbf16>, vector<4x32x32xbf16>, vector<4x32x32xbf16>, vector<4x32x32xbf16>, vector<4x32x32xbf16>, vector<4x32x32xbf16>, vector<4x32x32xbf16>, vector<4x32x32xbf16>, vector<4x32x32xbf16>, vector<4x32x32xbf16>, vector<4x32x32xbf16>, vector<4x32x32xbf16> -> vector<64x32x32xbf16>
    %28 = vector.shape_cast %27 : vector<64x32x32xbf16> to vector<64x1024xbf16>
    %cst_19 = arith.constant dense<0.000000e+00> : vector<16x1024xf32>
    %29 = tpu.matmul %0, %28, %cst_19 {dimension_numbers = #tpu.dot_dimension_numbers<[1], [0], [0], [1], [0, 0, 1, 1], [], []>} : vector<16x64xbf16>, vector<64x1024xbf16>, vector<16x1024xf32> -> vector<16x1024xf32>
    %cst_20 = arith.constant dense<0.000000e+00> : vector<16xf32>
    %30 = vector.multi_reduction <add>, %29, %cst_20 [1] : vector<16x1024xf32> to vector<16xf32>
    %31 = vector.shape_cast %30 : vector<16xf32> to vector<16x1xf32>
    %32 = arith.addf %1, %31 : vector<16x1xf32>
    %33 = arith.mulf %29, %29 : vector<16x1024xf32>
    %cst_21 = arith.constant dense<0.000000e+00> : vector<16xf32>
    %34 = vector.multi_reduction <add>, %33, %cst_21 [1] : vector<16x1024xf32> to vector<16xf32>
    %35 = vector.shape_cast %34 : vector<16xf32> to vector<16x1xf32>
    %36 = arith.addf %2, %35 : vector<16x1xf32>
    %c0_22 = arith.constant 0 : index
    %c0_23 = arith.constant 0 : index
    %c0_24 = arith.constant 0 : index
    %37 = vector.load %arg4[%c0_22, %c0_23, %c0_24] : memref<1x16x1024xf32, #tpu.memory_space<vmem>>, vector<1x16x1024xf32>
    %38 = vector.shape_cast %37 : vector<1x16x1024xf32> to vector<16x1024xf32>
    %39 = vector.shape_cast %29 : vector<16x1024xf32> to vector<1x16x1024xf32>
    tpu.vector_store %arg4[%c0_22, %c0_23, %c0_24], %39 {strides = array<i32>} : memref<1x16x1024xf32, #tpu.memory_space<vmem>>, vector<1x16x1024xf32>,
    %cst_25 = arith.constant 9.765625E-4 : f32
    %40 = vector.broadcast %cst_25 : f32 to vector<16x1xf32>
    %41 = arith.mulf %32, %40 : vector<16x1xf32>
    %cst_26 = arith.constant 9.765625E-4 : f32
    %42 = vector.broadcast %cst_26 : f32 to vector<16x1xf32>
    %43 = arith.mulf %36, %42 : vector<16x1xf32>
    %44 = arith.mulf %41, %41 : vector<16x1xf32>
    %45 = arith.subf %43, %44 : vector<16x1xf32>
    %cst_27 = arith.constant 0.000000e+00 : f32
    %46 = vector.broadcast %cst_27 : f32 to vector<16x1xf32>
    %47 = arith.maximumf %45, %46 : vector<16x1xf32>
    %cst_28 = arith.constant 9.99999974E-6 : f32
    %48 = vector.broadcast %cst_28 : f32 to vector<16x1xf32>
    %49 = arith.addf %47, %48 : vector<16x1xf32>
    %50 = math.rsqrt %49 : vector<16x1xf32>
    %c0_29 = arith.constant 0 : index
    %c0_30 = arith.constant 0 : index
    %c0_31 = arith.constant 0 : index
    %51 = vector.load %arg4[%c0_29, %c0_30, %c0_31] : memref<1x16x1024xf32, #tpu.memory_space<vmem>>, vector<1x16x1024xf32>
    %52 = vector.shape_cast %51 : vector<1x16x1024xf32> to vector<16x1024xf32>
    %53 = vector.broadcast %41 : vector<16x1xf32> to vector<16x1024xf32>
    %54 = arith.subf %52, %53 : vector<16x1024xf32>
    %55 = vector.broadcast %50 : vector<16x1xf32> to vector<16x1024xf32>
    %56 = arith.mulf %54, %55 : vector<16x1024xf32>
    %cst_32 = arith.constant 0.000000e+00 : f32
    %57 = vector.broadcast %cst_32 : f32 to vector<16x1024xf32>
    %58 = arith.cmpf ogt, %56, %57 : vector<16x1024xf32>
    %cst_33 = arith.constant 2.000000e-01 : f32
    %59 = vector.broadcast %cst_33 : f32 to vector<16x1024xf32>
    %60 = arith.mulf %59, %56 : vector<16x1024xf32>
    %61 = arith.select %58, %56, %60 : vector<16x1024xi1>, vector<16x1024xf32>
    %c0_34 = arith.constant 0 : index
    %c0_35 = arith.constant 0 : index
    %c0_36 = arith.constant 0 : index
    %62 = vector.load %arg4[%c0_34, %c0_35, %c0_36] : memref<1x16x1024xf32, #tpu.memory_space<vmem>>, vector<1x16x1024xf32>
    %63 = vector.shape_cast %62 : vector<1x16x1024xf32> to vector<16x1024xf32>
    %64 = vector.shape_cast %61 : vector<16x1024xf32> to vector<1x16x1024xf32>
    tpu.vector_store %arg4[%c0_34, %c0_35, %c0_36], %64 {strides = array<i32>} : memref<1x16x1024xf32, #tpu.memory_space<vmem>>, vector<1x16x1024xf32>,
    return
  }
  func.func @transform_0(%arg0: i32) -> (i32, i32, i32, i32, i32) {
    %c0_i32 = arith.constant 0 : i32
    %c0_i32_0 = arith.constant 0 : i32
    %c0_i32_1 = arith.constant 0 : i32
    %c0_i32_2 = arith.constant 0 : i32
    %c0_i32_3 = arith.constant 0 : i32
    return %arg0, %c0_i32, %c0_i32_0, %c0_i32_1, %c0_i32_2 : i32, i32, i32, i32, i32
  }
  func.func @transform_1(%arg0: i32) -> (i32, i32) {
    %c0_i32 = arith.constant 0 : i32
    %c0_i32_0 = arith.constant 0 : i32
    %c0_i32_1 = arith.constant 0 : i32
    return %c0_i32, %c0_i32_0 : i32, i32
  }
  func.func @transform_2(%arg0: i32) -> (i32, i32) {
    %c0_i32 = arith.constant 0 : i32
    %c0_i32_0 = arith.constant 0 : i32
    %c0_i32_1 = arith.constant 0 : i32
    return %c0_i32, %c0_i32_0 : i32, i32
  }
  func.func @transform_3(%arg0: i32) -> (i32, i32, i32) {
    %c0_i32 = arith.constant 0 : i32
    %c0_i32_0 = arith.constant 0 : i32
    %c0_i32_1 = arith.constant 0 : i32
    return %arg0, %c0_i32, %c0_i32_0 : i32, i32, i32
  }
}

</mosaic_0001>

<bundles_post_ra>
// kernel: sf_conv2d_block.1
= control target key start
LH: loop header
LB: loop body
LE: loop exit
PB: predicated region body
PF: predicated region fallthrough
CT: control target
= control target key end

     0   :  { %s5442_s12 = smov 0   ;;  %s9144_s0 = inlined_call_operand.vmem [shape: bf16[2,4,4,33,33], index: 0, kind: input, shape index: {}]   ;;  %s9145_s1 = inlined_call_operand.vmem [shape: bf16[16,64], index: 1, kind: input, shape index: {}]   ;;  %s9146_s2 = inlined_call_operand.vmem [shape: f32[16,1], index: 2, kind: input, shape index: {}]   ;;  %s9147_s3 = inlined_call_operand.vmem [shape: f32[2,16,1024], index: 3, kind: output, shape index: {}]  }
   0x1 LB: > { %s5263_s13 = sadd.s32 4294967295, %s5414_s12   ;;  %p5267_p0 = scmp.ge.s32.totalorder %s5414_s12, 1  ;;  %s5414_s12 = sphi %s5442_s12, %s13_s12  }
   0x2   : > { %p137_p1 = scmp.lt.s32.totalorder %s5414_s12, 3 }
   0x4   : > { %p138_p2 = pnand %p5267_p0, %p137_p1 }
   0x6   : > { %141 = sbr.rel (%p138_p2) target bundleno = 1142 (0x476), region = 32 }
   0xb   : > { %p161_p3 = scmp.lt.s32.totalorder %s5263_s13, 1  ;;  %s5416_s17 = smov 127   ;;  %vm321_vm0 = vsmask.f32 3328  ;;  %vm322_vm1 = vsmask.f32 7440 }
   0xc   : > { %vm5544_vm2 = vmor %vm321_vm0, %vm322_vm1  ;;  %vm1477_vm3 = vcmask 1047556   ;;  %s5419_s18 = smov 32   ;;  %s5420_s19 = smov 64   ;;  %vm4613_vm4 = vcmask 261120   ;;  %vm4626_vm5 = vcmask 523264   ;;  %vm4635_vm6 = vcmask 785408  }
   0xd   : > { %s9893_s13 = smov (!%p161_p3, %s5263_s13), 1  ;;  %s5421_s20 = smov 96  }
   0xe   : > { %s5347_s2 = smul.u32 320, %s9893_s13  ;;  %s5345_s23 = sshll.u32 %s9893_s13, 7 }
   0xf   : > { %s9101_s26 = scalar_lea.vmem %s9147_s3, %s5345_s23 }
  0x10   : > { %s5456_s16 = scalar_lea.vmem %s9144_s0, %s5347_s2 }
  0x11   : > { %v5459_v0 = vld [vmem:[%s5456_s16 + $0x14] sm:$0xf]  ;;  %v5462_v1 = vld [vmem:[%s5456_s16 + $0x8] sm:$0xf]  ;;  %v5465_v2 = vld [vmem:[%s5456_s16] sm:$0xf] }
  0x12   : > { %281 = vrot.lane.b32.xlu2 %v5459_v0, %s5416_s17  ;;  %277 = vrot.lane.b32.xlu1 %v5462_v1, %s5416_s17  ;;  %v5474_v3 = vld [vmem:[%s5456_s16 + $0x18] sm:$0xf]  ;;  %v5477_v4 = vld [vmem:[%s5456_s16 + $0xc] sm:$0xf]  ;;  %v325_v9 = vshrl.u32 %v5465_v2, 16  ;;  %v328_v10 = vshll.u32 %v5465_v2, 16 }
  0x13   : > { %273 = vrot.lane.b32.xlu0 %v5465_v2, %s5416_s17  ;;  %v5480_v5 = vld [vmem:[%s5456_s16 + $0x4] sm:$0xf]  ;;  %v5489_v6 = vld [vmem:[%s5456_s16 + $0x28] sm:$0xf]  ;;  %v5492_v7 = vld [vmem:[%s5456_s16 + $0x20] sm:$0xf] }
  0x14   : > { %v5495_v8 = vld [vmem:[%s5456_s16 + $0x1c] sm:$0xf]  ;;  %v334_v11 = vshll.u32 %v5480_v5, 16  ;;  %v338_v12 = vshrl.u32 %v5480_v5, 16  ;;  %v5508_v13 = vld [vmem:[%s5456_s16 + $0x34] sm:$0xf] }
  0x15   : > { %v5511_v14 = vld [vmem:[%s5456_s16 + $0x30] sm:$0xf]  ;;  %v5514_v15 = vld [vmem:[%s5456_s16 + $0x2c] sm:$0xf]  ;;  %v327_v16 = vrot.slane %v325_v9, 4  ;;  %v330_v17 = vrot.slane %v328_v10, 5 }
  0x16   : > { %v336_v18 = vrot.slane %v334_v11, 5  ;;  %v340_v19 = vrot.slane %v338_v12, 4  ;;  %v369_v20 = vshrl.u32 %v5459_v0, 16  ;;  %v372_v21 = vshll.u32 %v5459_v0, 16  ;;  %v5526_v23 = vld [vmem:[%s5456_s16 + $0x44] sm:$0xf] }
  0x17   : > { %v358_v22 = vshrl.u32 %v5477_v4, 16  ;;  %v5529_v24 = vld [vmem:[%s5456_s16 + $0x40] sm:$0xf]  ;;  %v344_v26 = vshll.u32 %v5462_v1, 16  ;;  %v331_v27 = vor.u32 %v330_v17, %v327_v16  ;;  %v354_v28 = vshll.u32 %v5477_v4, 16 }
  0x18   : > { %9390 = vst [vmem:[#allocation2_spill] sm:$0xff] %v5529_v24  ;;  %v341_v25 = vor.u32 %v340_v19, %v336_v18  ;;  %v348_v29 = vshrl.u32 %v5462_v1, 16  ;;  %v5535_v30 = vld [vmem:[%s5456_s16 + $0x3c] sm:$0xf]  ;;  %v371_v31 = vrot.slane %v369_v20, 4  ;;  %v374_v32 = vrot.slane %v372_v21, 5 }
  0x19   : > { %v360_v33 = vrot.slane %v358_v22, 4  ;;  %v346_v35 = vrot.slane %v344_v26, 5  ;;  %v332_v36 = vrot.slane %v331_v27, 4  ;;  %v356_v37 = vrot.slane %v354_v28, 5  ;;  %v178_v38 = vld [vmem:[%s5456_s16 + $0x10] sm:$0x1] }
  0x1a   : > { %283 = vrot.lane.b32.xlu2 %v5474_v3, %s5416_s17  ;;  %279 = vrot.lane.b32.xlu1 %v5477_v4, %s5416_s17  ;;  %v342_v34 = vrot.slane %v341_v25, 4  ;;  %v350_v39 = vrot.slane %v348_v29, 4  ;;  %v398_v41 = vshll.u32 %v5492_v7, 16  ;;  %v402_v42 = vshrl.u32 %v5492_v7, 16  ;;  %v5563_v52 = vld [vmem:[%s5456_s16 + $0x48] sm:$0xf] }
  0x1b   : > { %275 = vrot.lane.b32.xlu0 %v5480_v5, %s5416_s17  ;;  %v392_v43 = vshrl.u32 %v5495_v8, 16  ;;  %v375_v44 = vor.u32 %v374_v32, %v371_v31  ;;  %v378_v45 = vshll.u32 %v5474_v3, 16  ;;  %v364_v46 = vshll.u32 %v178_v38, 16  ;;  %9393 = vst [vmem:[#allocation3_spill] sm:$0xff] %v5563_v52  ;;  %v183_v9 = vld [vmem:[%s5456_s16 + $0x24] sm:$0x1] }
  0x1c   : > { %v5554_v47 = vsel %vm5544_vm2, %v342_v34, %v346_v35  ;;  %v5558_v48 = vsel %vm5544_vm2, %v332_v36, %v336_v18  ;;  %v361_v49 = vor.u32 %v360_v33, %v356_v37  ;;  %v388_v50 = vshll.u32 %v5495_v8, 16 }
  0x1d   : > { %v382_v51 = vshrl.u32 %v5474_v3, 16  ;;  %v351_v53 = vor.u32 %v350_v39, %v346_v35  ;;  %v400_v54 = vrot.slane %v398_v41, 5  ;;  %v404_v55 = vrot.slane %v402_v42, 4 }
  0x1e   : > { %v394_v56 = vrot.slane %v392_v43, 4  ;;  %v376_v57 = vrot.slane %v375_v44, 4  ;;  %v380_v58 = vrot.slane %v378_v45, 5  ;;  %v362_v59 = vrot.slane %v361_v49, 4 }
  0x1f   : > { %v366_v60 = vrot.slane %v364_v46, 5  ;;  %v390_v61 = vrot.slane %v388_v50, 5  ;;  %v384_v62 = vrot.slane %v382_v51, 4  ;;  %v352_v63 = vrot.slane %v351_v53, 4 }
  0x20   : > { %v432_v10 = vshll.u32 %v5511_v14, 16  ;;  %v436_v11 = vshrl.u32 %v5511_v14, 16  ;;  %v426_v12 = vshrl.u32 %v5514_v15, 16  ;;  %v405_v16 = vor.u32 %v404_v55, %v400_v54 }
  0x21   : > { %v422_v17 = vshll.u32 %v5514_v15, 16  ;;  %v5578_v18 = vsel %vm5544_vm2, %v376_v57, %v380_v58  ;;  %v5582_v19 = vsel %vm5544_vm2, %v362_v59, %v366_v60  ;;  %v408_v20 = vshll.u32 %v183_v9, 16  ;;  %v188_v9 = vld [vmem:[%s5456_s16 + $0x38] sm:$0x1] }
  0x22   : > { %289 = vrot.lane.b32.xlu2 %v5489_v6, %s5416_s17  ;;  %287 = vrot.lane.b32.xlu1 %v5492_v7, %s5416_s17  ;;  %9394 = vst [vmem:[#allocation4_spill] sm:$0xff] %v5582_v19  ;;  %v395_v21 = vor.u32 %v394_v56, %v390_v61  ;;  %v413_v22 = vshrl.u32 %v5489_v6, 16  ;;  %v416_v25 = vshll.u32 %v5489_v6, 16  ;;  %v5588_v26 = vsel %vm5544_vm2, %v352_v63, %v356_v37 }
  0x23   : > { %285 = vrot.lane.b32.xlu0 %v5495_v8, %s5416_s17  ;;  %9395 = vst [vmem:[#allocation5_spill] sm:$0xff] %v5588_v26  ;;  %v385_v27 = vor.u32 %v384_v62, %v380_v58  ;;  %v434_v28 = vrot.slane %v432_v10, 5  ;;  %v438_v29 = vrot.slane %v436_v11, 4  ;;  %v428_v31 = vrot.slane %v426_v12, 4 }
  0x24   : > { %v424_v32 = vrot.slane %v422_v17, 5  ;;  %v406_v33 = vrot.slane %v405_v16, 4  ;;  %v410_v34 = vrot.slane %v408_v20, 5  ;;  %v396_v35 = vrot.slane %v395_v21, 4 }
  0x25   : > { %v415_v36 = vrot.slane %v413_v22, 4  ;;  %v418_v37 = vrot.slane %v416_v25, 5  ;;  %v386_v38 = vrot.slane %v385_v27, 4  ;;  %v466_v39 = vshll.u32 %v5529_v24, 16 }
  0x26   : > { %v470_v41 = vshrl.u32 %v5529_v24, 16  ;;  %v439_v42 = vor.u32 %v438_v29, %v434_v28  ;;  %v442_v43 = vshll.u32 %v5508_v13, 16  ;;  %v429_v44 = vor.u32 %v428_v31, %v424_v32 }
  0x27   : > { %v457_v45 = vshrl.u32 %v5535_v30, 16  ;;  %v460_v46 = vshll.u32 %v5535_v30, 16  ;;  %v5603_v49 = vsel %vm5544_vm2, %v406_v33, %v410_v34  ;;  %v5607_v50 = vsel %vm5544_vm2, %v396_v35, %v400_v54 }
  0x28   : > { %9396 = vst [vmem:[#allocation6_spill] sm:$0xff] %v5603_v49  ;;  %v446_v51 = vshrl.u32 %v5508_v13, 16  ;;  %v5612_v53 = vsel %vm5544_vm2, %v386_v38, %v390_v61  ;;  %v419_v55 = vor.u32 %v418_v37, %v415_v36  ;;  %v440_v56 = vrot.slane %v439_v42, 4  ;;  %v193_v38 = vld [vmem:[%s5456_s16 + $0x4c] sm:$0x1] }
  0x29   : > { %9397 = vst [vmem:[#allocation7_spill] sm:$0xff] %v5607_v50  ;;  %v444_v57 = vrot.slane %v442_v43, 5  ;;  %v430_v58 = vrot.slane %v429_v44, 4  ;;  %v468_v59 = vrot.slane %v466_v39, 5  ;;  %v472_v54 = vrot.slane %v470_v41, 4 }
  0x2a   : > { %295 = vrot.lane.b32.xlu2 %v5508_v13, %s5416_s17  ;;  %293 = vrot.lane.b32.xlu1 %v5511_v14, %s5416_s17  ;;  %9398 = vst [vmem:[#allocation8_spill] sm:$0xff] %v5612_v53  ;;  %v459_v60 = vrot.slane %v457_v45, 4  ;;  %v462_v62 = vrot.slane %v460_v46, 5  ;;  %v448_v63 = vrot.slane %v446_v51, 4  ;;  %v420_v61 = vrot.slane %v419_v55, 4 }
  0x2b   : > { %291 = vrot.lane.b32.xlu0 %v5514_v15, %s5416_s17  ;;  %v490_v10 = vshrl.u32 %v5563_v52, 16  ;;  %v5624_v11 = vsel %vm5544_vm2, %v440_v56, %v444_v57  ;;  %v5628_v12 = vsel %vm5544_vm2, %v430_v58, %v434_v28  ;;  %v473_v16 = vor.u32 %v472_v54, %v468_v59  ;;  %v5663_v56 = vld [vmem:[%s5456_s16 + $0x50] sm:$0xf]  ;;  %v5273_v54 = vld [vmem:[%s5456_s16 + $0x58] sm:$0xf] }
  0x2c   : > { %9399 = vst [vmem:[#allocation9_spill] sm:$0xff] %v5624_v11  ;;  %v476_v17 = vshll.u32 %v5526_v23, 16  ;;  %v463_v20 = vor.u32 %v462_v62, %v459_v60  ;;  %v486_v21 = vshll.u32 %v5563_v52, 16  ;;  %v480_v22 = vshrl.u32 %v5526_v23, 16  ;;  %v5272_v60 = vld [vmem:[%s5456_s16 + $0x54] sm:$0xf] }
  0x2d   : > { %9400 = vst [vmem:[#allocation10_spill] sm:$0xff] %v5628_v12  ;;  %v5635_v25 = vsel %vm5544_vm2, %v420_v61, %v424_v32  ;;  %v449_v27 = vor.u32 %v448_v63, %v444_v57  ;;  %v452_v29 = vshll.u32 %v188_v9, 16  ;;  %v492_v31 = vrot.slane %v490_v10, 4  ;;  %v5691_v63 = vld [vmem:[%s5456_s16 + $0x6c] sm:$0xf] }
  0x2e   : > { %v474_v28 = vrot.slane %v473_v16, 4  ;;  %v478_v33 = vrot.slane %v476_v17, 5  ;;  %v464_v34 = vrot.slane %v463_v20, 4  ;;  %v488_v35 = vrot.slane %v486_v21, 5  ;;  %9404 = vst [vmem:[#allocation14_spill] sm:$0xff] %v5663_v56 }
  0x2f   : > { %v482_v36 = vrot.slane %v480_v22, 4  ;;  %v450_v32 = vrot.slane %v449_v27, 4  ;;  %v454_v37 = vrot.slane %v452_v29, 5  ;;  %v496_v43 = vshll.u32 %v193_v38, 16  ;;  %v5277_v61 = vld [vmem:[%s5456_s16 + $0x68] sm:$0xf] }
  0x30   : > { %v5646_v39 = vsel %vm5544_vm2, %v474_v28, %v478_v33  ;;  %v5650_v41 = vsel %vm5544_vm2, %v464_v34, %v468_v59  ;;  %v493_v42 = vor.u32 %v492_v31, %v488_v35  ;;  %v5680_v59 = vld [vmem:[%s5456_s16 + $0x5c] sm:$0xf]  ;;  %v5695_v9 = vld [vmem:[%s5456_s16 + $0x64] sm:$0xf]  ;;  %v5708_v17 = vld [vmem:[%s5456_s16 + $0x78] sm:$0xf] }
  0x31   : > { %9401 = vst [vmem:[#allocation11_spill] sm:$0xff] %v5646_v39  ;;  %v5654_v44 = vsel %vm5544_vm2, %v450_v32, %v454_v37  ;;  %v483_v45 = vor.u32 %v482_v36, %v478_v33  ;;  %v498_v51 = vrot.slane %v496_v43, 5  ;;  %v5705_v16 = vld [vmem:[%s5456_s16 + $0x7c] sm:$0xf]  ;;  %v5711_v20 = vld [vmem:[%s5456_s16 + $0x70] sm:$0xf] }
  0x32   : > { %301 = vrot.lane.b32.xlu2 %v5526_v23, %s5416_s17  ;;  %299 = vrot.lane.b32.xlu1 %v5529_v24, %s5416_s17  ;;  %9402 = vst [vmem:[#allocation12_spill] sm:$0xff] %v5650_v41  ;;  %v494_v46 = vrot.slane %v493_v42, 4  ;;  %v648_v22 = vshll.u32 %v5273_v54, 16  ;;  %v652_v27 = vshrl.u32 %v5273_v54, 16  ;;  %v642_v29 = vshrl.u32 %v5272_v60, 16 }
  0x33   : > { %297 = vrot.lane.b32.xlu0 %v5535_v30, %s5416_s17  ;;  %9403 = vst [vmem:[#allocation13_spill] sm:$0xff] %v5654_v44  ;;  %v484_v55 = vrot.slane %v483_v45, 4  ;;  %v5720_v31 = vld [vmem:[%s5456_s16 + $0x8c] sm:$0xf]  ;;  %v5723_v28 = vld [vmem:[%s5456_s16 + $0x84] sm:$0xf] }
  0x34   : > { %v5667_v57 = vsel %vm5544_vm2, %v494_v46, %v498_v51  ;;  %9407 = vst [vmem:[#allocation17_spill] sm:$0xff] %v5695_v9  ;;  %v638_v33 = vshll.u32 %v5272_v60, 16  ;;  %v629_v34 = vshrl.u32 %v5663_v56, 16  ;;  %v5728_v36 = vld [vmem:[%s5456_s16 + $0x80] sm:$0xf]  ;;  %v650_v32 = vrot.slane %v648_v22, 5 }
  0x35   : > { %9405 = vst [vmem:[#allocation15_spill] sm:$0xff] %v5667_v57  ;;  %v5671_v58 = vsel %vm5544_vm2, %v484_v55, %v488_v35  ;;  %v632_v35 = vshll.u32 %v5663_v56, 16  ;;  %v654_v37 = vrot.slane %v652_v27, 4  ;;  %v644_v38 = vrot.slane %v642_v29, 4 }
  0x36   : > { %9406 = vst [vmem:[#allocation16_spill] sm:$0xff] %v5671_v58  ;;  %v5417_v42 = vmov 1983009808   ;;  %v640_v45 = vrot.slane %v638_v33, 5  ;;  %v631_v46 = vrot.slane %v629_v34, 4  ;;  %v673_v22 = vshrl.u32 %v5695_v9, 16 }
  0x37   : > { %9408 = vst [vmem:[#allocation18_spill] sm:$0xff] %v5708_v17  ;;  %v1480_v43 = vunpack.c.l.s4 %v5417_v42  ;;  %v634_v51 = vrot.slane %v632_v35, 5  ;;  %v676_v27 = vshll.u32 %v5695_v9, 16  ;;  %v682_v42 = vshll.u32 %v5277_v61, 16  ;;  %v5745_v34 = vld [vmem:[%s5456_s16 + $0x98] sm:$0xf] }
  0x38   : > { %v658_v35 = vshll.u32 %v5680_v59, 16 }
  0x39   : > { %v5742_v33 = vunpack.c.0.s8 %v1480_v43  ;;  %v675_v43 = vrot.slane %v673_v22, 4  ;;  %v5275_v22 = vld [vmem:[%s5456_s16 + $0x60] sm:$0x1] }
  0x3a   : > { %518 = vrot.lane.b32.xlu2 %v5554_v47, %s5416_s17  ;;  %516 = vrot.lane.b32.xlu1 %v5558_v48, %s5416_s17 }
  0x3b   : > { %303 = vrot.lane.b32.xlu0 %v5563_v52, %s5416_s17 }
  0x42   : > { %524 = vrot.lane.b32.xlu2 %v5578_v18, %s5416_s17  ;;  %522 = vrot.lane.b32.xlu1 %v5582_v19, %s5416_s17  ;;  %v684_v19 = vrot.slane %v682_v42, 5 }
  0x43   : > { %520 = vrot.lane.b32.xlu0 %v5588_v26, %s5416_s17 }
  0x4a   : > { %530 = vrot.lane.b32.xlu2 %v5603_v49, %s5416_s17  ;;  %528 = vrot.lane.b32.xlu1 %v5607_v50, %s5416_s17  ;;  %v662_v50 = vshrl.u32 %v5680_v59, 16 }
  0x4b   : > { %526 = vrot.lane.b32.xlu0 %v5612_v53, %s5416_s17 }
  0x52   : > { %536 = vrot.lane.b32.xlu2 %v5624_v11, %s5416_s17  ;;  %534 = vrot.lane.b32.xlu1 %v5628_v12, %s5416_s17  ;;  %v645_v12 = vor.u32 %v644_v38, %v640_v45  ;;  %v664_v38 = vrot.slane %v662_v50, 4  ;;  %v696_v11 = vshrl.u32 %v5691_v63, 16 }
  0x53   : > { %532 = vrot.lane.b32.xlu0 %v5635_v25, %s5416_s17 }
  0x5a   : > { %542 = vrot.lane.b32.xlu2 %v5646_v39, %s5416_s17  ;;  %540 = vrot.lane.b32.xlu1 %v5650_v41, %s5416_s17 }
  0x5b   : > { %538 = vrot.lane.b32.xlu0 %v5654_v44, %s5416_s17  ;;  %v655_v44 = vor.u32 %v654_v37, %v650_v32  ;;  %v635_v37 = vor.u32 %v634_v51, %v631_v46 }
  0x5d   : > { %v636_v51 = vrot.slane %v635_v37, 4 }
  0x62   : > { %580 = vrot.lane.b32.xlu2 %v5663_v56, %s5416_s17  ;;  %546 = vrot.lane.b32.xlu1 %v5667_v57, %s5416_s17  ;;  %v686_v57 = vshrl.u32 %v5277_v61, 16  ;;  %v678_v56 = vrot.slane %v676_v27, 5  ;;  %v720_v27 = vshll.u32 %v5708_v17, 16 }
  0x63   : > { %544 = vrot.lane.b32.xlu0 %v5671_v58, %s5416_s17 }
  0x64   : > { %v688_v39 = vrot.slane %v686_v57, 4  ;;  %v679_v50 = vor.u32 %v678_v56, %v675_v43  ;;  %v668_v56 = vshll.u32 %v5275_v22, 16  ;;  %v722_v52 = vrot.slane %v720_v27, 5  ;;  %v5280_v22 = vld [vmem:[%s5456_s16 + $0x74] sm:$0x1] }
  0x65   : > { %v740_v27 = vshrl.u32 %v5728_v36, 16 }
  0x66   : > { %v689_v42 = vor.u32 %v688_v39, %v684_v19  ;;  %v5799_v39 = vsel %vm5544_vm2, %v636_v51, %v640_v45  ;;  %v698_v45 = vrot.slane %v696_v11, 4 }
  0x67   : > { %9411 = vst [vmem:[#allocation21_spill] sm:$0xff] %v5799_v39  ;;  %v742_v41 = vrot.slane %v740_v27, 4 }
  0x6a   : > { %586 = vrot.lane.b32.xlu2 %v5680_v59, %s5416_s17  ;;  %584 = vrot.lane.b32.xlu1 %v5273_v54, %s5416_s17  ;;  %v660_v59 = vrot.slane %v658_v35, 5  ;;  %v706_v35 = vshrl.u32 %v5711_v20, 16 }
  0x6b   : > { %582 = vrot.lane.b32.xlu0 %v5272_v60, %s5416_s17 }
  0x6c   : > { %v5688_v62 = vpop.permute.xlu2 %281 }
  0x72   : > { %592 = vrot.lane.b32.xlu2 %v5691_v63, %s5416_s17  ;;  %590 = vrot.lane.b32.xlu1 %v5277_v61, %s5416_s17  ;;  %v5757_v61 = vld [vmem:[%s5456_s16 + $0x90] sm:$0xf] }
  0x73   : > { %588 = vrot.lane.b32.xlu0 %v5695_v9, %s5416_s17 }
  0x74   : > { %v5702_v10 = vpop.permute.xlu2 %283 }
  0x7a   : > { %598 = vrot.lane.b32.xlu2 %v5705_v16, %s5416_s17  ;;  %596 = vrot.lane.b32.xlu1 %v5708_v17, %s5416_s17 }
  0x7b   : > { %594 = vrot.lane.b32.xlu0 %v5711_v20, %s5416_s17 }
  0x7c   : > { %v290_v21 = vpop.permute.xlu2 %289 }
  0x7d   : > { %v1483_v55 = vrot.slane %v290_v21, 4  ;;  %v5748_v21 = vld [vmem:[%s5456_s16 + $0x94] sm:$0xf] }
  0x7e   : > { %v780_v27 = vshll.u32 %v5748_v21, 16 }
  0x7f   : > { %v1484_v53 = vsel %vm1477_vm3, %v1483_v55, %v5489_v6  ;;  %v656_v6 = vrot.slane %v655_v44, 4  ;;  %v717_v55 = vshrl.u32 %v5708_v17, 16  ;;  %v665_v17 = vor.u32 %v664_v38, %v660_v59 }
  0x81   : > { %v5789_v37 = vsel %vm5544_vm2, %v656_v6, %v660_v59  ;;  %v719_v43 = vrot.slane %v717_v55, 4  ;;  %v666_v51 = vrot.slane %v665_v17, 4  ;;  %v670_v55 = vrot.slane %v668_v56, 5 }
  0x82   : > { %604 = vrot.lane.b32.xlu2 %v5720_v31, %s5416_s17  ;;  %602 = vrot.lane.b32.xlu1 %v5723_v28, %s5416_s17  ;;  %9409 = vst [vmem:[#allocation19_spill] sm:$0xff] %v5789_v37  ;;  %v726_v17 = vshll.u32 %v5705_v16, 16  ;;  %v712_v56 = vshll.u32 %v5280_v22, 16 }
  0x83   : > { %600 = vrot.lane.b32.xlu0 %v5728_v36, %s5416_s17 }
  0x84   : > { %v5736_v54 = vpop.permute.xlu2 %295  ;;  %v5738_v60 = vpop.permute.xlu1 %277 }
  0x85   : > { %v274_v29 = vpop.permute.xlu0 %273 }
  0x86   : > { %v1476_v58 = vrot.slane %v274_v29, 4 }
  0x88   : > { %v1478_v9 = vsel %vm1477_vm3, %v1476_v58, %v5465_v2  ;;  %v5767_v2 = vperm.slane %v1484_v53, %v5742_v33 }
  0x89   : > { %v5760_v29 = vperm.slane %v1478_v9, %v5742_v33  ;;  %v646_v9 = vrot.slane %v645_v12, 4  ;;  %v692_v12 = vshll.u32 %v5691_v63, 16 }
  0x8a   : > { %610 = vrot.lane.b32.xlu2 %v5745_v34, %s5416_s17  ;;  %608 = vrot.lane.b32.xlu1 %v5748_v21, %s5416_s17 }
  0x8b   : > { %v1491_v58 = vrot.slane %v5760_v29, 4  ;;  %606 = vrot.lane.b32.xlu0 %v5757_v61, %s5416_s17  ;;  %v5793_v26 = vsel %vm5544_vm2, %v646_v9, %v650_v32  ;;  %v690_v32 = vrot.slane %v689_v42, 4  ;;  %v694_v6 = vrot.slane %v692_v12, 5 }
  0x8c   : > { %v5772_v57 = vpop.permute.xlu2 %301  ;;  %v5774_v46 = vpop.permute.xlu1 %279  ;;  %9410 = vst [vmem:[#allocation20_spill] sm:$0xff] %v5793_v26  ;;  %v708_v9 = vrot.slane %v706_v35, 4  ;;  %v750_v12 = vshrl.u32 %v5723_v28, 16  ;;  %v723_v35 = vor.u32 %v722_v52, %v719_v43  ;;  %v5285_v43 = vld [vmem:[%s5456_s16 + $0x88] sm:$0x1] }
  0x8d   : > { %v5779_v44 = vsel %vm1477_vm3, %v5767_v2, %v1491_v58  ;;  %v5781_v53 = vpop.permute.xlu0 %275  ;;  %v702_v58 = vshll.u32 %v5711_v20, 16  ;;  %v680_v20 = vrot.slane %v679_v50, 4  ;;  %v5819_v50 = vsel %vm5544_vm2, %v690_v32, %v694_v6 }
  0x8e   : > { %9412 = vst [vmem:[#allocation22_spill] sm:$0xff] %v5819_v50  ;;  %v699_v32 = vor.u32 %v698_v45, %v694_v6  ;;  %v752_v24 = vrot.slane %v750_v12, 4  ;;  %v724_v52 = vrot.slane %v723_v35, 4  ;;  %v784_v12 = vshrl.u32 %v5748_v21, 16 }
  0x8f   : > { %v704_v63 = vrot.slane %v702_v58, 5  ;;  %v5823_v11 = vsel %vm5544_vm2, %v680_v20, %v684_v19  ;;  %v728_v19 = vrot.slane %v726_v17, 5  ;;  %v756_v17 = vshll.u32 %v5285_v43, 16 }
  0x90   : > { %9413 = vst [vmem:[#allocation23_spill] sm:$0xff] %v5823_v11  ;;  %v700_v45 = vrot.slane %v699_v32, 4  ;;  %v764_v32 = vshll.u32 %v5720_v31, 16 }
  0x91   : > { %v709_v58 = vor.u32 %v708_v9, %v704_v63 }
  0x92   : > { %824 = vrot.lane.b32.xlu2 %v5789_v37, %s5416_s17  ;;  %822 = vrot.lane.b32.xlu1 %v5793_v26, %s5416_s17  ;;  %v746_v26 = vshll.u32 %v5723_v28, 16  ;;  %v736_v37 = vshll.u32 %v5728_v36, 16  ;;  %v5830_v28 = vsel %vm5544_vm2, %v666_v51, %v670_v55  ;;  %v714_v36 = vrot.slane %v712_v56, 5 }
  0x93   : > { %820 = vrot.lane.b32.xlu0 %v5799_v39, %s5416_s17  ;;  %v730_v39 = vshrl.u32 %v5705_v16, 16  ;;  %9414 = vst [vmem:[#allocation24_spill] sm:$0xff] %v5830_v28  ;;  %v710_v16 = vrot.slane %v709_v58, 4  ;;  %v1505_v51 = vrot.slane %v5688_v62, 4  ;;  %v774_v55 = vshrl.u32 %v5757_v61, 16 }
  0x94   : > { %v5807_v59 = vpop.permute.xlu1 %287  ;;  %v5809_v38 = vpop.permute.xlu2 %518  ;;  %v748_v49 = vrot.slane %v746_v26, 5  ;;  %v738_v20 = vrot.slane %v736_v37, 5  ;;  %v5851_v37 = vsel %vm5544_vm2, %v724_v52, %v728_v19  ;;  %v770_v62 = vshll.u32 %v5757_v61, 16 }
  0x95   : > { %v5814_v42 = vpop.permute.xlu0 %285  ;;  %v732_v9 = vrot.slane %v730_v39, 4  ;;  %9415 = vst [vmem:[#allocation25_spill] sm:$0xff] %v5851_v37  ;;  %v5855_v39 = vsel %vm5544_vm2, %v710_v16, %v714_v36  ;;  %v761_v56 = vshrl.u32 %v5720_v31, 16  ;;  %v5862_v21 = vsel %vm5544_vm2, %v700_v45, %v704_v63 }
  0x96   : > { %v753_v35 = vor.u32 %v752_v24, %v748_v49  ;;  %9416 = vst [vmem:[#allocation26_spill] sm:$0xff] %v5855_v39  ;;  %v743_v58 = vor.u32 %v742_v41, %v738_v20  ;;  %v1506_v52 = vsel %vm1477_vm3, %v1505_v51, %v5459_v0  ;;  %v776_v43 = vrot.slane %v774_v55, 4 }
  0x97   : > { %9417 = vst [vmem:[#allocation27_spill] sm:$0xff] %v5862_v21  ;;  %v733_v24 = vor.u32 %v732_v9, %v728_v19  ;;  %v758_v61 = vrot.slane %v756_v17, 5  ;;  %v782_v16 = vrot.slane %v780_v27, 5  ;;  %v786_v36 = vrot.slane %v784_v12, 4 }
  0x98   : > { %v754_v41 = vrot.slane %v753_v35, 4  ;;  %v744_v63 = vrot.slane %v743_v58, 4  ;;  %v772_v45 = vrot.slane %v770_v62, 5  ;;  %v763_v19 = vrot.slane %v761_v56, 4 }
  0x99   : > { %v766_v9 = vrot.slane %v764_v32, 5  ;;  %v734_v51 = vrot.slane %v733_v24, 4  ;;  %v5877_v55 = vperm.slane %v1506_v52, %v5742_v33  ;;  %v787_v17 = vor.u32 %v786_v36, %v782_v16 }
  0x9a   : > { %830 = vrot.lane.b32.xlu2 %v5819_v50, %s5416_s17  ;;  %828 = vrot.lane.b32.xlu1 %v5823_v11, %s5416_s17  ;;  %v5881_v27 = vsel %vm5544_vm2, %v754_v41, %v758_v61  ;;  %v5885_v12 = vsel %vm5544_vm2, %v744_v63, %v748_v49  ;;  %v790_v58 = vshll.u32 %v5745_v34, 16  ;;  %v777_v62 = vor.u32 %v776_v43, %v772_v45 }
  0x9b   : > { %826 = vrot.lane.b32.xlu0 %v5830_v28, %s5416_s17  ;;  %9418 = vst [vmem:[#allocation28_spill] sm:$0xff] %v5881_v27  ;;  %v794_v56 = vshrl.u32 %v5745_v34, 16  ;;  %v767_v24 = vor.u32 %v766_v9, %v763_v19  ;;  %v1519_v52 = vrot.slane %v5877_v55, 4  ;;  %v788_v34 = vrot.slane %v787_v17, 4  ;;  %v5290_v9 = vld [vmem:[%s5456_s16 + $0x9c] sm:$0x1] }
  0x9c   : > { %v5839_v6 = vpop.permute.xlu1 %293  ;;  %v5841_v26 = vpop.permute.xlu2 %524  ;;  %9419 = vst [vmem:[#allocation29_spill] sm:$0xff] %v5885_v12  ;;  %v778_v43 = vrot.slane %v777_v62, 4  ;;  %v800_v62 = vshll.u32 %v5290_v9, 16 }
  0x9d   : > { %v5845_v22 = vpop.permute.xlu0 %291  ;;  %v796_v41 = vrot.slane %v794_v56, 4  ;;  %v768_v63 = vrot.slane %v767_v24, 4  ;;  %v2827_v56 = vrot.slane %v5736_v54, 4 }
  0x9f   : > { %v5926_v17 = vsel %vm5544_vm2, %v768_v63, %v772_v45  ;;  %v1953_v45 = vrot.slane %v5702_v10, 4  ;;  %v2828_v63 = vsel %vm1477_vm3, %v2827_v56, %v5508_v13  ;;  %v1925_v56 = vrot.slane %v5781_v53, 4 }
  0xa0   : > { %9423 = vst [vmem:[#allocation33_spill] sm:$0xff] %v5926_v17 }
  0xa2   : > { %836 = vrot.lane.b32.xlu2 %v5851_v37, %s5416_s17  ;;  %834 = vrot.lane.b32.xlu1 %v5855_v39, %s5416_s17 }
  0xa3   : > { %832 = vrot.lane.b32.xlu0 %v5862_v21, %s5416_s17 }
  0xa4   : > { %v5872_v28 = vpop.permute.xlu1 %299  ;;  %v5874_v0 = vpop.permute.xlu2 %530 }
  0xa5   : > { %v298_v39 = vpop.permute.xlu0 %297 }
  0xa6   : > { %v1511_v35 = vrot.slane %v298_v39, 4  ;;  %v5893_v39 = vsel %vm5544_vm2, %v734_v51, %v738_v20  ;;  %v792_v20 = vrot.slane %v790_v58, 5 }
  0xa7   : > { %9420 = vst [vmem:[#allocation30_spill] sm:$0xff] %v5893_v39 }
  0xa8   : > { %v1512_v32 = vsel %vm1477_vm3, %v1511_v35, %v5535_v30  ;;  %v5918_v51 = vsel %vm5544_vm2, %v788_v34, %v792_v20  ;;  %v5922_v35 = vsel %vm5544_vm2, %v778_v43, %v782_v16  ;;  %v797_v58 = vor.u32 %v796_v41, %v792_v20 }
  0xa9   : > { %v5897_v49 = vperm.slane %v1512_v32, %v5742_v33  ;;  %9421 = vst [vmem:[#allocation31_spill] sm:$0xff] %v5918_v51  ;;  %v5418_v32 = vmov 1934713408   ;;  %v1489_v16 = vrot.slane %v5767_v2, 4  ;;  %v802_v20 = vrot.slane %v800_v62, 5 }
  0xaa   : > { %842 = vrot.lane.b32.xlu2 %v5881_v27, %s5416_s17  ;;  %840 = vrot.lane.b32.xlu1 %v5885_v12, %s5416_s17  ;;  %9422 = vst [vmem:[#allocation32_spill] sm:$0xff] %v5922_v35  ;;  %v1494_v24 = vunpack.c.l.s4 %v5418_v32  ;;  %v2373_v43 = vrot.slane %v5738_v60, 4  ;;  %v2407_v32 = vrot.slane %v5772_v57, 4  ;;  %v1954_v60 = vsel %vm1477_vm3, %v1953_v45, %v5474_v3  ;;  %v6149_v27 = vld [vmem:[%s5456_s16 + $0xcc] sm:$0xf] }
  0xab   : > { %v5905_v30 = vsel %vm1477_vm3, %v5897_v49, %v1519_v52  ;;  %838 = vrot.lane.b32.xlu0 %v5893_v39, %s5416_s17  ;;  %v2821_v52 = vrot.slane %v5774_v46, 4  ;;  %v798_v46 = vrot.slane %v797_v58, 4  ;;  %v1490_v10 = vsel %vm1477_vm3, %v1489_v16, %v5760_v29  ;;  %v5958_v58 = vld [vmem:[%s5456_s16 + $0xa0] sm:$0xf] }
  0xac   : > { %v5909_v61 = vpop.permute.xlu2 %536  ;;  %v5911_v36 = vpop.permute.xlu1 %516  ;;  %v5947_v9 = vunpack.c.0.s8 %v1494_v24  ;;  %v2401_v62 = vrot.slane %v5814_v42, 4  ;;  %v2374_v29 = vsel %vm1477_vm3, %v2373_v43, %v5462_v1  ;;  %v2408_v3 = vsel %vm1477_vm3, %v2407_v32, %v5526_v23 }
  0xad   : > { %v5913_v19 = vpop.permute.xlu0 %303  ;;  %v2822_v2 = vsel %vm1477_vm3, %v2821_v52, %v5477_v4  ;;  %v5965_v13 = vsel %vm5544_vm2, %v798_v46, %v802_v20  ;;  %v2832_v4 = vperm.slane %v2828_v63, %v5742_v33  ;;  %v5984_v1 = vperm.slane %v1954_v60, %v5742_v33 }
  0xae   : > { %9424 = vst [vmem:[#allocation34_spill] sm:$0xff] %v5965_v13  ;;  %v2826_v57 = vperm.slane %v2822_v2, %v5742_v33  ;;  %v5973_v24 = vperm.slane %v1490_v10, %v5947_v9  ;;  %v5987_v53 = vperm.slane %v2374_v29, %v5742_v33  ;;  %v2402_v42 = vsel %vm1477_vm3, %v2401_v62, %v5495_v8  ;;  %v6007_v62 = vld [vmem:[%s5456_s16 + $0xb4] sm:$0xf]  ;;  %v6010_v29 = vld [vmem:[%s5456_s16 + $0xac] sm:$0xf] }
  0xaf   : > { %v2833_v45 = vrot.slane %v2832_v4, 4  ;;  %v1926_v46 = vsel %vm1477_vm3, %v1925_v56, %v5480_v5  ;;  %v2412_v43 = vperm.slane %v2408_v3, %v5742_v33  ;;  %v2849_v63 = vrot.slane %v5807_v59, 4  ;;  %v6019_v3 = vld [vmem:[%s5456_s16 + $0xa8] sm:$0xf] }
  0xb0   : > { %9425 = vst [vmem:[#allocation35_spill] sm:$0xff] %v5973_v24  ;;  %v2835_v23 = vrot.slane %v2826_v57, 4  ;;  %v1533_v2 = vrot.slane %v5911_v36, 4  ;;  %v1501_v8 = vrot.slane %v5973_v24, 4  ;;  %v1981_v10 = vrot.slane %v5809_v38, 4 }
  0xb1   : > { %v2406_v32 = vperm.slane %v2402_v42, %v5742_v33  ;;  %v2379_v60 = vrot.slane %v5839_v6, 4  ;;  %v2387_v56 = vrot.slane %v5987_v53, 4  ;;  %v6015_v59 = vperm.slane %v1926_v46, %v5742_v33 }
  0xb2   : > { %848 = vrot.lane.b32.xlu2 %v5918_v51, %s5416_s17  ;;  %846 = vrot.lane.b32.xlu1 %v5922_v35, %s5416_s17  ;;  %v5955_v35 = vld [vmem:[%s5456_s16 + $0xa4] sm:$0xf]  ;;  %v1931_v36 = vrot.slane %v5845_v22, 4  ;;  %v6023_v38 = vperm.slane %v5779_v44, %v5947_v9  ;;  %v2834_v6 = vsel %vm1477_vm3, %v2833_v45, %v2826_v57  ;;  %v2836_v42 = vsel %vm1477_vm3, %v2832_v4, %v2835_v23 }
  0xb3   : > { %844 = vrot.lane.b32.xlu0 %v5926_v17, %s5416_s17  ;;  %v2413_v5 = vrot.slane %v2412_v43, 4  ;;  %v2850_v39 = vsel %vm1477_vm3, %v2849_v63, %v5492_v7  ;;  %v1534_v46 = vsel %vm1477_vm3, %v1533_v2, %v5558_v48  ;;  %v6037_v44 = vsel %vm1477_vm3, 0, %v1501_v8  ;;  %v6230_v17 = vld [vmem:[%s5456_s16 + $0xdc] sm:$0xf] }
  0xb4   : > { %v5938_v54 = vpop.permute.xlu2 %542  ;;  %v5940_v34 = vpop.permute.xlu1 %522  ;;  %9426 = vst [vmem:[#allocation36_spill] sm:$0xff] %v6023_v38  ;;  %v1982_v22 = vsel %vm1477_vm3, %v1981_v10, %v5554_v47  ;;  %v2380_v4 = vsel %vm1477_vm3, %v2379_v60, %v5511_v14  ;;  %v6047_v48 = vperm.slane %v2834_v6, %v5947_v9  ;;  %v6050_v57 = vperm.slane %v2836_v42, %v5947_v9 }
  0xb5   : > { %v5943_v41 = vpop.permute.xlu0 %520  ;;  %9427 = vst [vmem:[#allocation37_spill] sm:$0xff] %v6037_v44  ;;  %v1939_v45 = vrot.slane %v6015_v59, 4  ;;  %v1932_v47 = vsel %vm1477_vm3, %v1931_v36, %v5514_v15  ;;  %v6060_v63 = vperm.slane %v2850_v39, %v5742_v33  ;;  %v6065_v8 = vperm.slane %v1534_v46, %v5742_v33  ;;  %v6078_v46 = vld [vmem:[%s5456_s16 + $0xc0] sm:$0xf] }
  0xb6   : > { %9428 = vst [vmem:[#allocation38_spill] sm:$0xff] %v6047_v48  ;;  %v6069_v15 = vperm.slane %v1982_v22, %v5742_v33  ;;  %v2384_v36 = vperm.slane %v2380_v4, %v5742_v33  ;;  %v1959_v6 = vrot.slane %v5872_v28, 4  ;;  %v2414_v39 = vsel %vm1477_vm3, %v2413_v5, %v2406_v32  ;;  %v6091_v5 = vld [vmem:[%s5456_s16 + $0xb8] sm:$0xf]  ;;  %v9433_v48 = vld [vmem:[#allocation2_spill] sm:$0xff] }
  0xb7   : > { %9429 = vst [vmem:[#allocation39_spill] sm:$0xff] %v6050_v57  ;;  %v6081_v57 = vld [vmem:[%s5456_s16 + $0xbc] sm:$0xf]  ;;  %v933_v4 = vshrl.u32 %v5958_v58, 16  ;;  %v936_v28 = vshll.u32 %v5958_v58, 16  ;;  %v6101_v60 = vperm.slane %v2414_v39, %v5947_v9  ;;  %v2855_v38 = vrot.slane %v5913_v19, 4 }
  0xb8   : > { %9430 = vst [vmem:[#allocation40_spill] sm:$0xff] %v6065_v8  ;;  %v980_v21 = vshll.u32 %v6007_v62, 16  ;;  %v962_v19 = vshll.u32 %v6010_v29, 16  ;;  %v952_v11 = vshll.u32 %v6019_v3, 16 }
  0xb9   : > { %9432 = vst [vmem:[#allocation42_spill] sm:$0xff] %v6101_v60 }
  0xba   : > { %886 = vrot.lane.b32.xlu2 %v5955_v35, %s5416_s17  ;;  %884 = vrot.lane.b32.xlu1 %v5958_v58, %s5416_s17  ;;  %v2385_v58 = vrot.slane %v2384_v36, 4 }
  0xbb   : > { %850 = vrot.lane.b32.xlu0 %v5965_v13, %s5416_s17  ;;  %v1561_v13 = vrot.slane %v5841_v26, 4  ;;  %v2415_v26 = vrot.slane %v2406_v32, 4 }
  0xbc   : > { %v5991_v52 = vpop.permute.xlu2 %580  ;;  %v5993_v16 = vpop.permute.xlu1 %528 }
  0xbd   : > { %v5997_v20 = vpop.permute.xlu0 %526  ;;  %v1562_v2 = vsel %vm1477_vm3, %v1561_v13, %v5578_v18  ;;  %v2416_v7 = vsel %vm1477_vm3, %v2412_v43, %v2415_v26  ;;  %v1936_v18 = vperm.slane %v1932_v47, %v5742_v33  ;;  %v946_v13 = vshrl.u32 %v5955_v35, 16 }
  0xbe   : > { %v6084_v22 = vperm.slane %v1562_v2, %v5742_v33  ;;  %v2905_v26 = vrot.slane %v5874_v0, 4  ;;  %v1547_v47 = vrot.slane %v6065_v8, 4  ;;  %v6110_v0 = vperm.slane %v2416_v7, %v5947_v9 }
  0xbf   : > { %v6122_v2 = vrot.slane %v933_v4, 4  ;;  %v6124_v43 = vrot.slane %v936_v28, 5  ;;  %v1940_v4 = vsel %vm1477_vm3, %v1936_v18, %v1939_v45  ;;  %v977_v28 = vshrl.u32 %v6007_v62, 16 }
  0xc0   : > { %9431 = vst [vmem:[#allocation41_spill] sm:$0xff] %v6084_v22 }
  0xc1   : > { %9434 = vst [vmem:[#allocation2_spill] sm:$0xff] %v6110_v0 }
  0xc2   : > { %892 = vrot.lane.b32.xlu2 %v6007_v62, %s5416_s17  ;;  %890 = vrot.lane.b32.xlu1 %v6010_v29, %s5416_s17  ;;  %v2435_v62 = vrot.slane %v5909_v61, 4  ;;  %v6176_v61 = vrot.slane %v977_v28, 4  ;;  %v6193_v28 = vrot.slane %v962_v19, 5 }
  0xc3   : > { %888 = vrot.lane.b32.xlu0 %v6019_v3, %s5416_s17 }
  0xc4   : > { %v6055_v23 = vpop.permute.xlu2 %586  ;;  %v6057_v14 = vpop.permute.xlu1 %534 }
  0xc5   : > { %v533_v10 = vpop.permute.xlu0 %532 }
  0xc6   : > { %v1539_v42 = vrot.slane %v533_v10, 4 }
  0xc8   : > { %v1540_v32 = vsel %vm1477_vm3, %v1539_v42, %v5635_v25  ;;  %v1960_v25 = vsel %vm1477_vm3, %v1959_v6, %v9433_v48  ;;  %v1937_v42 = vrot.slane %v1936_v18, 4  ;;  %v2388_v48 = vsel %vm1477_vm3, %v2384_v36, %v2387_v56  ;;  %v6162_v18 = vld [vmem:[%s5456_s16 + $0xc8] sm:$0xf] }
  0xc9   : > { %v6097_v10 = vperm.slane %v1540_v32, %v5742_v33  ;;  %v6112_v32 = vrot.slane %v946_v13, 4  ;;  %v1575_v6 = vrot.slane %v6084_v22, 4  ;;  %v1964_v0 = vperm.slane %v1960_v25, %v5742_v33 }
  0xca   : > { %898 = vrot.lane.b32.xlu2 %v6078_v46, %s5416_s17  ;;  %896 = vrot.lane.b32.xlu1 %v6081_v57, %s5416_s17  ;;  %v2386_v36 = vsel %vm1477_vm3, %v2385_v58, %v5987_v53  ;;  %v1938_v25 = vsel %vm1477_vm3, %v1937_v42, %v6015_v59  ;;  %v6152_v53 = vperm.slane %v2388_v48, %v5947_v9  ;;  %v1024_v37 = vshll.u32 %v6162_v18, 16 }
  0xcb   : > { %v6116_v39 = vsel %vm1477_vm3, %v6097_v10, %v1547_v47  ;;  %894 = vrot.lane.b32.xlu0 %v6091_v5, %s5416_s17  ;;  %v9436_v47 = vld [vmem:[#allocation6_spill] sm:$0xff]  ;;  %v6165_v58 = vperm.slane %v1940_v4, %v5947_v9  ;;  %v1965_v42 = vrot.slane %v1964_v0, 4 }
  0xcc   : > { %9435 = vst [vmem:[#allocation43_spill] sm:$0xff] %v6116_v39  ;;  %v6126_v7 = vpop.permute.xlu2 %592  ;;  %v541_v13 = vpop.permute.xlu1 %540  ;;  %v2906_v60 = vsel %vm1477_vm3, %v2905_v26, %v9436_v47  ;;  %v956_v26 = vshrl.u32 %v6019_v3, 16  ;;  %v9437_v47 = vld [vmem:[#allocation12_spill] sm:$0xff] }
  0xcd   : > { %v6132_v12 = vpop.permute.xlu0 %538  ;;  %v1567_v56 = vrot.slane %v541_v13, 4  ;;  %v6146_v13 = vld [vmem:[%s5456_s16 + $0xd0] sm:$0xf]  ;;  %9438 = vst [vmem:[#allocation6_spill] sm:$0xff] %v6152_v53  ;;  %v6155_v45 = vperm.slane %v2906_v60, %v5742_v33  ;;  %v6171_v53 = vperm.slane %v2386_v36, %v5947_v9  ;;  %v6174_v60 = vperm.slane %v1938_v25, %v5947_v9  ;;  %v9447_v25 = vld [vmem:[#allocation9_spill] sm:$0xff] }
  0xce   : > { %9441 = vst [vmem:[#allocation45_spill] sm:$0xff] %v6165_v58  ;;  %v6189_v36 = vrot.slane %v980_v21, 5  ;;  %v6191_v4 = vrot.slane %v956_v26, 4  ;;  %v966_v58 = vshrl.u32 %v6010_v29, 16  ;;  %v1966_v26 = vsel %vm1477_vm3, %v1965_v42, %v5984_v1 }
  0xcf   : > { %v1568_v51 = vsel %vm1477_vm3, %v1567_v56, %v9437_v47  ;;  %9439 = vst [vmem:[#allocation12_spill] sm:$0xff] %v6155_v45  ;;  %v1517_v56 = vrot.slane %v5897_v49, 4  ;;  %v9442_v47 = vld [vmem:[#allocation3_spill] sm:$0xff]  ;;  %v9446_v49 = vrot.slane %v5984_v1, 4  ;;  %v996_v29 = vshll.u32 %v6081_v57, 16 }
  0xd0   : > { %v6159_v59 = vperm.slane %v1568_v51, %v5742_v33  ;;  %v2856_v48 = vsel %vm1477_vm3, %v2855_v38, %v9442_v47  ;;  %9443 = vst [vmem:[#allocation3_spill] sm:$0xff] %v6171_v53  ;;  %v2436_v47 = vsel %vm1477_vm3, %v2435_v62, %v9447_v25  ;;  %v990_v62 = vshrl.u32 %v6091_v5, 16  ;;  %v5295_v45 = vld [vmem:[%s5456_s16 + $0xb0] sm:$0x1] }
  0xd1   : > { %9444 = vst [vmem:[#allocation46_spill] sm:$0xff] %v6174_v60  ;;  %v1968_v38 = vsel %vm1477_vm3, %v1964_v0, %v9446_v49  ;;  %v2860_v53 = vperm.slane %v2856_v48, %v5742_v33  ;;  %v1518_v19 = vsel %vm1477_vm3, %v1517_v56, %v5877_v55  ;;  %v1010_v49 = vshrl.u32 %v6078_v46, 16  ;;  %v6227_v56 = vld [vmem:[%s5456_s16 + $0xe0] sm:$0xf] }
  0xd2   : > { %9440 = vst [vmem:[#allocation44_spill] sm:$0xff] %v6159_v59  ;;  %v6180_v51 = vsel %vm1477_vm3, %v6159_v59, %v1575_v6  ;;  %904 = vrot.lane.b32.xlu2 %v6146_v13, %s5416_s17  ;;  %902 = vrot.lane.b32.xlu1 %v6149_v27, %s5416_s17  ;;  %v1000_v25 = vshrl.u32 %v6081_v57, 16  ;;  %v939_v6 = vor.u32 %v6124_v43, %v6122_v2  ;;  %v942_v60 = vshll.u32 %v5955_v35, 16  ;;  %v6238_v2 = vld [vmem:[%s5456_s16 + $0xd4] sm:$0xf] }
  0xd3   : > { %9445 = vst [vmem:[#allocation47_spill] sm:$0xff] %v6180_v51  ;;  %900 = vrot.lane.b32.xlu0 %v6162_v18, %s5416_s17  ;;  %v6220_v1 = vperm.slane %v1968_v38, %v5947_v9  ;;  %v6223_v55 = vperm.slane %v2436_v47, %v5742_v33  ;;  %v2429_v42 = vrot.slane %v5943_v41, 4  ;;  %v6235_v57 = vperm.slane %v5905_v30, %v5947_v9  ;;  %v9456_v51 = vld [vmem:[#allocation4_spill] sm:$0xff] }
  0xd4   : > { %v6202_v21 = vpop.permute.xlu2 %598  ;;  %v6204_v0 = vpop.permute.xlu1 %546  ;;  %v2861_v43 = vrot.slane %v2860_v53, 4  ;;  %v968_v35 = vrot.slane %v966_v58, 4  ;;  %v6241_v38 = vperm.slane %v1518_v19, %v5947_v9  ;;  %v6244_v47 = vperm.slane %v1966_v26, %v5947_v9 }
  0xd5   : > { %v6212_v48 = vpop.permute.xlu0 %544  ;;  %9448 = vst [vmem:[#allocation9_spill] sm:$0xff] %v6220_v1  ;;  %v2015_v41 = vrot.slane %v5938_v54, 4  ;;  %v2877_v1 = vrot.slane %v5940_v34, 4  ;;  %v6248_v50 = vrot.slane %v1010_v49, 4  ;;  %v6250_v3 = vrot.slane %v990_v62, 4  ;;  %v9452_v54 = vld [vmem:[#allocation5_spill] sm:$0xff] }
  0xd6   : > { %9449 = vst [vmem:[#allocation48_spill] sm:$0xff] %v6235_v57  ;;  %v6252_v30 = vrot.slane %v996_v29, 5  ;;  %v940_v58 = vrot.slane %v939_v6, 4  ;;  %v944_v26 = vrot.slane %v942_v60, 5  ;;  %v2441_v19 = vrot.slane %v6223_v55, 4 }
  0xd7   : > { %9450 = vst [vmem:[#allocation49_spill] sm:$0xff] %v6241_v38  ;;  %v2430_v34 = vsel %vm1477_vm3, %v2429_v42, %v9452_v54  ;;  %v6261_v49 = vrot.slane %v1000_v25, 4  ;;  %v6265_v62 = vrot.slane %v952_v11, 5  ;;  %v2862_v29 = vsel %vm1477_vm3, %v2861_v43, %v6060_v63  ;;  %v9455_v54 = vld [vmem:[#allocation11_spill] sm:$0xff] }
  0xd8   : > { %9451 = vst [vmem:[#allocation50_spill] sm:$0xff] %v6244_v47  ;;  %v9453_v57 = vrot.slane %v6060_v63, 4  ;;  %v3273_v25 = vshrl.u32 %v6241_v38, 16  ;;  %v1529_v42 = vrot.slane %v6241_v38, 4  ;;  %v2016_v11 = vsel %vm1477_vm3, %v2015_v41, %v9455_v54  ;;  %v6293_v41 = vld [vmem:[%s5456_s16 + $0xe8] sm:$0xf] }
  0xd9   : > { %v2878_v22 = vsel %vm1477_vm3, %v2877_v1, %v9456_v51  ;;  %v1044_v63 = vshrl.u32 %v6146_v13, 16  ;;  %v1021_v43 = vshrl.u32 %v6162_v18, 16  ;;  %v6290_v38 = vsel %vm5544_vm2, %v940_v58, %v944_v26  ;;  %v6309_v58 = vld [vmem:[%s5456_s16 + $0xe4] sm:$0xf] }
  0xda   : > { %910 = vrot.lane.b32.xlu2 %v6227_v56, %s5416_s17  ;;  %908 = vrot.lane.b32.xlu1 %v6230_v17, %s5416_s17  ;;  %v2864_v60 = vsel %vm1477_vm3, %v2860_v53, %v9453_v57  ;;  %v2434_v57 = vperm.slane %v2430_v34, %v5742_v33  ;;  %9458 = vst [vmem:[#allocation4_spill] sm:$0xff] %v6290_v38  ;;  %v972_v1 = vshll.u32 %v5295_v45, 16  ;;  %v986_v59 = vshll.u32 %v6091_v5, 16 }
  0xdb   : > { %906 = vrot.lane.b32.xlu0 %v6238_v2, %s5416_s17  ;;  %v969_v51 = vor.u32 %v968_v35, %v6193_v28  ;;  %v959_v54 = vor.u32 %v6191_v4, %v6265_v62  ;;  %v6300_v34 = vperm.slane %v2864_v60, %v5947_v9  ;;  %v6303_v18 = vperm.slane %v2016_v11, %v5742_v33 }
  0xdc   : > { %v605_v6 = vpop.permute.xlu2 %604  ;;  %v6272_v47 = vpop.permute.xlu1 %584  ;;  %v6306_v39 = vperm.slane %v2878_v22, %v5742_v33  ;;  %v949_v8 = vor.u32 %v6112_v32, %v944_v26  ;;  %v6313_v45 = vperm.slane %v2862_v29, %v5947_v9  ;;  %v6315_v35 = vrot.slane %v1044_v63, 4 }
  0xdd   : > { %9454 = vst [vmem:[#allocation5_spill] sm:$0xff] %v6272_v47  ;;  %v6283_v53 = vpop.permute.xlu0 %582  ;;  %v1030_v47 = vshll.u32 %v6149_v27, 16  ;;  %v6317_v4 = vrot.slane %v1021_v43, 4  ;;  %v9461_v5 = vshrl.u32 %v5973_v24, 16  ;;  %v2442_v11 = vsel %vm1477_vm3, %v2441_v19, %v2434_v57 }
  0xde   : > { %9457 = vst [vmem:[#allocation11_spill] sm:$0xff] %v6283_v53  ;;  %v1589_v22 = vrot.slane %v5991_v52, 4  ;;  %v970_v32 = vrot.slane %v969_v51, 4  ;;  %v974_v26 = vrot.slane %v972_v1, 5  ;;  %v960_v29 = vrot.slane %v959_v54, 4 }
  0xdf   : > { %9459 = vst [vmem:[#allocation51_spill] sm:$0xff] %v6300_v34  ;;  %v6321_v60 = vpack.i.b16 %v3273_v25, %v9461_v5  ;;  %v6325_v34 = vrot.slane %v1024_v37, 5  ;;  %v6327_v53 = vrot.slane %v1030_v47, 5  ;;  %v988_v25 = vrot.slane %v986_v59, 5  ;;  %v9464_v37 = vld [vmem:[#allocation14_spill] sm:$0xff] }
  0xe0   : > { %9460 = vst [vmem:[#allocation52_spill] sm:$0xff] %v6313_v45  ;;  %v1623_v52 = vrot.slane %v605_v6, 4  ;;  %v950_v43 = vrot.slane %v949_v8, 4  ;;  %v2443_v5 = vrot.slane %v2434_v57, 4  ;;  %v1034_v45 = vshrl.u32 %v6149_v27, 16 }
  0xe1   : > { %v6344_v51 = vsel %vm1477_vm3, 0, %v1529_v42  ;;  %v6347_v59 = vperm.slane %v2442_v11, %v5947_v9  ;;  %v1003_v6 = vor.u32 %v6261_v49, %v6252_v30  ;;  %v1006_v54 = vshll.u32 %v6078_v46, 16  ;;  %v9467_v49 = vld [vmem:[#allocation17_spill] sm:$0xff] }
  0xe2   : > { %1124 = vrot.lane.b32.xlu2 %v6290_v38, %s5416_s17  ;;  %914 = vrot.lane.b32.xlu1 %v6293_v41, %s5416_s17  ;;  %9462 = vst [vmem:[#allocation53_spill] sm:$0xff] %v6344_v51  ;;  %v1590_v8 = vsel %vm1477_vm3, %v1589_v22, %v9464_v37  ;;  %v6356_v27 = vsel %vm5544_vm2, %v970_v32, %v974_v26  ;;  %v1036_v32 = vrot.slane %v1034_v45, 4  ;;  %v1050_v24 = vshll.u32 %v6238_v2, 16 }
  0xe3   : > { %912 = vrot.lane.b32.xlu0 %v6309_v58, %s5416_s17  ;;  %9463 = vst [vmem:[#allocation54_spill] sm:$0xff] %v6347_v59  ;;  %v6361_v42 = vsel %vm5544_vm2, %v960_v29, %v6193_v28  ;;  %v993_v57 = vor.u32 %v6250_v3, %v988_v25  ;;  %v6371_v11 = vsel %vm5544_vm2, %v950_v43, %v6265_v62  ;;  %v2457_v62 = vrot.slane %v5993_v16, 4 }
  0xe4   : > { %v6337_v47 = vpop.permute.xlu2 %610  ;;  %v6339_v63 = vpop.permute.xlu1 %590  ;;  %9465 = vst [vmem:[#allocation14_spill] sm:$0xff] %v6356_v27  ;;  %v983_v22 = vor.u32 %v6189_v36, %v6176_v61  ;;  %v2444_v28 = vsel %vm1477_vm3, %v6223_v55, %v2443_v5  ;;  %v6383_v26 = vperm.slane %v1590_v8, %v5742_v33  ;;  %v1004_v61 = vrot.slane %v1003_v6, 4 }
  0xe5   : > { %v589_v38 = vpop.permute.xlu0 %588  ;;  %9466 = vst [vmem:[#allocation55_spill] sm:$0xff] %v6361_v42  ;;  %v1008_v36 = vrot.slane %v1006_v54, 5  ;;  %v994_v37 = vrot.slane %v993_v57, 4  ;;  %v2009_v43 = vrot.slane %v5997_v20, 4  ;;  %v1054_v5 = vshrl.u32 %v6238_v2, 16 }
  0xe6   : > { %v1617_v1 = vrot.slane %v589_v38, 4  ;;  %v1624_v38 = vsel %vm1477_vm3, %v1623_v52, %v5720_v31  ;;  %9468 = vst [vmem:[#allocation17_spill] sm:$0xff] %v6371_v11  ;;  %v6398_v52 = vperm.slane %v2444_v28, %v5947_v9  ;;  %v984_v6 = vrot.slane %v983_v22, 4  ;;  %v9471_v31 = vld [vmem:[#allocation18_spill] sm:$0xff] }
  0xe7   : > { %v6392_v45 = vperm.slane %v1624_v38, %v5742_v33  ;;  %v1065_v54 = vshrl.u32 %v6230_v17, 16  ;;  %v1068_v8 = vshll.u32 %v6230_v17, 16  ;;  %v1603_v20 = vrot.slane %v6383_v26, 4 }
  0xe8   : > { %v1618_v46 = vsel %vm1477_vm3, %v1617_v1, %v9467_v49  ;;  %9469 = vst [vmem:[#allocation56_spill] sm:$0xff] %v6398_v52  ;;  %v6416_v28 = vsel %vm5544_vm2, %v1004_v61, %v1008_v36  ;;  %v1037_v22 = vor.u32 %v1036_v32, %v6327_v53  ;;  %v1040_v55 = vshll.u32 %v6146_v13, 16 }
  0xe9   : > { %v6378_v3 = vperm.slane %v1618_v46, %v5742_v33  ;;  %v5300_v46 = vld [vmem:[%s5456_s16 + $0xc4] sm:$0x1]  ;;  %9470 = vst [vmem:[#allocation57_spill] sm:$0xff] %v6416_v28  ;;  %v6435_v32 = vsel %vm5544_vm2, %v984_v6, %v988_v25  ;;  %v1013_v13 = vor.u32 %v6248_v50, %v1008_v36  ;;  %v1070_v2 = vrot.slane %v1068_v8, 5 }
  0xea   : > { %1130 = vrot.lane.b32.xlu2 %v6356_v27, %s5416_s17  ;;  %1128 = vrot.lane.b32.xlu1 %v6361_v42, %s5416_s17  ;;  %9473 = vst [vmem:[#allocation58_spill] sm:$0xff] %v6435_v32  ;;  %v1038_v50 = vrot.slane %v1037_v22, 4  ;;  %v1042_v25 = vrot.slane %v1040_v55, 5  ;;  %v1078_v36 = vshrl.u32 %v6227_v56, 16  ;;  %v5305_v22 = vld [vmem:[%s5456_s16 + $0xd8] sm:$0x1] }
  0xeb   : > { %v1631_v29 = vrot.slane %v6378_v3, 4  ;;  %1126 = vrot.lane.b32.xlu0 %v6371_v11, %s5416_s17  ;;  %v1084_v59 = vshll.u32 %v6309_v58, 16 }
  0xec   : > { %v6402_v1 = vpop.permute.xlu2 %824  ;;  %v597_v16 = vpop.permute.xlu1 %596  ;;  %v6475_v52 = vsel %vm5544_vm2, %v1038_v50, %v1042_v25 }
  0xed   : > { %v6408_v38 = vsel %vm1477_vm3, %v6392_v45, %v1631_v29  ;;  %v6410_v57 = vpop.permute.xlu0 %594  ;;  %v1595_v49 = vrot.slane %v597_v16, 4  ;;  %v6425_v29 = vsel %vm5544_vm2, %v994_v37, %v6252_v30  ;;  %v1027_v16 = vor.u32 %v6325_v34, %v6317_v4  ;;  %v9475_v30 = vld [vmem:[#allocation7_spill] sm:$0xff] }
  0xee   : > { %9472 = vst [vmem:[#allocation18_spill] sm:$0xff] %v6425_v29  ;;  %v2458_v37 = vsel %vm1477_vm3, %v2457_v62, %v9475_v30  ;;  %v1987_v34 = vrot.slane %v6057_v14, 4  ;;  %v1067_v4 = vrot.slane %v1065_v54, 4  ;;  %v1056_v62 = vrot.slane %v1054_v5, 4 }
  0xef   : > { %v1596_v17 = vsel %vm1477_vm3, %v1595_v49, %v9471_v31  ;;  %v1016_v31 = vshll.u32 %v5300_v46, 16  ;;  %v9474_v49 = vld [vmem:[#allocation8_spill] sm:$0xff]  ;;  %v1028_v14 = vrot.slane %v1027_v16, 4  ;;  %v6458_v54 = vperm.slane %v2458_v37, %v5742_v33 }
  0xf0   : > { %v6431_v61 = vperm.slane %v1596_v17, %v5742_v33  ;;  %v2010_v19 = vsel %vm1477_vm3, %v2009_v43, %v9474_v49  ;;  %v6454_v43 = vrot.slane %v1050_v24, 5  ;;  %v2933_v5 = vrot.slane %v6055_v23, 4  ;;  %v9476_v49 = vld [vmem:[#allocation10_spill] sm:$0xff]  ;;  %9477 = vst [vmem:[#allocation8_spill] sm:$0xff] %v6475_v52 }
  0xf1   : > { %v2014_v6 = vperm.slane %v2010_v19, %v5742_v33  ;;  %v1018_v55 = vrot.slane %v1016_v31, 5  ;;  %v1988_v30 = vsel %vm1477_vm3, %v1987_v34, %v9476_v49  ;;  %v1088_v24 = vshrl.u32 %v6309_v58, 16 }
  0xf2   : > { %v6445_v17 = vsel %vm1477_vm3, %v6431_v61, %v1603_v20  ;;  %1136 = vrot.lane.b32.xlu2 %v6416_v28, %s5416_s17  ;;  %1134 = vrot.lane.b32.xlu1 %v6425_v29, %s5416_s17  ;;  %v1014_v20 = vrot.slane %v1013_v13, 4  ;;  %v1094_v19 = vshll.u32 %v6293_v41, 16  ;;  %v1098_v37 = vshrl.u32 %v6293_v41, 16 }
  0xf3   : > { %1132 = vrot.lane.b32.xlu0 %v6435_v32, %s5416_s17  ;;  %v1071_v13 = vor.u32 %v1070_v2, %v1067_v4  ;;  %v1074_v31 = vshll.u32 %v6227_v56, 16  ;;  %v6481_v23 = vsel %vm5544_vm2, %v1028_v14, %v6327_v53  ;;  %v1057_v34 = vor.u32 %v1056_v62, %v6454_v43  ;;  %v5366_v53 = vld [vmem:[%s5456_s16 + $0x5c] sm:$0xf] }
  0xf4   : > { %v6460_v8 = vpop.permute.xlu2 %830  ;;  %v6462_v46 = vpop.permute.xlu1 %602  ;;  %9478 = vst [vmem:[#allocation7_spill] sm:$0xff] %v6481_v23  ;;  %v1060_v49 = vshll.u32 %v5305_v22, 16  ;;  %v2023_v29 = vrot.slane %v2014_v6, 4  ;;  %v6485_v28 = vrot.slane %v1078_v36, 4  ;;  %v6489_v41 = vsel %vm5544_vm2, %v1014_v20, %v1018_v55 }
  0xf5   : > { %v6470_v16 = vpop.permute.xlu0 %600  ;;  %9479 = vst [vmem:[#allocation10_spill] sm:$0xff] %v6489_v41  ;;  %v1047_v4 = vor.u32 %v6315_v35, %v1042_v25  ;;  %v9480_v56 = vrot.slane %v6303_v18, 4  ;;  %v2934_v50 = vsel %vm1477_vm3, %v2933_v5, %v5366_v53  ;;  %v1992_v62 = vperm.slane %v1988_v30, %v5742_v33 }
  0xf6   : > { %v1090_v14 = vrot.slane %v1088_v24, 4  ;;  %v2883_v58 = vrot.slane %v6132_v12, 4  ;;  %v6499_v36 = vrot.slane %v1094_v19, 5  ;;  %v1072_v35 = vrot.slane %v1071_v13, 4 }
  0xf7   : > { %v2022_v2 = vsel %vm1477_vm3, %v9480_v56, %v2014_v6  ;;  %v1076_v25 = vrot.slane %v1074_v31, 5  ;;  %v1100_v6 = vrot.slane %v1098_v37, 4  ;;  %v1058_v20 = vrot.slane %v1057_v34, 4  ;;  %v5310_v37 = vld [vmem:[%s5456_s16 + $0xec] sm:$0x1]  ;;  %v9483_v56 = vld [vmem:[#allocation13_spill] sm:$0xff] }
  0xf8   : > { %v1062_v55 = vrot.slane %v1060_v49, 5  ;;  %v6507_v22 = vrot.slane %v1084_v59, 5  ;;  %v2024_v12 = vsel %vm1477_vm3, %v6303_v18, %v2023_v29  ;;  %v6512_v5 = vperm.slane %v2022_v2, %v5947_v9 }
  0xf9   : > { %v1048_v13 = vrot.slane %v1047_v4, 4  ;;  %v6519_v31 = vperm.slane %v2934_v50, %v5742_v33  ;;  %v1993_v34 = vrot.slane %v1992_v62, 4  ;;  %v9482_v59 = vrot.slane %v6069_v15, 4 }
  0xfa   : > { %1142 = vrot.lane.b32.xlu2 %v6475_v52, %s5416_s17  ;;  %1140 = vrot.lane.b32.xlu1 %v6481_v23, %s5416_s17  ;;  %9481 = vst [vmem:[#allocation59_spill] sm:$0xff] %v6512_v5  ;;  %v2513_v18 = vrot.slane %v6126_v7, 4  ;;  %v2884_v2 = vsel %vm1477_vm3, %v2883_v58, %v9483_v56  ;;  %v2463_v53 = vrot.slane %v6212_v48, 4  ;;  %v2911_v4 = vrot.slane %v6204_v0, 4  ;;  %v9489_v56 = vld [vmem:[#allocation16_spill] sm:$0xff]  ;;  %v9497_v5 = vld [vmem:[#allocation5_spill] sm:$0xff] }
  0xfb   : > { %1138 = vrot.lane.b32.xlu0 %v6489_v41, %s5416_s17  ;;  %v1996_v49 = vsel %vm1477_vm3, %v1992_v62, %v9482_v59  ;;  %v6533_v50 = vsel %vm5544_vm2, %v1072_v35, %v1076_v25  ;;  %v6537_v30 = vsel %vm5544_vm2, %v1058_v20, %v1062_v55  ;;  %v1101_v7 = vor.u32 %v1100_v6, %v6499_v36  ;;  %v5377_v41 = vld [vmem:[%s5456_s16 + $0x90] sm:$0xf] }
  0xfc   : > { %v837_v24 = vpop.permute.xlu2 %836  ;;  %v6515_v19 = vpop.permute.xlu1 %608  ;;  %9484 = vst [vmem:[#allocation13_spill] sm:$0xff] %v6533_v50  ;;  %v1104_v62 = vshll.u32 %v5310_v37, 16  ;;  %v1091_v59 = vor.u32 %v1090_v14, %v6507_v22  ;;  %v6542_v58 = vperm.slane %v2024_v12, %v5947_v9  ;;  %v1545_v48 = vrot.slane %v6097_v10, 4  ;;  %v5367_v12 = vld [vmem:[%s5456_s16 + $0x6c] sm:$0xf] }
  0xfd   : > { %v6525_v29 = vpop.permute.xlu0 %606  ;;  %9485 = vst [vmem:[#allocation60_spill] sm:$0xff] %v6537_v30  ;;  %v6548_v0 = vsel %vm5544_vm2, %v1048_v13, %v6454_v43  ;;  %v1081_v35 = vor.u32 %v6485_v28, %v1076_v25  ;;  %v1994_v6 = vsel %vm1477_vm3, %v1993_v34, %v6069_v15  ;;  %v6555_v55 = vperm.slane %v1996_v49, %v5947_v9  ;;  %v9490_v13 = vld [vmem:[#allocation15_spill] sm:$0xff] }
  0xfe   : > { %9486 = vst [vmem:[#allocation61_spill] sm:$0xff] %v6542_v58  ;;  %v2888_v14 = vperm.slane %v2884_v2, %v5742_v33  ;;  %v2514_v10 = vsel %vm1477_vm3, %v2513_v18, %v5367_v12  ;;  %v2043_v37 = vrot.slane %v6202_v21, 4  ;;  %v2464_v43 = vsel %vm1477_vm3, %v2463_v53, %v9489_v56  ;;  %v9491_v15 = vld [vmem:[#allocation11_spill] sm:$0xff]  ;;  %v9492_v18 = vld [vmem:[#allocation40_spill] sm:$0xff]  ;;  %v5368_v58 = vld [vmem:[%s5456_s16 + $0x7c] sm:$0xf] }
  0xff   : > { %9487 = vst [vmem:[#allocation62_spill] sm:$0xff] %v6548_v0  ;;  %v2912_v28 = vsel %vm1477_vm3, %v2911_v4, %v9490_v13  ;;  %v2037_v25 = vrot.slane %v9491_v15, 4  ;;  %v1102_v34 = vrot.slane %v1101_v7, 4  ;;  %v1106_v21 = vrot.slane %v1104_v62, 5  ;;  %v9493_v53 = vld [vmem:[#allocation43_spill] sm:$0xff] }
 0x100   : > { %9488 = vst [vmem:[#allocation63_spill] sm:$0xff] %v6555_v55  ;;  %v1092_v49 = vrot.slane %v1091_v59, 4  ;;  %v6574_v2 = vsel %vm1477_vm3, %v1545_v48, %v9492_v18  ;;  %v6578_v4 = vperm.slane %v9493_v53, %v5947_v9  ;;  %v1651_v12 = vrot.slane %v837_v24, 4  ;;  %v9496_v59 = vld [vmem:[#allocation44_spill] sm:$0xff] }
 0x101   : > { %v1082_v15 = vrot.slane %v1081_v35, 4  ;;  %v6585_v20 = vperm.slane %v1994_v6, %v5947_v9  ;;  %v6588_v7 = vperm.slane %v2514_v10, %v5742_v33  ;;  %v2889_v62 = vrot.slane %v2888_v14, 4  ;;  %v5369_v35 = vld [vmem:[%s5456_s16 + $0x54] sm:$0xf] }
 0x102   : > { %1148 = vrot.lane.b32.xlu2 %v6533_v50, %s5416_s17  ;;  %1146 = vrot.lane.b32.xlu1 %v6537_v30, %s5416_s17  ;;  %9494 = vst [vmem:[#allocation16_spill] sm:$0xff] %v6578_v4  ;;  %v1573_v48 = vrot.slane %v9496_v59, 4  ;;  %v2044_v53 = vsel %vm1477_vm3, %v2043_v37, %v5368_v58  ;;  %v6594_v24 = vperm.slane %v2464_v43, %v5742_v33  ;;  %v2967_v58 = vrot.slane %v6337_v47, 4  ;;  %v9500_v37 = vld [vmem:[#allocation25_spill] sm:$0xff]  ;;  %v9505_v47 = vld [vmem:[#allocation47_spill] sm:$0xff] }
 0x103   : > { %1144 = vrot.lane.b32.xlu0 %v6548_v0, %s5416_s17  ;;  %9495 = vst [vmem:[#allocation15_spill] sm:$0xff] %v6585_v20  ;;  %v2916_v4 = vperm.slane %v2912_v28, %v5742_v33  ;;  %v2038_v6 = vsel %vm1477_vm3, %v2037_v25, %v5369_v35  ;;  %v2485_v20 = vrot.slane %v9497_v5, 4  ;;  %v6602_v10 = vsel %vm5544_vm2, %v1102_v34, %v1106_v21  ;;  %v9501_v28 = vld [vmem:[#allocation21_spill] sm:$0xff]  ;;  %v9507_v35 = vld [vmem:[#allocation12_spill] sm:$0xff] }
 0x104   : > { %v6580_v56 = vpop.permute.xlu2 %842  ;;  %v6582_v13 = vpop.permute.xlu1 %822  ;;  %9498 = vst [vmem:[#allocation11_spill] sm:$0xff] %v6602_v10  ;;  %v6607_v59 = vsel %vm5544_vm2, %v1092_v49, %v6499_v36  ;;  %v1652_v43 = vsel %vm1477_vm3, %v1651_v12, %v9500_v37  ;;  %v6617_v5 = vsel %vm5544_vm2, %v1082_v15, %v6507_v22  ;;  %v9503_v25 = vrot.slane %v6306_v39, 4  ;;  %v9504_v21 = vld [vmem:[#allocation41_spill] sm:$0xff]  ;;  %v6688_v0 = vld [vmem:[%s5456_s16 + $0xf4] sm:$0xf] }
 0x105   : > { %v821_v18 = vpop.permute.xlu0 %820  ;;  %9499 = vst [vmem:[#allocation40_spill] sm:$0xff] %v6607_v59  ;;  %v1574_v36 = vsel %vm1477_vm3, %v1573_v48, %v9504_v21  ;;  %v6626_v49 = vperm.slane %v9505_v47, %v5947_v9  ;;  %v2890_v22 = vsel %vm1477_vm3, %v2889_v62, %v6306_v39  ;;  %v2917_v15 = vrot.slane %v2916_v4, 4 }
 0x106   : > { %v1645_v55 = vrot.slane %v821_v18, 4  ;;  %9502 = vst [vmem:[#allocation43_spill] sm:$0xff] %v6617_v5  ;;  %v2892_v34 = vsel %vm1477_vm3, %v2888_v14, %v9503_v25  ;;  %v9508_v14 = vrot.slane %v9507_v35, 4  ;;  %v2042_v48 = vperm.slane %v2038_v6, %v5742_v33  ;;  %v5370_v25 = vld [vmem:[%s5456_s16 + $0x58] sm:$0xf] }
 0x107   : > { %9506 = vst [vmem:[#allocation44_spill] sm:$0xff] %v6626_v49  ;;  %v2486_v6 = vsel %vm1477_vm3, %v2485_v20, %v5370_v25  ;;  %v2961_v49 = vrot.slane %v6410_v57, 4  ;;  %v6671_v20 = vperm.slane %v1574_v36, %v5947_v9  ;;  %v6677_v25 = vperm.slane %v2892_v34, %v5947_v9  ;;  %v6685_v36 = vld [vmem:[%s5456_s16 + $0xf8] sm:$0xf] }
 0x108   : > { %v1646_v18 = vsel %vm1477_vm3, %v1645_v55, %v9501_v28  ;;  %v2048_v55 = vperm.slane %v2044_v53, %v5742_v33  ;;  %v2920_v37 = vsel %vm1477_vm3, %v2916_v4, %v9508_v14  ;;  %v2065_v28 = vrot.slane %v6339_v63, 4  ;;  %v5371_v63 = vld [vmem:[%s5456_s16 + $0x98] sm:$0xf] }
 0x109   : > { %v6629_v12 = vperm.slane %v1646_v18, %v5742_v33  ;;  %v6644_v18 = vperm.slane %v1652_v43, %v5742_v33  ;;  %v9509_v4 = vrot.slane %v6458_v54, 4  ;;  %v1629_v53 = vrot.slane %v6392_v45, 4  ;;  %9510 = vst [vmem:[#allocation5_spill] sm:$0xff] %v6671_v20 }
 0x10a   : > { %1154 = vrot.lane.b32.xlu2 %v6602_v10, %s5416_s17  ;;  %1152 = vrot.lane.b32.xlu1 %v6607_v59, %s5416_s17  ;;  %v2968_v43 = vsel %vm1477_vm3, %v2967_v58, %v5371_v63  ;;  %v2541_v14 = vrot.slane %v6402_v1, 4  ;;  %v6674_v58 = vperm.slane %v2890_v22, %v5947_v9  ;;  %9512 = vst [vmem:[#allocation21_spill] sm:$0xff] %v6677_v25  ;;  %v2049_v63 = vrot.slane %v2048_v55, 4  ;;  %v9516_v25 = vld [vmem:[#allocation19_spill] sm:$0xff] }
 0x10b   : > { %v1659_v39 = vrot.slane %v6629_v12, 4  ;;  %1150 = vrot.lane.b32.xlu0 %v6617_v5, %s5416_s17  ;;  %v2472_v62 = vsel %vm1477_vm3, %v6594_v24, %v9509_v4  ;;  %v2469_v1 = vrot.slane %v6594_v24, 4  ;;  %v2918_v57 = vsel %vm1477_vm3, %v2917_v15, %v9507_v35  ;;  %v5372_v5 = vld [vmem:[%s5456_s16 + $0x68] sm:$0xf] }
 0x10c   : > { %v6658_v21 = vpop.permute.xlu2 %848  ;;  %v6660_v47 = vpop.permute.xlu1 %828  ;;  %9511 = vst [vmem:[#allocation25_spill] sm:$0xff] %v6674_v58  ;;  %v2066_v59 = vsel %vm1477_vm3, %v2065_v28, %v5372_v5  ;;  %v6692_v22 = vperm.slane %v6574_v2, %v5947_v9  ;;  %v6695_v34 = vperm.slane %v2472_v62, %v5947_v9  ;;  %v6698_v24 = vperm.slane %v2920_v37, %v5947_v9  ;;  %v6705_v5 = vld [vmem:[%s5456_s16 + $0xf0] sm:$0xf] }
 0x10d   : > { %v6666_v45 = vsel %vm1477_vm3, %v6644_v18, %v1659_v39  ;;  %v6668_v4 = vpop.permute.xlu0 %826  ;;  %v2051_v39 = vrot.slane %v2042_v48, 4  ;;  %v6701_v15 = vperm.slane %v2486_v6, %v5742_v33  ;;  %v2972_v35 = vperm.slane %v2968_v43, %v5742_v33  ;;  %v5373_v58 = vld [vmem:[%s5456_s16 + $0x70] sm:$0xf] }
 0x10e   : > { %9513 = vst [vmem:[#allocation41_spill] sm:$0xff] %v6692_v22  ;;  %v1630_v28 = vsel %vm1477_vm3, %v1629_v53, %v6378_v3  ;;  %v2542_v2 = vsel %vm1477_vm3, %v2541_v14, %v9516_v25  ;;  %v2962_v62 = vsel %vm1477_vm3, %v2961_v49, %v5373_v58  ;;  %v2470_v6 = vsel %vm1477_vm3, %v2469_v1, %v6458_v54 }
 0x10f   : > { %9514 = vst [vmem:[#allocation47_spill] sm:$0xff] %v6695_v34  ;;  %v3369_v34 = vshrl.u32 %v6671_v20, 16  ;;  %v6718_v43 = vperm.slane %v2918_v57, %v5947_v9  ;;  %v2050_v3 = vsel %vm1477_vm3, %v2049_v63, %v2042_v48  ;;  %v2052_v49 = vsel %vm1477_vm3, %v2048_v55, %v2051_v39 }
 0x110   : > { %9515 = vst [vmem:[#allocation12_spill] sm:$0xff] %v6698_v24  ;;  %v6721_v24 = vperm.slane %v2066_v59, %v5742_v33  ;;  %v2939_v53 = vrot.slane %v6462_v46, 4  ;;  %v3368_v54 = vshrl.u32 %v6692_v22, 16  ;;  %v2973_v14 = vrot.slane %v2972_v35, 4 }
 0x111   : > { %9517 = vst [vmem:[#allocation19_spill] sm:$0xff] %v6718_v43  ;;  %v6734_v59 = vperm.slane %v1630_v28, %v5947_v9  ;;  %v6737_v58 = vperm.slane %v2542_v2, %v5742_v33  ;;  %v2966_v25 = vperm.slane %v2962_v62, %v5742_v33  ;;  %v6745_v55 = vperm.slane %v2470_v6, %v5947_v9  ;;  %v5374_v43 = vld [vmem:[%s5456_s16 + $0x84] sm:$0xf] }
 0x112   : > { %1192 = vrot.lane.b32.xlu2 %v6685_v36, %s5416_s17  ;;  %1190 = vrot.lane.b32.xlu1 %v6688_v0, %s5416_s17  ;;  %v2499_v63 = vrot.slane %v6701_v15, 4  ;;  %v2491_v1 = vrot.slane %v6470_v16, 4  ;;  %v3370_v39 = vpack.i.b16 %v3369_v34, %v3368_v54  ;;  %v6752_v28 = vperm.slane %v2050_v3, %v5947_v9  ;;  %v6767_v54 = vld [vmem:[%s5456_s16 + $0x108] sm:$0xf]  ;;  %v6770_v3 = vld [vmem:[%s5456_s16 + $0x104] sm:$0xf] }
 0x113   : > { %1188 = vrot.lane.b32.xlu0 %v6705_v5, %s5416_s17  ;;  %9518 = vst [vmem:[#allocation64_spill] sm:$0xff] %v6734_v59  ;;  %v6755_v2 = vperm.slane %v2052_v49, %v5947_v9  ;;  %v2121_v6 = vrot.slane %v6460_v8, 4  ;;  %v6761_v37 = vperm.slane %v6408_v38, %v5947_v9  ;;  %v1601_v16 = vrot.slane %v6431_v61, 4 }
 0x114   : > { %v6740_v48 = vpop.permute.xlu2 %886  ;;  %v6742_v46 = vpop.permute.xlu1 %834  ;;  %9519 = vst [vmem:[#allocation65_spill] sm:$0xff] %v6745_v55  ;;  %v2940_v34 = vsel %vm1477_vm3, %v2939_v53, %v5374_v43  ;;  %v1557_v49 = vrot.slane %v6692_v22, 4  ;;  %v2974_v62 = vsel %vm1477_vm3, %v2973_v14, %v2966_v25  ;;  %v2975_v8 = vrot.slane %v2966_v25, 4  ;;  %v5375_v43 = vld [vmem:[%s5456_s16 + $0x80] sm:$0xf] }
 0x115   : > { %v6749_v57 = vpop.permute.xlu0 %832  ;;  %9520 = vst [vmem:[#allocation66_spill] sm:$0xff] %v6752_v28  ;;  %v6781_v61 = vperm.slane %v6445_v17, %v5947_v9  ;;  %v2492_v53 = vsel %vm1477_vm3, %v2491_v1, %v5375_v43  ;;  %v4050_v28 = vunpack.c.l.b16 %v3370_v39  ;;  %v9524_v22 = vld [vmem:[#allocation22_spill] sm:$0xff]  ;;  %v2944_v14 = vperm.slane %v2940_v34, %v5742_v33 }
 0x116   : > { %9521 = vst [vmem:[#allocation67_spill] sm:$0xff] %v6755_v2  ;;  %v6776_v2 = vld [vmem:[%s5456_s16 + $0xfc] sm:$0xf]  ;;  %v2122_v55 = vsel %vm1477_vm3, %v2121_v6, %v9524_v22  ;;  %v2519_v25 = vrot.slane %v6515_v19, 4  ;;  %v1237_v30 = vshrl.u32 %v6705_v5, 16  ;;  %v6796_v17 = vperm.slane %v2974_v62, %v5947_v9 }
 0x117   : > { %9522 = vst [vmem:[#allocation68_spill] sm:$0xff] %v6761_v37  ;;  %v1260_v37 = vshrl.u32 %v6685_v36, 16  ;;  %v1602_v1 = vsel %vm1477_vm3, %v1601_v16, %v6383_v26  ;;  %v2071_v22 = vrot.slane %v6525_v29, 4  ;;  %v6804_v19 = vsel %vm1477_vm3, 0, %v1557_v49 }
 0x118   : > { %9523 = vst [vmem:[#allocation69_spill] sm:$0xff] %v6781_v61  ;;  %v2976_v39 = vsel %vm1477_vm3, %v2972_v35, %v2975_v8  ;;  %v2496_v6 = vperm.slane %v2492_v53, %v5742_v33  ;;  %v1240_v34 = vshll.u32 %v6705_v5, 16  ;;  %v1585_v26 = vrot.slane %v6671_v20, 4 }
 0x119   : > { %9525 = vst [vmem:[#allocation22_spill] sm:$0xff] %v6796_v17  ;;  %v6815_v29 = vperm.slane %v2122_v55, %v5742_v33  ;;  %v6817_v16 = vrot.slane %v1260_v37, 4  ;;  %v1246_v35 = vshll.u32 %v6688_v0, 16  ;;  %v9528_v5 = vunpack.c.l.b16 %v6321_v60  ;;  %v5376_v17 = vld [vmem:[%s5456_s16 + $0x94] sm:$0xf] }
 0x11a   : > { %1198 = vrot.lane.b32.xlu2 %v6767_v54, %s5416_s17  ;;  %1196 = vrot.lane.b32.xlu1 %v6770_v3, %s5416_s17  ;;  %9526 = vst [vmem:[#allocation70_spill] sm:$0xff] %v6804_v19  ;;  %v9530_v53 = vrot.slane %v6519_v31, 4  ;;  %v2520_v55 = vsel %vm1477_vm3, %v2519_v25, %v5376_v17  ;;  %v1673_v61 = vrot.slane %v6660_v47, 4  ;;  %v6832_v37 = vrot.slane %v1237_v30, 4  ;;  %v6851_v47 = vld [vmem:[%s5456_s16 + $0x10c] sm:$0xf] }
 0x11b   : > { %1194 = vrot.lane.b32.xlu0 %v6776_v2, %s5416_s17  ;;  %9527 = vst [vmem:[#allocation71_spill] sm:$0xff] %v6815_v29  ;;  %v6824_v8 = vpack.c.b16 %v4050_v28, %v9528_v5  ;;  %v6835_v20 = vperm.slane %v2976_v39, %v5947_v9  ;;  %v2945_v42 = vrot.slane %v2944_v14, 4  ;;  %v2072_v60 = vsel %vm1477_vm3, %v2071_v22, %v5377_v41  ;;  %v6841_v5 = vld [vmem:[%s5456_s16 + $0x118] sm:$0xf]  ;;  %v7004_v29 = vld [vmem:[%s5456_s16 + $0x12c] sm:$0xf] }
 0x11c   : > { %v6809_v62 = vpop.permute.xlu2 %892  ;;  %v6811_v43 = vpop.permute.xlu1 %840  ;;  %v2948_v38 = vsel %vm1477_vm3, %v2944_v14, %v9530_v53  ;;  %v1250_v28 = vshrl.u32 %v6688_v0, 16  ;;  %v6844_v53 = vld [vmem:[%s5456_s16 + $0x110] sm:$0xf]  ;;  %v2497_v23 = vrot.slane %v2496_v6, 4  ;;  %v2500_v25 = vsel %vm1477_vm3, %v2496_v6, %v2499_v63  ;;  %v9533_v63 = vld [vmem:[#allocation23_spill] sm:$0xff] }
 0x11d   : > { %v6820_v49 = vpop.permute.xlu0 %838  ;;  %9529 = vst [vmem:[#allocation72_spill] sm:$0xff] %v6824_v8  ;;  %v6847_v17 = vrot.slane %v1240_v34, 5  ;;  %v1290_v30 = vshll.u32 %v6767_v54, 16  ;;  %v6854_v14 = vperm.slane %v2948_v38, %v5947_v9  ;;  %v2524_v41 = vperm.slane %v2520_v55, %v5742_v33  ;;  %v9545_v8 = vld [vmem:[#allocation20_spill] sm:$0xff] }
 0x11e   : > { %9531 = vst [vmem:[#allocation73_spill] sm:$0xff] %v6835_v20  ;;  %v6857_v22 = vrot.slane %v1246_v35, 5  ;;  %v1294_v0 = vshrl.u32 %v6767_v54, 16  ;;  %v2076_v20 = vperm.slane %v2072_v60, %v5742_v33  ;;  %v1674_v6 = vsel %vm1477_vm3, %v1673_v61, %v9533_v63 }
 0x11f   : > { %9532 = vst [vmem:[#allocation74_spill] sm:$0xff] %v6854_v14  ;;  %v6869_v38 = vperm.slane %v1602_v1, %v5947_v9  ;;  %v6872_v34 = vperm.slane %v2500_v25, %v5947_v9  ;;  %v2946_v54 = vsel %vm1477_vm3, %v2945_v42, %v6519_v31  ;;  %v6876_v35 = vrot.slane %v1250_v28, 4 }
 0x120   : > { %v1270_v55 = vshrl.u32 %v6776_v2, 16  ;;  %v2498_v61 = vsel %vm1477_vm3, %v2497_v23, %v6701_v15  ;;  %v6883_v60 = vrot.slane %v1290_v30, 5  ;;  %v1281_v1 = vshrl.u32 %v6770_v3, 16 }
 0x121   : > { %9534 = vst [vmem:[#allocation23_spill] sm:$0xff] %v6869_v38  ;;  %v6891_v42 = vsel %vm1477_vm3, 0, %v1585_v26  ;;  %v2525_v31 = vrot.slane %v2524_v41, 4  ;;  %v9537_v28 = vrot.slane %v6588_v7, 4  ;;  %v6897_v23 = vperm.slane %v1674_v6, %v5742_v33 }
 0x122   : > { %1204 = vrot.lane.b32.xlu2 %v6841_v5, %s5416_s17  ;;  %1202 = vrot.lane.b32.xlu1 %v6844_v53, %s5416_s17  ;;  %9535 = vst [vmem:[#allocation75_spill] sm:$0xff] %v6872_v34  ;;  %v6899_v15 = vrot.slane %v1294_v0, 4  ;;  %v2077_v34 = vrot.slane %v2076_v20, 4  ;;  %v2995_v14 = vrot.slane %v6580_v56, 4  ;;  %v2093_v27 = vrot.slane %v6582_v13, 4 }
 0x123   : > { %1200 = vrot.lane.b32.xlu0 %v6851_v47, %s5416_s17  ;;  %9536 = vst [vmem:[#allocation76_spill] sm:$0xff] %v6891_v42  ;;  %v2528_v39 = vsel %vm1477_vm3, %v2524_v41, %v9537_v28  ;;  %v6904_v26 = vperm.slane %v2498_v61, %v5947_v9  ;;  %v6907_v10 = vperm.slane %v2946_v54, %v5947_v9  ;;  %v6909_v41 = vrot.slane %v1270_v55, 4  ;;  %v6913_v0 = vld [vmem:[%s5456_s16 + $0x124] sm:$0xf]  ;;  %v6916_v28 = vld [vmem:[%s5456_s16 + $0x120] sm:$0xf] }
 0x124   : > { %v6886_v63 = vpop.permute.xlu2 %898  ;;  %v6888_v25 = vpop.permute.xlu1 %846  ;;  %v1284_v6 = vshll.u32 %v6770_v3, 16  ;;  %9540 = vst [vmem:[#allocation79_spill] sm:$0xff] %v6913_v0  ;;  %v1657_v50 = vrot.slane %v6644_v18, 4  ;;  %v9541_v56 = vrot.slane %v6721_v24, 4  ;;  %v9542_v61 = vld [vmem:[#allocation33_spill] sm:$0xff]  ;;  %v2526_v55 = vsel %vm1477_vm3, %v2525_v31, %v6588_v7 }
 0x125   : > { %v845_v30 = vpop.permute.xlu0 %844  ;;  %9538 = vst [vmem:[#allocation77_spill] sm:$0xff] %v6904_v26  ;;  %v6930_v3 = vperm.slane %v2528_v39, %v5947_v9  ;;  %v1687_v26 = vrot.slane %v6897_v23, 4  ;;  %v3464_v7 = vshrl.u32 %v6869_v38, 16 }
 0x126   : > { %v1679_v32 = vrot.slane %v845_v30, 4  ;;  %9539 = vst [vmem:[#allocation78_spill] sm:$0xff] %v6907_v10  ;;  %v2080_v13 = vsel %vm1477_vm3, %v2076_v20, %v9541_v56  ;;  %v6922_v30 = vrot.slane %v1281_v1, 4  ;;  %v5322_v10 = vld [vmem:[%s5456_s16 + $0x11c] sm:$0xf]  ;;  %v2078_v20 = vsel %vm1477_vm3, %v2077_v34, %v6721_v24  ;;  %v9544_v1 = vld [vmem:[#allocation28_spill] sm:$0xff] }
 0x127   : > { %9543 = vst [vmem:[#allocation33_spill] sm:$0xff] %v6930_v3  ;;  %v2996_v56 = vsel %vm1477_vm3, %v2995_v14, %v9544_v1  ;;  %v6948_v39 = vperm.slane %v2080_v13, %v5947_v9  ;;  %v6950_v31 = vrot.slane %v1284_v6, 5  ;;  %v1328_v14 = vshll.u32 %v6841_v5, 16 }
 0x128   : > { %v1680_v54 = vsel %vm1477_vm3, %v1679_v32, %v9542_v61  ;;  %v2094_v32 = vsel %vm1477_vm3, %v2093_v27, %v9545_v8  ;;  %v1325_v8 = vshrl.u32 %v6841_v5, 16  ;;  %v1304_v34 = vshrl.u32 %v6851_v47, 16 }
 0x129   : > { %v6934_v18 = vperm.slane %v1680_v54, %v5742_v33  ;;  %9546 = vst [vmem:[#allocation28_spill] sm:$0xff] %v6948_v39  ;;  %v1310_v6 = vshll.u32 %v6844_v53, 16  ;;  %v6971_v54 = vperm.slane %v2526_v55, %v5947_v9  ;;  %v6974_v1 = vperm.slane %v2996_v56, %v5742_v33 }
 0x12a   : > { %1210 = vrot.lane.b32.xlu2 %v6913_v0, %s5416_s17  ;;  %1208 = vrot.lane.b32.xlu1 %v6916_v28, %s5416_s17  ;;  %v6977_v27 = vperm.slane %v2094_v32, %v5742_v33  ;;  %v2575_v3 = vrot.slane %v6658_v21, 4  ;;  %v2989_v39 = vrot.slane %v6668_v4, 4  ;;  %v1334_v38 = vshll.u32 %v5322_v10, 16 }
 0x12b   : > { %v6954_v24 = vsel %vm1477_vm3, %v6934_v18, %v1687_v26  ;;  %1206 = vrot.lane.b32.xlu0 %v5322_v10, %s5416_s17  ;;  %v6968_v26 = vperm.slane %v2078_v20, %v5947_v9  ;;  %9549 = vst [vmem:[#allocation81_spill] sm:$0xff] %v6971_v54  ;;  %v1338_v11 = vshrl.u32 %v5322_v10, 16  ;;  %v6984_v20 = vld [vmem:[%s5456_s16 + $0x134] sm:$0xf]  ;;  %v1253_v55 = vor.u32 %v6876_v35, %v6857_v22 }
 0x12c   : > { %9547 = vst [vmem:[#allocation20_spill] sm:$0xff] %v6954_v24  ;;  %v6963_v13 = vpop.permute.xlu2 %904  ;;  %v6965_v61 = vpop.permute.xlu1 %884  ;;  %v1256_v56 = vshll.u32 %v6685_v36, 16  ;;  %v1243_v32 = vor.u32 %v6847_v17, %v6832_v37  ;;  %v1266_v54 = vshll.u32 %v6776_v2, 16  ;;  %v6995_v24 = vrot.slane %v1325_v8, 4  ;;  %v9553_v17 = vld [vmem:[#allocation31_spill] sm:$0xff] }
 0x12d   : > { %9548 = vst [vmem:[#allocation80_spill] sm:$0xff] %v6968_v26  ;;  %v6979_v5 = vpop.permute.xlu0 %850  ;;  %v6987_v26 = vld [vmem:[%s5456_s16 + $0x130] sm:$0xf]  ;;  %v6997_v21 = vrot.slane %v1328_v14, 5  ;;  %v6999_v4 = vrot.slane %v1304_v34, 4  ;;  %v7001_v10 = vrot.slane %v1310_v6, 5  ;;  %v1658_v36 = vsel %vm1477_vm3, %v1657_v50, %v6629_v12 }
 0x12e   : > { %v3001_v52 = vrot.slane %v6974_v1, 4  ;;  %v1314_v35 = vshrl.u32 %v6844_v53, 16  ;;  %v9551_v37 = vshrl.u32 %v6734_v59, 16  ;;  %v2576_v8 = vsel %vm1477_vm3, %v2575_v3, %v9553_v17  ;;  %v9554_v14 = vld [vmem:[#allocation24_spill] sm:$0xff] }
 0x12f   : > { %9550 = vst [vmem:[#allocation82_spill] sm:$0xff] %v6999_v4  ;;  %v2990_v34 = vsel %vm1477_vm3, %v2989_v39, %v9554_v14  ;;  %v7018_v6 = vrot.slane %v1334_v38, 5  ;;  %v1340_v4 = vrot.slane %v1338_v11, 4  ;;  %v1254_v50 = vrot.slane %v1253_v55, 4 }
 0x130   : > { %v7012_v2 = vpack.i.b16 %v9551_v37, %v3464_v7  ;;  %v1258_v12 = vrot.slane %v1256_v56, 5  ;;  %v1244_v53 = vrot.slane %v1243_v32, 4  ;;  %v1268_v7 = vrot.slane %v1266_v54, 5  ;;  %v5315_v37 = vld [vmem:[%s5456_s16 + $0x100] sm:$0x1] }
 0x131   : > { %v7027_v3 = vperm.slane %v1658_v36, %v5947_v9  ;;  %v9556_v14 = vpack.i.b16 %v6344_v51, %v6037_v44  ;;  %v2994_v55 = vperm.slane %v2990_v34, %v5742_v33  ;;  %v7042_v54 = vrot.slane %v1314_v35, 4 }
 0x132   : > { %9552 = vst [vmem:[#allocation83_spill] sm:$0xff] %v7012_v2  ;;  %1216 = vrot.lane.b32.xlu2 %v6984_v20, %s5416_s17  ;;  %1214 = vrot.lane.b32.xlu1 %v6987_v26, %s5416_s17  ;;  %v1354_v56 = vshll.u32 %v6913_v0, 16  ;;  %v7049_v38 = vperm.slane %v2576_v8, %v5742_v33  ;;  %v1358_v17 = vshrl.u32 %v6913_v0, 16  ;;  %v1341_v51 = vor.u32 %v1340_v4, %v7018_v6 }
 0x133   : > { %1212 = vrot.lane.b32.xlu0 %v7004_v29, %s5416_s17  ;;  %v7039_v59 = vunpack.c.l.b16 %v9556_v14  ;;  %v1344_v14 = vshll.u32 %v6916_v28, 16  ;;  %v7056_v34 = vsel %vm5544_vm2, %v1254_v50, %v1258_v12  ;;  %v7061_v35 = vsel %vm5544_vm2, %v1244_v53, %v6857_v22 }
 0x134   : > { %v7030_v39 = vpop.permute.xlu2 %910  ;;  %v7032_v11 = vpop.permute.xlu1 %890  ;;  %9558 = vst [vmem:[#allocation84_spill] sm:$0xff] %v7056_v34  ;;  %v1273_v36 = vor.u32 %v6909_v41, %v1268_v7  ;;  %v1276_v44 = vshll.u32 %v5315_v37, 16  ;;  %v1348_v8 = vshrl.u32 %v6916_v28, 16  ;;  %v1378_v0 = vshll.u32 %v6987_v26, 16 }
 0x135   : > { %9555 = vst [vmem:[#allocation31_spill] sm:$0xff] %v7032_v11  ;;  %v7045_v32 = vpop.permute.xlu0 %888  ;;  %v1382_v4 = vshrl.u32 %v6987_v26, 16  ;;  %v1263_v2 = vor.u32 %v6817_v16, %v1258_v12  ;;  %v7073_v50 = vperm.slane %v6666_v45, %v5947_v9  ;;  %v3003_v11 = vrot.slane %v2994_v55, 4 }
 0x136   : > { %9557 = vst [vmem:[#allocation24_spill] sm:$0xff] %v7039_v59  ;;  %v7068_v59 = vld [vmem:[%s5456_s16 + $0x138] sm:$0xf]  ;;  %v7075_v22 = vrot.slane %v1354_v56, 5  ;;  %v3002_v53 = vsel %vm1477_vm3, %v3001_v52, %v2994_v55  ;;  %v7079_v28 = vrot.slane %v1358_v17, 4  ;;  %v1342_v16 = vrot.slane %v1341_v51, 4 }
 0x137   : > { %9559 = vst [vmem:[#allocation85_spill] sm:$0xff] %v7061_v35  ;;  %v7085_v26 = vrot.slane %v1344_v14, 5  ;;  %v1274_v12 = vrot.slane %v1273_v36, 4  ;;  %v1278_v37 = vrot.slane %v1276_v44, 5  ;;  %v9561_v56 = vld [vmem:[#allocation35_spill] sm:$0xff]  ;;  %v9562_v52 = vld [vmem:[#allocation49_spill] sm:$0xff]  ;;  %v3004_v45 = vsel %vm1477_vm3, %v6974_v1, %v3003_v11 }
 0x138   : > { %9560 = vst [vmem:[#allocation86_spill] sm:$0xff] %v7073_v50  ;;  %v3271_v17 = vpack.i.b16 %v9562_v52, %v9561_v56  ;;  %v7092_v55 = vrot.slane %v1348_v8, 4  ;;  %v7094_v41 = vrot.slane %v1378_v0, 5  ;;  %v1384_v50 = vrot.slane %v1382_v4, 4 }
 0x139   : > { %v1264_v14 = vrot.slane %v1263_v2, 4  ;;  %v2149_v44 = vrot.slane %v6740_v48, 4  ;;  %v2569_v0 = vrot.slane %v6749_v57, 4  ;;  %v1701_v4 = vrot.slane %v6965_v61, 4 }
 0x13a   : > { %1430 = vrot.lane.b32.xlu2 %v7056_v34, %s5416_s17  ;;  %1428 = vrot.lane.b32.xlu1 %v7061_v35, %s5416_s17  ;;  %v7103_v35 = vperm.slane %v3002_v53, %v5947_v9  ;;  %v1369_v56 = vshrl.u32 %v7004_v29, 16  ;;  %v7115_v1 = vsel %vm5544_vm2, %v1342_v16, %v7085_v26  ;;  %v7119_v48 = vsel %vm5544_vm2, %v1274_v12, %v1278_v37  ;;  %v9568_v37 = vld [vmem:[#allocation27_spill] sm:$0xff] }
 0x13b   : > { %1218 = vrot.lane.b32.xlu0 %v7068_v59, %s5416_s17  ;;  %9564 = vst [vmem:[#allocation49_spill] sm:$0xff] %v7119_v48  ;;  %v1331_v2 = vor.u32 %v6997_v21, %v6995_v24  ;;  %v1297_v57 = vor.u32 %v6899_v15, %v6883_v60  ;;  %v1300_v61 = vshll.u32 %v6851_v47, 16  ;;  %v1372_v11 = vshll.u32 %v7004_v29, 16  ;;  %v5378_v21 = vld [vmem:[%s5456_s16 + $0xa4] sm:$0xf] }
 0x13c   : > { %v7096_v34 = vpop.permute.xlu2 %1124  ;;  %v7098_v51 = vpop.permute.xlu1 %896  ;;  %9563 = vst [vmem:[#allocation35_spill] sm:$0xff] %v7103_v35  ;;  %v7129_v53 = vsel %vm5544_vm2, %v1264_v14, %v1268_v7  ;;  %v1385_v16 = vor.u32 %v1384_v50, %v7094_v41  ;;  %v1388_v52 = vshll.u32 %v6984_v20, 16  ;;  %v7134_v12 = vperm.slane %v3004_v45, %v5947_v9  ;;  %v5379_v14 = vld [vmem:[%s5456_s16 + $0xa0] sm:$0xf] }
 0x13d   : > { %v7106_v36 = vpop.permute.xlu0 %894  ;;  %9565 = vst [vmem:[#allocation87_spill] sm:$0xff] %v7129_v53  ;;  %v3017_v24 = vrot.slane %v6742_v46, 4  ;;  %v9567_v15 = vpack.i.b16 %v6891_v42, %v6804_v19  ;;  %v7142_v29 = vunpack.c.l.b16 %v3271_v17  ;;  %v2150_v7 = vsel %vm1477_vm3, %v2149_v44, %v5378_v21  ;;  %v9569_v42 = vld [vmem:[#allocation26_spill] sm:$0xff] }
 0x13e   : > { %9566 = vst [vmem:[#allocation88_spill] sm:$0xff] %v7134_v12  ;;  %v2570_v50 = vsel %vm1477_vm3, %v2569_v0, %v9568_v37  ;;  %v1702_v45 = vsel %vm1477_vm3, %v1701_v4, %v5379_v14  ;;  %v1392_v8 = vshrl.u32 %v6984_v20, 16  ;;  %v1729_v46 = vrot.slane %v6809_v62, 4  ;;  %v5325_v0 = vld [vmem:[%s5456_s16 + $0x128] sm:$0x1] }
 0x13f   : > { %v7140_v47 = vunpack.c.l.b16 %v9567_v15  ;;  %v1332_v17 = vrot.slane %v1331_v2, 4  ;;  %v1298_v44 = vrot.slane %v1297_v57, 4  ;;  %v7158_v15 = vrot.slane %v1300_v61, 5 }
 0x140   : > { %v1371_v4 = vrot.slane %v1369_v56, 4  ;;  %v1374_v21 = vrot.slane %v1372_v11, 5  ;;  %v1386_v12 = vrot.slane %v1385_v16, 4  ;;  %v7165_v35 = vrot.slane %v1388_v52, 5 }
 0x141   : > { %v7168_v62 = vperm.slane %v2570_v50, %v5742_v33  ;;  %v3018_v2 = vsel %vm1477_vm3, %v3017_v24, %v9569_v42  ;;  %v2547_v57 = vrot.slane %v6811_v43, 4  ;;  %v7174_v61 = vperm.slane %v1702_v45, %v5742_v33 }
 0x142   : > { %1446 = vrot.lane.b32.xlu2 %v7115_v1, %s5416_s17  ;;  %1434 = vrot.lane.b32.xlu1 %v7119_v48, %s5416_s17  ;;  %v1398_v11 = vshll.u32 %v7068_v59, 16  ;;  %v1361_v16 = vor.u32 %v7079_v28, %v7075_v22  ;;  %v1364_v52 = vshll.u32 %v5325_v0, 16  ;;  %v7184_v42 = vsel %vm5544_vm2, %v1332_v17, %v7018_v6  ;;  %v5381_v28 = vld [vmem:[%s5456_s16 + $0xc8] sm:$0xf] }
 0x143   : > { %1432 = vrot.lane.b32.xlu0 %v7129_v53, %s5416_s17  ;;  %v5380_v53 = vld [vmem:[%s5456_s16 + $0xb4] sm:$0xf]  ;;  %9570 = vst [vmem:[#allocation27_spill] sm:$0xff] %v7184_v42  ;;  %v7189_v43 = vsel %vm5544_vm2, %v1298_v44, %v7158_v15  ;;  %v1287_v24 = vor.u32 %v6950_v31, %v6922_v30  ;;  %v1402_v45 = vshrl.u32 %v7068_v59, 16  ;;  %v1375_v6 = vor.u32 %v1374_v21, %v1371_v4 }
 0x144   : > { %v7161_v37 = vpop.permute.xlu2 %1130  ;;  %v7163_v14 = vpop.permute.xlu1 %902  ;;  %v1730_v50 = vsel %vm1477_vm3, %v1729_v46, %v5380_v53  ;;  %9571 = vst [vmem:[#allocation26_spill] sm:$0xff] %v7189_v43  ;;  %v7199_v53 = vsel %vm5544_vm2, %v1386_v12, %v7165_v35  ;;  %v7202_v46 = vperm.slane %v2150_v7, %v5742_v33  ;;  %v2099_v17 = vrot.slane %v6820_v49, 4 }
 0x145   : > { %v901_v56 = vpop.permute.xlu0 %900  ;;  %9572 = vst [vmem:[#allocation89_spill] sm:$0xff] %v7199_v53  ;;  %v1715_v44 = vrot.slane %v7174_v61, 4  ;;  %v7210_v59 = vperm.slane %v1730_v50, %v5742_v33  ;;  %v1362_v12 = vrot.slane %v1361_v16, 4  ;;  %v1366_v49 = vrot.slane %v1364_v52, 5 }
 0x146   : > { %v1707_v19 = vrot.slane %v901_v56, 4  ;;  %v7219_v7 = vperm.slane %v3018_v2, %v5742_v33  ;;  %v7221_v4 = vrot.slane %v1392_v8, 4  ;;  %v9574_v56 = vrot.slane %v7049_v38, 4 }
 0x147   : > { %v7233_v52 = vrot.slane %v1398_v11, 5  ;;  %v1404_v2 = vrot.slane %v1402_v45, 4  ;;  %v1743_v11 = vrot.slane %v7210_v59, 4  ;;  %v2127_v45 = vrot.slane %v6888_v25, 4 }
 0x148   : > { %v1708_v0 = vsel %vm1477_vm3, %v1707_v19, %v5381_v28  ;;  %v9573_v19 = vld [vmem:[#allocation29_spill] sm:$0xff]  ;;  %v2582_v16 = vsel %vm1477_vm3, %v9574_v56, %v7168_v62  ;;  %v1376_v28 = vrot.slane %v1375_v6, 4 }
 0x149   : > { %v7207_v30 = vperm.slane %v1708_v0, %v5742_v33  ;;  %v2548_v31 = vsel %vm1477_vm3, %v2547_v57, %v9573_v19  ;;  %v1288_v57 = vrot.slane %v1287_v24, 4  ;;  %v5320_v0 = vld [vmem:[%s5456_s16 + $0x114] sm:$0x1]  ;;  %v9575_v19 = vld [vmem:[#allocation30_spill] sm:$0xff]  ;;  %v5330_v56 = vld [vmem:[%s5456_s16 + $0x13c] sm:$0x1] }
 0x14a   : > { %1444 = vrot.lane.b32.xlu2 %v7184_v42, %s5416_s17  ;;  %1438 = vrot.lane.b32.xlu1 %v7189_v43, %s5416_s17  ;;  %v2100_v43 = vsel %vm1477_vm3, %v2099_v17, %v9575_v19  ;;  %v2552_v24 = vperm.slane %v2548_v31, %v5742_v33  ;;  %v7249_v42 = vsel %vm5544_vm2, %v1362_v12, %v1366_v49  ;;  %v5382_v6 = vld [vmem:[%s5456_s16 + $0xdc] sm:$0xf]  ;;  %v1320_v19 = vshll.u32 %v5320_v0, 16 }
 0x14b   : > { %v7225_v21 = vsel %vm1477_vm3, %v7207_v30, %v1715_v44  ;;  %1454 = vrot.lane.b32.xlu0 %v7199_v53, %s5416_s17  ;;  %v2583_v44 = vrot.slane %v7168_v62, 4  ;;  %v1351_v62 = vor.u32 %v7092_v55, %v7085_v26  ;;  %v7258_v31 = vsel %vm5544_vm2, %v1288_v57, %v6883_v60 }
 0x14c   : > { %v7235_v8 = vpop.permute.xlu2 %1136  ;;  %v909_v50 = vpop.permute.xlu1 %908  ;;  %9576 = vst [vmem:[#allocation29_spill] sm:$0xff] %v7258_v31  ;;  %v7268_v12 = vsel %vm5544_vm2, %v1376_v28, %v7094_v41  ;;  %v1405_v26 = vor.u32 %v1404_v2, %v7233_v52  ;;  %v1408_v55 = vshll.u32 %v5330_v56, 16  ;;  %v7275_v49 = vperm.slane %v2582_v16, %v5947_v9 }
 0x14d   : > { %v7242_v53 = vpop.permute.xlu0 %906  ;;  %v1735_v48 = vrot.slane %v909_v50, 4  ;;  %v1317_v50 = vor.u32 %v7042_v54, %v7001_v10  ;;  %9577 = vst [vmem:[#allocation30_spill] sm:$0xff] %v7268_v12  ;;  %v2584_v60 = vsel %vm1477_vm3, %v7049_v38, %v2583_v44  ;;  %v2104_v54 = vperm.slane %v2100_v43, %v5742_v33  ;;  %v9579_v38 = vld [vmem:[#allocation32_spill] sm:$0xff] }
 0x14e   : > { %9578 = vst [vmem:[#allocation90_spill] sm:$0xff] %v7275_v49  ;;  %v2553_v57 = vrot.slane %v2552_v24, 4  ;;  %v3073_v0 = vrot.slane %v6886_v63, 4  ;;  %v2128_v16 = vsel %vm1477_vm3, %v2127_v45, %v9579_v38  ;;  %v1352_v63 = vrot.slane %v1351_v62, 4 }
 0x14f   : > { %v1736_v17 = vsel %vm1477_vm3, %v1735_v48, %v5382_v6  ;;  %v1685_v6 = vrot.slane %v6934_v18, 4  ;;  %v1318_v43 = vrot.slane %v1317_v50, 4  ;;  %v1322_v18 = vrot.slane %v1320_v19, 5 }
 0x150   : > { %v7263_v25 = vperm.slane %v1736_v17, %v5742_v33  ;;  %v7293_v2 = vperm.slane %v2584_v60, %v5947_v9  ;;  %v9581_v28 = vrot.slane %v6737_v58, 4  ;;  %v1406_v17 = vrot.slane %v1405_v26, 4 }
 0x151   : > { %v1410_v48 = vrot.slane %v1408_v55, 5  ;;  %v2105_v45 = vrot.slane %v2104_v54, 4  ;;  %v9582_v38 = vrot.slane %v6977_v27, 4  ;;  %v3023_v62 = vrot.slane %v6979_v5, 4 }
 0x152   : > { %v7282_v41 = vsel %vm1477_vm3, %v7263_v25, %v1743_v11  ;;  %1450 = vrot.lane.b32.xlu2 %v7249_v42, %s5416_s17  ;;  %1436 = vrot.lane.b32.xlu1 %v7258_v31, %s5416_s17  ;;  %9580 = vst [vmem:[#allocation32_spill] sm:$0xff] %v7293_v2  ;;  %v2556_v44 = vsel %vm1477_vm3, %v2552_v24, %v9581_v28  ;;  %v5383_v2 = vld [vmem:[%s5456_s16 + $0xc0] sm:$0xf]  ;;  %v2603_v28 = vrot.slane %v6963_v13, 4 }
 0x153   : > { %1452 = vrot.lane.b32.xlu0 %v7268_v12, %s5416_s17  ;;  %v2108_v49 = vsel %vm1477_vm3, %v2104_v54, %v9582_v38  ;;  %v2554_v60 = vsel %vm1477_vm3, %v2553_v57, %v6737_v58  ;;  %v3074_v24 = vsel %vm1477_vm3, %v3073_v0, %v5383_v2  ;;  %v1686_v26 = vsel %vm1477_vm3, %v1685_v6, %v6897_v23  ;;  %v9585_v58 = vld [vmem:[#allocation82_spill] sm:$0xff]  ;;  %v9586_v23 = vld [vmem:[#allocation8_spill] sm:$0xff] }
 0x154   : > { %v1143_v56 = vpop.permute.xlu2 %1142  ;;  %v7298_v11 = vpop.permute.xlu1 %914  ;;  %v2132_v55 = vperm.slane %v2128_v16, %v5742_v33  ;;  %v7317_v5 = vsel %vm5544_vm2, %v1352_v63, %v7075_v22  ;;  %v7321_v54 = vsel %vm5544_vm2, %v1318_v43, %v1322_v18  ;;  %v1307_v57 = vor.u32 %v9585_v58, %v7158_v15  ;;  %v9588_v15 = vld [vmem:[#allocation34_spill] sm:$0xff] }
 0x155   : > { %v2211_v50 = vrot.slane %v1143_v56, 4  ;;  %v7304_v19 = vpop.permute.xlu0 %912  ;;  %9583 = vst [vmem:[#allocation91_spill] sm:$0xff] %v7317_v5  ;;  %v2597_v0 = vrot.slane %v7045_v32, 4  ;;  %v7330_v13 = vsel %vm5544_vm2, %v1406_v17, %v1410_v48  ;;  %v1395_v22 = vor.u32 %v7221_v4, %v7165_v35  ;;  %v9591_v4 = vld [vmem:[#allocation71_spill] sm:$0xff]  ;;  %v5384_v17 = vld [vmem:[%s5456_s16 + $0xd0] sm:$0xf] }
 0x156   : > { %9584 = vst [vmem:[#allocation92_spill] sm:$0xff] %v7321_v54  ;;  %v2106_v16 = vsel %vm1477_vm3, %v2105_v45, %v6977_v27  ;;  %v7337_v63 = vperm.slane %v3074_v24, %v5742_v33  ;;  %v3024_v43 = vsel %vm1477_vm3, %v3023_v62, %v9588_v15  ;;  %v7342_v32 = vperm.slane %v1686_v26, %v5947_v9 }
 0x157   : > { %v2212_v6 = vsel %vm1477_vm3, %v2211_v50, %v9586_v23  ;;  %9587 = vst [vmem:[#allocation82_spill] sm:$0xff] %v7330_v13  ;;  %v3031_v18 = vrot.slane %v7219_v7, 4  ;;  %v7346_v48 = vperm.slane %v2108_v49, %v5947_v9  ;;  %v7349_v35 = vperm.slane %v2556_v44, %v5947_v9  ;;  %v5385_v50 = vld [vmem:[%s5456_s16 + $0xa8] sm:$0xf] }
 0x158   : > { %v9592_v27 = vrot.slane %v9591_v4, 4  ;;  %v7359_v56 = vperm.slane %v2554_v60, %v5947_v9  ;;  %v2604_v49 = vsel %vm1477_vm3, %v2603_v28, %v5384_v17  ;;  %v2216_v45 = vperm.slane %v2212_v6, %v5742_v33 }
 0x159   : > { %9589 = vst [vmem:[#allocation8_spill] sm:$0xff] %v7346_v48  ;;  %v1308_v44 = vrot.slane %v1307_v57, 4  ;;  %v7367_v38 = vperm.slane %v2106_v16, %v5947_v9  ;;  %v3028_v62 = vperm.slane %v3024_v43, %v5742_v33  ;;  %v2598_v24 = vsel %vm1477_vm3, %v2597_v0, %v5385_v50  ;;  %v9597_v50 = vld [vmem:[#allocation20_spill] sm:$0xff]  ;;  %v9620_v48 = vld [vmem:[#allocation10_spill] sm:$0xff] }
 0x15a   : > { %9590 = vst [vmem:[#allocation34_spill] sm:$0xff] %v7349_v35  ;;  %v2136_v2 = vsel %vm1477_vm3, %v2132_v55, %v9592_v27  ;;  %1448 = vrot.lane.b32.xlu2 %v7317_v5, %s5416_s17  ;;  %1442 = vrot.lane.b32.xlu1 %v7321_v54, %s5416_s17  ;;  %v1396_v58 = vrot.slane %v1395_v22, 4  ;;  %v2133_v23 = vrot.slane %v2132_v55, 4  ;;  %v3561_v57 = vshrl.u32 %v7342_v32, 16  ;;  %v9596_v27 = vld [vmem:[#allocation31_spill] sm:$0xff]  ;;  %v9600_v35 = vld [vmem:[#allocation17_spill] sm:$0xff] }
 0x15b   : > { %9593 = vst [vmem:[#allocation71_spill] sm:$0xff] %v7359_v56  ;;  %1458 = vrot.lane.b32.xlu0 %v7330_v13, %s5416_s17  ;;  %v7376_v6 = vperm.slane %v2136_v2, %v5947_v9  ;;  %v2608_v16 = vperm.slane %v2604_v49, %v5742_v33  ;;  %v2183_v43 = vrot.slane %v7030_v39, 4  ;;  %v3045_v17 = vrot.slane %v9596_v27, 4 }
 0x15c   : > { %9594 = vst [vmem:[#allocation93_spill] sm:$0xff] %v7367_v38  ;;  %v1149_v26 = vpop.permute.xlu2 %1148  ;;  %v7372_v60 = vpop.permute.xlu1 %1128  ;;  %v7384_v22 = vperm.slane %v9597_v50, %v5947_v9  ;;  %v2602_v55 = vperm.slane %v2598_v24, %v5742_v33  ;;  %v2217_v2 = vrot.slane %v2216_v45, 4  ;;  %v7390_v28 = vsel %vm5544_vm2, %v1308_v44, %v7001_v10 }
 0x15d   : > { %9595 = vst [vmem:[#allocation94_spill] sm:$0xff] %v7376_v6  ;;  %v1127_v15 = vpop.permute.xlu0 %1126  ;;  %v3029_v49 = vrot.slane %v3028_v62, 4  ;;  %v1757_v39 = vrot.slane %v7096_v34, 4  ;;  %v2134_v24 = vsel %vm1477_vm3, %v2133_v23, %v9591_v4  ;;  %v1791_v50 = vrot.slane %v1149_v26, 4  ;;  %v5386_v6 = vld [vmem:[%s5456_s16 + $0xe0] sm:$0xf] }
 0x15e   : > { %v2205_v0 = vrot.slane %v1127_v15, 4  ;;  %9598 = vst [vmem:[#allocation31_spill] sm:$0xff] %v7384_v22  ;;  %v7398_v15 = vsel %vm5544_vm2, %v1396_v58, %v7233_v52  ;;  %v9602_v10 = vshrl.u32 %v7027_v3, 16  ;;  %v2609_v22 = vrot.slane %v2608_v16, 4  ;;  %v9603_v52 = vld [vmem:[#allocation72_spill] sm:$0xff] }
 0x15f   : > { %9599 = vst [vmem:[#allocation20_spill] sm:$0xff] %v7390_v28  ;;  %v3032_v34 = vsel %vm1477_vm3, %v3028_v62, %v3031_v18  ;;  %v2611_v4 = vrot.slane %v2602_v55, 4  ;;  %v2625_v26 = vrot.slane %v7098_v51, 4  ;;  %v7421_v62 = vperm.slane %v2134_v24, %v5947_v9 }
 0x160   : > { %v2206_v27 = vsel %vm1477_vm3, %v2205_v0, %v9600_v35  ;;  %9601 = vst [vmem:[#allocation17_spill] sm:$0xff] %v7398_v15  ;;  %v3562_v44 = vpack.i.b16 %v3561_v57, %v9602_v10  ;;  %v2184_v35 = vsel %vm1477_vm3, %v2183_v43, %v5386_v6  ;;  %v5387_v0 = vld [vmem:[%s5456_s16 + $0xac] sm:$0xf]  ;;  %v3030_v23 = vsel %vm1477_vm3, %v3029_v49, %v7219_v7  ;;  %v9605_v6 = vld [vmem:[#allocation4_spill] sm:$0xff] }
 0x161   : > { %v2210_v56 = vperm.slane %v2206_v27, %v5742_v33  ;;  %v3046_v40 = vsel %vm1477_vm3, %v3045_v17, %v5387_v0  ;;  %9604 = vst [vmem:[#allocation72_spill] sm:$0xff] %v7421_v62  ;;  %v1758_v57 = vsel %vm1477_vm3, %v1757_v39, %v9605_v6  ;;  %v2177_v43 = vrot.slane %v7106_v36, 4 }
 0x162   : > { %1440 = vrot.lane.b32.xlu1 %v7390_v28, %s5416_s17  ;;  %4061 = vrot.lane.b32.xlu2 %v9603_v52, %s5419_s18  ;;  %v4052_v0 = vunpack.c.l.b16 %v3562_v44  ;;  %v7436_v7 = vperm.slane %v3032_v34, %v5947_v9  ;;  %v7439_v49 = vperm.slane %v2184_v35, %v5742_v33  ;;  %v7442_v36 = vperm.slane %v3046_v40, %v5742_v33  ;;  %v9609_v35 = vld [vmem:[#allocation11_spill] sm:$0xff]  ;;  %v9610_v40 = vld [vmem:[#allocation58_spill] sm:$0xff] }
 0x163   : > { %v7416_v58 = vsel %vm1477_vm3, %v2217_v2, %v2210_v56  ;;  %v2219_v18 = vrot.slane %v2210_v56, 4  ;;  %1456 = vrot.lane.b32.xlu0 %v7398_v15, %s5416_s17  ;;  %v9606_v2 = vld [vmem:[#allocation13_spill] sm:$0xff]  ;;  %v7445_v52 = vperm.slane %v3030_v23, %v5947_v9  ;;  %v1762_v34 = vperm.slane %v1758_v57, %v5742_v33 }
 0x164   : > { %v1155_v51 = vpop.permute.xlu2 %1154  ;;  %v7428_v17 = vpop.permute.xlu1 %1134  ;;  %v1792_v56 = vsel %vm1477_vm3, %v1791_v50, %v9606_v2  ;;  %9607 = vst [vmem:[#allocation4_spill] sm:$0xff] %v7436_v7  ;;  %v2612_v50 = vsel %vm1477_vm3, %v2608_v16, %v2611_v4  ;;  %v9617_v7 = vld [vmem:[#allocation24_spill] sm:$0xff] }
 0x165   : > { %v7433_v27 = vsel %vm1477_vm3, %v2216_v45, %v2219_v18  ;;  %v3135_v24 = vrot.slane %v1155_v51, 4  ;;  %v1133_v10 = vpop.permute.xlu0 %1132  ;;  %9608 = vst [vmem:[#allocation13_spill] sm:$0xff] %v7445_v52  ;;  %v2610_v45 = vsel %vm1477_vm3, %v2609_v22, %v2602_v55  ;;  %v5388_v18 = vld [vmem:[%s5456_s16 + $0xbc] sm:$0xf]  ;;  %v1796_v6 = vperm.slane %v1792_v56, %v5742_v33  ;;  %v9611_v55 = vld [vmem:[#allocation83_spill] sm:$0xff] }
 0x166   : > { %v1785_v39 = vrot.slane %v1133_v10, 4  ;;  %v2626_v44 = vsel %vm1477_vm3, %v2625_v26, %v5388_v18  ;;  %v5389_v10 = vld [vmem:[%s5456_s16 + $0xb8] sm:$0xf]  ;;  %v1741_v22 = vrot.slane %v7263_v25, 4  ;;  %v9612_v4 = vunpack.c.l.b16 %v9611_v55 }
 0x167   : > { %v3136_v51 = vsel %vm1477_vm3, %v3135_v24, %v9609_v35  ;;  %v2178_v23 = vsel %vm1477_vm3, %v2177_v43, %v5389_v10  ;;  %v7465_v56 = vperm.slane %v2610_v45, %v5947_v9  ;;  %v3101_v18 = vrot.slane %v7161_v37, 4  ;;  %v9616_v24 = vld [vmem:[#allocation14_spill] sm:$0xff] }
 0x168   : > { %v1786_v2 = vsel %vm1477_vm3, %v1785_v39, %v9610_v40  ;;  %v4058_v26 = vpack.c.b16 %v4052_v0, %v9612_v4  ;;  %v7470_v39 = vperm.slane %v2612_v50, %v5947_v9  ;;  %v1713_v43 = vrot.slane %v7207_v30, 4  ;;  %v9615_v4 = vld [vmem:[#allocation23_spill] sm:$0xff] }
 0x169   : > { %v1790_v16 = vperm.slane %v1786_v2, %v5742_v33  ;;  %9613 = vst [vmem:[#allocation11_spill] sm:$0xff] %v7465_v56  ;;  %v3140_v25 = vperm.slane %v3136_v51, %v5742_v33  ;;  %v1771_v0 = vrot.slane %v1762_v34, 4  ;;  %v7476_v40 = vperm.slane %v2178_v23, %v5742_v33 }
 0x16a   : > { %9614 = vst [vmem:[#allocation58_spill] sm:$0xff] %v7470_v39  ;;  %v7479_v45 = vperm.slane %v2626_v44, %v5742_v33  ;;  %v1797_v2 = vrot.slane %v1796_v6, 4  ;;  %v1742_v50 = vsel %vm1477_vm3, %v1741_v22, %v7210_v59  ;;  %v3102_v23 = vsel %vm1477_vm3, %v3101_v18, %v9616_v24  ;;  %v9618_v22 = vld [vmem:[#allocation7_spill] sm:$0xff] }
 0x16b   : > { %v1799_v35 = vrot.slane %v1790_v16, 4  ;;  %4063 = vrot.lane.b32.xlu0 %v4058_v26, %s5419_s18  ;;  %v1613_v26 = vrot.slane %v9615_v4, 4  ;;  %v2653_v44 = vrot.slane %v7372_v60, 4  ;;  %v4077_v52 = vpack.c.b16 %v7140_v47, %v9617_v7  ;;  %v9628_v47 = vld [vmem:[#allocation62_spill] sm:$0xff] }
 0x16c   : > { %v7481_v10 = vpop.permute.xlu2 %1192  ;;  %v1141_v37 = vpop.permute.xlu1 %1140  ;;  %v1714_v39 = vsel %vm1477_vm3, %v1713_v43, %v7174_v61  ;;  %v3141_v59 = vrot.slane %v3140_v25, 4  ;;  %v1798_v56 = vsel %vm1477_vm3, %v1797_v2, %v1790_v16  ;;  %v7504_v18 = vperm.slane %v1742_v50, %v5947_v9 }
 0x16d   : > { %v7486_v30 = vsel %vm1477_vm3, %v1796_v6, %v1799_v35  ;;  %v1139_v51 = vpop.permute.xlu0 %1138  ;;  %v1763_v55 = vrot.slane %v1141_v37, 4  ;;  %v9619_v35 = vld [vmem:[#allocation64_spill] sm:$0xff]  ;;  %v3106_v61 = vperm.slane %v3102_v23, %v5742_v33  ;;  %v7510_v43 = vsel %vm1477_vm3, 0, %v1613_v26 }
 0x16e   : > { %v3129_v57 = vrot.slane %v1139_v51, 4  ;;  %v1641_v37 = vrot.slane %v9619_v35, 4  ;;  %9621 = vst [vmem:[#allocation83_spill] sm:$0xff] %v7510_v43  ;;  %v9622_v51 = vld [vmem:[#allocation55_spill] sm:$0xff]  ;;  %v2155_v50 = vrot.slane %v7163_v14, 4 }
 0x16f   : > { %v1764_v6 = vsel %vm1477_vm3, %v1763_v55, %v9618_v22  ;;  %v2654_v16 = vsel %vm1477_vm3, %v2653_v44, %v9622_v51  ;;  %v7522_v55 = vperm.slane %v1798_v56, %v5947_v9  ;;  %v2681_v44 = vrot.slane %v7235_v8, 4 }
 0x170   : > { %v3130_v24 = vsel %vm1477_vm3, %v3129_v57, %v9620_v48  ;;  %v1768_v60 = vperm.slane %v1764_v6, %v5742_v33  ;;  %v7518_v57 = vperm.slane %v1714_v39, %v5947_v9  ;;  %v3657_v6 = vshrl.u32 %v7504_v18, 16 }
 0x171   : > { %v3134_v7 = vperm.slane %v3130_v24, %v5742_v33  ;;  %9623 = vst [vmem:[#allocation23_spill] sm:$0xff] %v7522_v55  ;;  %v7534_v14 = vsel %vm1477_vm3, 0, %v1641_v37  ;;  %v2658_v56 = vperm.slane %v2654_v16, %v5742_v33  ;;  %v3115_v8 = vrot.slane %v3106_v61, 4 }
 0x172   : > { %v1769_v2 = vrot.slane %v1768_v60, 4  ;;  %v7515_v48 = vsel %vm1477_vm3, %v1768_v60, %v1771_v0  ;;  %9624 = vst [vmem:[#allocation14_spill] sm:$0xff] %v7534_v14  ;;  %v3656_v51 = vshrl.u32 %v7518_v57, 16 }
 0x173   : > { %v7525_v23 = vsel %vm1477_vm3, %v3141_v59, %v3134_v7  ;;  %v3143_v26 = vrot.slane %v3134_v7, 4  ;;  %4081 = vrot.lane.b32.xlu0 %v4077_v52, %s5420_s19  ;;  %v2667_v15 = vrot.slane %v2658_v56, 4 }
 0x174   : > { %v1770_v0 = vsel %vm1477_vm3, %v1769_v2, %v1762_v34  ;;  %v7530_v22 = vpop.permute.xlu2 %1198  ;;  %v1147_v39 = vpop.permute.xlu1 %1146  ;;  %v2233_v34 = vrot.slane %v7428_v17, 4  ;;  %v9626_v2 = vld [vmem:[#allocation60_spill] sm:$0xff] }
 0x175   : > { %v7538_v59 = vsel %vm1477_vm3, %v3140_v25, %v3143_v26  ;;  %v1145_v24 = vpop.permute.xlu0 %1144  ;;  %v3107_v60 = vrot.slane %v1147_v39, 4  ;;  %v7541_v52 = vperm.slane %v1770_v0, %v5947_v9  ;;  %v3753_v25 = vshrl.u32 %v7522_v55, 16  ;;  %v9627_v39 = vld [vmem:[#allocation57_spill] sm:$0xff]  ;;  %v9629_v55 = vld [vmem:[#allocation18_spill] sm:$0xff] }
 0x176   : > { %v2659_v7 = vrot.slane %v1145_v24, 4  ;;  %v1697_v26 = vrot.slane %v7342_v32, 4  ;;  %v2682_v0 = vsel %vm1477_vm3, %v2681_v44, %v9627_v39  ;;  %v3658_v24 = vpack.i.b16 %v3657_v6, %v3656_v51 }
 0x177   : > { %9625 = vst [vmem:[#allocation24_spill] sm:$0xff] %v7541_v52  ;;  %v3108_v37 = vsel %vm1477_vm3, %v3107_v60, %v9626_v2  ;;  %v3752_v16 = vshrl.u32 %v7541_v52, 16  ;;  %v1669_v60 = vrot.slane %v7027_v3, 4  ;;  %v5390_v2 = vld [vmem:[%s5456_s16 + $0xcc] sm:$0xf]  ;;  %v2234_v12 = vsel %vm1477_vm3, %v2233_v34, %v9629_v55 }
 0x178   : > { %v2660_v62 = vsel %vm1477_vm3, %v2659_v7, %v9628_v47  ;;  %v3112_v17 = vperm.slane %v3108_v37, %v5742_v33  ;;  %v2156_v54 = vsel %vm1477_vm3, %v2155_v50, %v5390_v2  ;;  %v2686_v51 = vperm.slane %v2682_v0, %v5742_v33  ;;  %v9632_v0 = vld [vmem:[#allocation40_spill] sm:$0xff]  ;;  %v9633_v2 = vld [vmem:[#allocation43_spill] sm:$0xff] }
 0x179   : > { %v2664_v28 = vperm.slane %v2660_v62, %v5742_v33  ;;  %v3754_v13 = vpack.i.b16 %v3753_v25, %v3752_v16  ;;  %v7568_v62 = vsel %vm1477_vm3, 0, %v1697_v26  ;;  %v3051_v37 = vrot.slane %v7242_v53, 4  ;;  %v5392_v52 = vld [vmem:[%s5456_s16 + $0xe8] sm:$0xf] }
 0x17a   : > { %v3113_v31 = vrot.slane %v3112_v17, 4  ;;  %v7562_v44 = vsel %vm1477_vm3, %v3112_v17, %v3115_v8  ;;  %9630 = vst [vmem:[#allocation7_spill] sm:$0xff] %v7568_v62  ;;  %v4053_v8 = vunpack.c.l.b16 %v3658_v24  ;;  %v2238_v16 = vperm.slane %v2234_v12, %v5742_v33 }
 0x17b   : > { %v2665_v47 = vrot.slane %v2664_v28, 4  ;;  %v7565_v7 = vsel %vm1477_vm3, %v2664_v28, %v2667_v15  ;;  %v4054_v6 = vunpack.c.l.b16 %v3754_v13  ;;  %v7582_v25 = vsel %vm1477_vm3, 0, %v1669_v60  ;;  %v5391_v60 = vld [vmem:[%s5456_s16 + $0xd4] sm:$0xf] }
 0x17c   : > { %v7573_v50 = vsel %vm1477_vm3, %v3113_v31, %v3106_v61  ;;  %v7575_v55 = vpop.permute.xlu2 %1204  ;;  %v1153_v34 = vpop.permute.xlu1 %1152  ;;  %9631 = vst [vmem:[#allocation64_spill] sm:$0xff] %v7582_v25  ;;  %v3079_v53 = vrot.slane %v7298_v11, 4  ;;  %v3565_v61 = vpack.i.b16 %v7568_v62, %v7582_v25  ;;  %v2160_v39 = vperm.slane %v2156_v54, %v5742_v33 }
 0x17d   : > { %v7579_v28 = vsel %vm1477_vm3, %v2665_v47, %v2658_v56  ;;  %v1151_v13 = vpop.permute.xlu0 %1150  ;;  %v2687_v15 = vrot.slane %v1153_v34, 4  ;;  %v4059_v31 = vpack.c.b16 %v4054_v6, %v4053_v8  ;;  %v2631_v12 = vrot.slane %v7304_v19, 4 }
 0x17e   : > { %v2239_v26 = vrot.slane %v1151_v13, 4  ;;  %v3469_v17 = vpack.i.b16 %v7534_v14, %v7510_v43  ;;  %v2695_v24 = vrot.slane %v2686_v51, 4  ;;  %v3052_v11 = vsel %vm1477_vm3, %v3051_v37, %v5391_v60  ;;  %v9635_v13 = vld [vmem:[#allocation41_spill] sm:$0xff] }
 0x17f   : > { %v2688_v56 = vsel %vm1477_vm3, %v2687_v15, %v9632_v0  ;;  %4065 = vrot.lane.b32.xlu1 %v4059_v31, %s5419_s18  ;;  %v9634_v19 = vrot.slane %v7439_v49, 4  ;;  %v2247_v34 = vrot.slane %v2238_v16, 4  ;;  %v9636_v15 = vld [vmem:[#allocation5_spill] sm:$0xff]  ;;  %v3080_v37 = vsel %vm1477_vm3, %v3079_v53, %v5392_v52 }
 0x180   : > { %v2240_v47 = vsel %vm1477_vm3, %v2239_v26, %v9633_v2  ;;  %v2692_v6 = vperm.slane %v2688_v56, %v5742_v33  ;;  %v3367_v0 = vpack.i.b16 %v9636_v15, %v9635_v13  ;;  %v4072_v56 = vunpack.c.l.b16 %v3565_v61  ;;  %v5393_v2 = vld [vmem:[%s5456_s16 + $0xe4] sm:$0xf] }
 0x181   : > { %v2190_v54 = vsel %vm1477_vm3, %v9634_v19, %v7476_v40  ;;  %v2244_v8 = vperm.slane %v2240_v47, %v5742_v33  ;;  %v3056_v31 = vperm.slane %v3052_v11, %v5742_v33  ;;  %v2632_v5 = vsel %vm1477_vm3, %v2631_v12, %v5393_v2 }
 0x182   : > { %v2693_v60 = vrot.slane %v2692_v6, 4  ;;  %v7609_v26 = vsel %vm1477_vm3, %v2692_v6, %v2695_v24  ;;  %v9637_v47 = vrot.slane %v7476_v40, 4  ;;  %v2161_v52 = vrot.slane %v2160_v39, 4 }
 0x183   : > { %v2245_v19 = vrot.slane %v2244_v8, 4  ;;  %v7615_v38 = vsel %vm1477_vm3, %v2244_v8, %v2247_v34  ;;  %v4071_v11 = vunpack.c.l.b16 %v3469_v17  ;;  %v3084_v6 = vperm.slane %v3080_v37, %v5742_v33 }
 0x184   : > { %v2192_v13 = vsel %vm1477_vm3, %v7439_v49, %v9637_v47  ;;  %v7622_v53 = vsel %vm1477_vm3, %v2693_v60, %v2686_v51  ;;  %v1211_v24 = vpop.permute.xlu2 %1210  ;;  %v7624_v61 = vpop.permute.xlu1 %1190  ;;  %v3463_v40 = vpack.i.b16 %v9619_v35, %v9615_v4  ;;  %v9638_v49 = vrot.slane %v7202_v46, 4  ;;  %v9639_v35 = vld [vmem:[#allocation79_spill] sm:$0xff] }
 0x185   : > { %v7628_v12 = vsel %vm1477_vm3, %v2245_v19, %v2238_v16  ;;  %v3163_v34 = vrot.slane %v1211_v24, 4  ;;  %v7630_v8 = vpop.permute.xlu0 %1188  ;;  %v2636_v15 = vperm.slane %v2632_v5, %v5742_v33  ;;  %v4078_v60 = vpack.c.b16 %v4072_v56, %v4071_v11 }
 0x186   : > { %v2164_v51 = vsel %vm1477_vm3, %v2160_v39, %v9638_v49  ;;  %v7638_v2 = vunpack.c.l.b16 %v3367_v0  ;;  %v7641_v17 = vperm.slane %v2190_v54, %v5947_v9  ;;  %v2639_v16 = vrot.slane %v7479_v45, 4 }
 0x187   : > { %v3057_v37 = vrot.slane %v3056_v31, 4  ;;  %v7646_v47 = vperm.slane %v2192_v13, %v5947_v9  ;;  %v2162_v4 = vsel %vm1477_vm3, %v2161_v52, %v7202_v46  ;;  %v3164_v5 = vsel %vm1477_vm3, %v3163_v34, %v9639_v35  ;;  %4083 = vrot.lane.b32.xlu1 %v4078_v60, %s5420_s19 }
 0x188   : > { %v7655_v54 = vperm.slane %v2164_v51, %v5947_v9  ;;  %v9640_v0 = vrot.slane %v7442_v36, 4  ;;  %v3085_v24 = vrot.slane %v3084_v6, 4  ;;  %v2709_v13 = vrot.slane %v7481_v10, 4 }
 0x189   : > { %v7663_v46 = vperm.slane %v7225_v21, %v5947_v9  ;;  %v2637_v52 = vrot.slane %v2636_v15, 4  ;;  %v7667_v34 = vunpack.c.l.b16 %v3463_v40  ;;  %v7670_v49 = vperm.slane %v2162_v4, %v5947_v9 }
 0x18a   : > { %v3060_v56 = vsel %vm1477_vm3, %v3056_v31, %v9640_v0  ;;  %v3058_v31 = vsel %vm1477_vm3, %v3057_v37, %v7442_v36  ;;  %v2289_v51 = vrot.slane %v7530_v22, 4  ;;  %v3168_v10 = vperm.slane %v3164_v5, %v5742_v33  ;;  %v5394_v37 = vld [vmem:[%s5456_s16 + $0xf8] sm:$0xf] }
 0x18b   : > { %9641 = vst [vmem:[#allocation10_spill] sm:$0xff] %v7663_v46  ;;  %v7677_v60 = vperm.slane %v3060_v56, %v5947_v9  ;;  %v7681_v21 = vperm.slane %v7282_v41, %v5947_v9  ;;  %v2640_v40 = vsel %vm1477_vm3, %v2636_v15, %v2639_v16  ;;  %v9644_v35 = vrot.slane %v7337_v63, 4 }
 0x18c   : > { %v1217_v0 = vpop.permute.xlu2 %1216  ;;  %v7687_v36 = vpop.permute.xlu1 %1196  ;;  %v3086_v22 = vsel %vm1477_vm3, %v3085_v24, %v7337_v63  ;;  %v2710_v5 = vsel %vm1477_vm3, %v2709_v13, %v5394_v37  ;;  %v1819_v41 = vrot.slane %v7575_v55, 4  ;;  %v7695_v15 = vperm.slane %v3058_v31, %v5947_v9  ;;  %v5395_v13 = vld [vmem:[%s5456_s16 + $0x108] sm:$0xf] }
 0x18d   : > { %9642 = vst [vmem:[#allocation55_spill] sm:$0xff] %v7677_v60  ;;  %v3088_v4 = vsel %vm1477_vm3, %v3084_v6, %v9644_v35  ;;  %v2743_v56 = vrot.slane %v1217_v0, 4  ;;  %v1195_v39 = vpop.permute.xlu0 %1194  ;;  %v2638_v6 = vsel %vm1477_vm3, %v2637_v52, %v7479_v45  ;;  %v7701_v63 = vperm.slane %v2640_v40, %v5947_v9 }
 0x18e   : > { %9643 = vst [vmem:[#allocation60_spill] sm:$0xff] %v7681_v21  ;;  %v3157_v35 = vrot.slane %v1195_v39, 4  ;;  %v7704_v24 = vperm.slane %v3088_v4, %v5947_v9  ;;  %v2290_v55 = vsel %vm1477_vm3, %v2289_v51, %v5395_v13  ;;  %v3169_v0 = vrot.slane %v3168_v10, 4  ;;  %v5396_v39 = vld [vmem:[%s5456_s16 + $0xfc] sm:$0xf] }
 0x18f   : > { %9645 = vst [vmem:[#allocation57_spill] sm:$0xff] %v7695_v15  ;;  %v7709_v37 = vperm.slane %v3086_v22, %v5947_v9  ;;  %v7712_v31 = vperm.slane %v2710_v5, %v5742_v33  ;;  %v2744_v45 = vsel %vm1477_vm3, %v2743_v56, %v6984_v20  ;;  %v7719_v40 = vperm.slane %v2638_v6, %v5947_v9  ;;  %v5397_v4 = vld [vmem:[%s5456_s16 + $0x118] sm:$0xf]  ;;  %v5399_v13 = vld [vmem:[%s5456_s16 + $0x10c] sm:$0xf] }
 0x190   : > { %9646 = vst [vmem:[#allocation62_spill] sm:$0xff] %v7701_v63  ;;  %v3158_v52 = vsel %vm1477_vm3, %v3157_v35, %v5396_v39  ;;  %v1820_v16 = vsel %vm1477_vm3, %v1819_v41, %v5397_v4  ;;  %v1813_v51 = vrot.slane %v7630_v8, 4  ;;  %v7727_v5 = vperm.slane %v7416_v58, %v5947_v9 }
 0x191   : > { %9647 = vst [vmem:[#allocation18_spill] sm:$0xff] %v7704_v24  ;;  %v3162_v22 = vperm.slane %v3158_v52, %v5742_v33  ;;  %v7731_v20 = vperm.slane %v7433_v27, %v5947_v9  ;;  %v7735_v56 = vperm.slane %v7486_v30, %v5947_v9  ;;  %v7738_v6 = vperm.slane %v2290_v55, %v5742_v33  ;;  %v9651_v55 = vld [vmem:[#allocation66_spill] sm:$0xff] }
 0x192   : > { %9648 = vst [vmem:[#allocation40_spill] sm:$0xff] %v7709_v37  ;;  %v2748_v8 = vperm.slane %v2744_v45, %v5742_v33  ;;  %v3559_v58 = vpack.i.b16 %v7342_v32, %v7027_v3  ;;  %v7748_v27 = vperm.slane %v1820_v16, %v5742_v33  ;;  %v7754_v45 = vperm.slane %v7515_v48, %v5947_v9 }
 0x193   : > { %9649 = vst [vmem:[#allocation43_spill] sm:$0xff] %v7719_v40  ;;  %v7742_v41 = vsel %vm1477_vm3, %v3169_v0, %v3162_v22  ;;  %v3171_v35 = vrot.slane %v3162_v22, 4  ;;  %v5398_v0 = vld [vmem:[%s5456_s16 + $0xf0] sm:$0xf]  ;;  %v2261_v3 = vrot.slane %v7624_v61, 4  ;;  %v7764_v30 = vperm.slane %v7525_v23, %v5947_v9 }
 0x194   : > { %9650 = vst [vmem:[#allocation41_spill] sm:$0xff] %v7735_v56  ;;  %v1431_v39 = vpop.permute.xlu2 %1430  ;;  %v1203_v52 = vpop.permute.xlu1 %1202  ;;  %v1814_v22 = vsel %vm1477_vm3, %v1813_v51, %v5398_v0  ;;  %v7768_v19 = vperm.slane %v7538_v59, %v5947_v9  ;;  %v7773_v51 = vperm.slane %v7562_v44, %v5947_v9  ;;  %v2749_v61 = vrot.slane %v2748_v8, 4 }
 0x195   : > { %9652 = vst [vmem:[#allocation5_spill] sm:$0xff] %v7754_v45  ;;  %v7760_v32 = vsel %vm1477_vm3, %v3168_v10, %v3171_v35  ;;  %v1201_v16 = vpop.permute.xlu0 %1200  ;;  %v2317_v10 = vrot.slane %v1431_v39, 4  ;;  %v7775_v35 = vunpack.c.l.b16 %v3559_v58  ;;  %v1825_v0 = vrot.slane %v7748_v27, 4  ;;  %v5400_v58 = vld [vmem:[%s5456_s16 + $0xf4] sm:$0xf] }
 0x196   : > { %9653 = vst [vmem:[#allocation79_spill] sm:$0xff] %v7764_v30  ;;  %v2737_v11 = vrot.slane %v1201_v16, 4  ;;  %v1818_v23 = vperm.slane %v1814_v22, %v5742_v33  ;;  %v1841_v4 = vrot.slane %v7687_v36, 4  ;;  %v7784_v16 = vperm.slane %v7565_v7, %v5947_v9 }
 0x197   : > { %9654 = vst [vmem:[#allocation95_spill] sm:$0xff] %v7768_v19  ;;  %v7788_v44 = vperm.slane %v7573_v50, %v5947_v9  ;;  %v2262_v39 = vsel %vm1477_vm3, %v2261_v3, %v5400_v58  ;;  %v7795_v36 = vperm.slane %v7579_v28, %v5947_v9  ;;  %v7803_v7 = vperm.slane %v7609_v26, %v5947_v9  ;;  %v9660_v50 = vld [vmem:[#allocation84_spill] sm:$0xff] }
 0x198   : > { %9655 = vst [vmem:[#allocation96_spill] sm:$0xff] %v7773_v51  ;;  %v2738_v59 = vsel %vm1477_vm3, %v2737_v11, %v5399_v13  ;;  %v7799_v11 = vperm.slane %v7615_v38, %v5947_v9  ;;  %v3185_v13 = vrot.slane %v1203_v52, 4  ;;  %v2318_v22 = vsel %vm1477_vm3, %v2317_v10, %v9660_v50  ;;  %v5401_v52 = vld [vmem:[%s5456_s16 + $0x104] sm:$0xf]  ;;  %v5402_v19 = vld [vmem:[%s5456_s16 + $0x110] sm:$0xf] }
 0x199   : > { %9656 = vst [vmem:[#allocation97_spill] sm:$0xff] %v7784_v16  ;;  %v2742_v48 = vperm.slane %v2738_v59, %v5742_v33  ;;  %v7814_v38 = vperm.slane %v7622_v53, %v5947_v9  ;;  %v1826_v58 = vsel %vm1477_vm3, %v1825_v0, %v1818_v23  ;;  %v7818_v26 = vperm.slane %v2262_v39, %v5742_v33 }
 0x19a   : > { %9657 = vst [vmem:[#allocation98_spill] sm:$0xff] %v7788_v44  ;;  %v1842_v10 = vsel %vm1477_vm3, %v1841_v4, %v5401_v52  ;;  %v2322_v53 = vperm.slane %v2318_v22, %v5742_v33  ;;  %v3186_v0 = vsel %vm1477_vm3, %v3185_v13, %v5402_v19  ;;  %v2061_v51 = vrot.slane %v9651_v55, 4 }
 0x19b   : > { %9658 = vst [vmem:[#allocation99_spill] sm:$0xff] %v7795_v36  ;;  %v7808_v3 = vsel %vm1477_vm3, %v2749_v61, %v2742_v48  ;;  %v2751_v59 = vrot.slane %v2742_v48, 4  ;;  %v7828_v24 = vperm.slane %v1842_v10, %v5742_v33  ;;  %v7837_v22 = vperm.slane %v7628_v12, %v5947_v9  ;;  %v5405_v36 = vld [vmem:[%s5456_s16 + $0x130] sm:$0xf] }
 0x19c   : > { %9659 = vst [vmem:[#allocation100_spill] sm:$0xff] %v7803_v7  ;;  %v1447_v61 = vpop.permute.xlu2 %1446  ;;  %v1209_v50 = vpop.permute.xlu1 %1208  ;;  %v1827_v7 = vrot.slane %v1818_v23, 4  ;;  %v5403_v23 = vld [vmem:[%s5456_s16 + $0x120] sm:$0xf]  ;;  %v2201_v13 = vrot.slane %v7641_v17, 4  ;;  %v2331_v12 = vrot.slane %v2322_v53, 4 }
 0x19d   : > { %9661 = vst [vmem:[#allocation84_spill] sm:$0xff] %v7814_v38  ;;  %v2752_v48 = vsel %vm1477_vm3, %v2748_v8, %v2751_v59  ;;  %v2323_v28 = vrot.slane %v1447_v61, 4  ;;  %v1207_v16 = vpop.permute.xlu0 %1206  ;;  %v2715_v63 = vrot.slane %v1209_v50, 4  ;;  %v9662_v59 = vld [vmem:[#allocation80_spill] sm:$0xff]  ;;  %v5404_v61 = vld [vmem:[%s5456_s16 + $0x11c] sm:$0xf] }
 0x19e   : > { %v2267_v39 = vrot.slane %v1207_v16, 4  ;;  %v3489_v52 = vshrl.u32 %v9662_v59, 16  ;;  %v7845_v10 = vsel %vm1477_vm3, %v7748_v27, %v1827_v7  ;;  %v9665_v7 = vshrl.u32 %v9651_v55, 16  ;;  %v9671_v38 = vld [vmem:[#allocation27_spill] sm:$0xff] }
 0x19f   : > { %v2324_v4 = vsel %vm1477_vm3, %v2323_v28, %v7115_v1  ;;  %v2716_v8 = vsel %vm1477_vm3, %v2715_v63, %v5403_v23  ;;  %v7848_v1 = vperm.slane %v1826_v58, %v5947_v9  ;;  %v2275_v63 = vrot.slane %v7818_v26, 4 }
 0x1a0   : > { %v2268_v19 = vsel %vm1477_vm3, %v2267_v39, %v5404_v61  ;;  %v2720_v16 = vperm.slane %v2716_v8, %v5742_v33  ;;  %v7852_v28 = vperm.slane %v3186_v0, %v5742_v33  ;;  %v2328_v50 = vperm.slane %v2324_v4, %v5742_v33 }
 0x1a1   : > { %9663 = vst [vmem:[#allocation101_spill] sm:$0xff] %v7848_v1  ;;  %v9664_v23 = vrot.slane %v7712_v31, 4  ;;  %v1855_v61 = vrot.slane %v7828_v24, 4  ;;  %v2272_v27 = vperm.slane %v2268_v19, %v5742_v33  ;;  %v7862_v58 = vpack.i.b16 %v3489_v52, %v9665_v7 }
 0x1a2   : > { %v2721_v39 = vrot.slane %v2720_v16, 4  ;;  %v7865_v60 = vsel %vm1477_vm3, 0, %v2061_v51  ;;  %v7869_v0 = vperm.slane %v7742_v41, %v5947_v9  ;;  %v7873_v4 = vperm.slane %v7760_v32, %v5947_v9 }
 0x1a3   : > { %v2724_v8 = vsel %vm1477_vm3, %v2720_v16, %v9664_v23  ;;  %9666 = vst [vmem:[#allocation102_spill] sm:$0xff] %v7862_v58  ;;  %v7878_v52 = vsel %vm1477_vm3, 0, %v2201_v13  ;;  %v1725_v30 = vrot.slane %v7518_v57, 4  ;;  %v2329_v44 = vrot.slane %v2328_v50, 4 }
 0x1a4   : > { %9667 = vst [vmem:[#allocation103_spill] sm:$0xff] %v7865_v60  ;;  %v2722_v16 = vsel %vm1477_vm3, %v2721_v39, %v7712_v31  ;;  %v1445_v19 = vpop.permute.xlu2 %1444  ;;  %v1215_v23 = vpop.permute.xlu1 %1214  ;;  %v2332_v32 = vsel %vm1477_vm3, %v2328_v50, %v2331_v12  ;;  %v2173_v31 = vrot.slane %v7670_v49, 4  ;;  %v2273_v39 = vrot.slane %v2272_v27, 4 }
 0x1a5   : > { %9668 = vst [vmem:[#allocation104_spill] sm:$0xff] %v7869_v0  ;;  %v1875_v7 = vrot.slane %v1445_v19, 4  ;;  %v1213_v55 = vpop.permute.xlu0 %1212  ;;  %v2295_v41 = vrot.slane %v1215_v23, 4  ;;  %v2276_v15 = vsel %vm1477_vm3, %v2272_v27, %v2275_v63  ;;  %v5406_v23 = vld [vmem:[%s5456_s16 + $0x12c] sm:$0xf]  ;;  %v7898_v50 = vperm.slane %v7808_v3, %v5947_v9  ;;  %v9681_v0 = vld [vmem:[#allocation85_spill] sm:$0xff] }
 0x1a6   : > { %9669 = vst [vmem:[#allocation105_spill] sm:$0xff] %v7873_v4  ;;  %v1847_v37 = vrot.slane %v1213_v55, 4  ;;  %v1753_v55 = vrot.slane %v7504_v18, 4  ;;  %v7901_v63 = vperm.slane %v2752_v48, %v5947_v9  ;;  %v7908_v27 = vsel %vm1477_vm3, %v2329_v44, %v2322_v53 }
 0x1a7   : > { %9670 = vst [vmem:[#allocation106_spill] sm:$0xff] %v7878_v52  ;;  %v1876_v13 = vsel %vm1477_vm3, %v1875_v7, %v9671_v38  ;;  %v2296_v51 = vsel %vm1477_vm3, %v2295_v41, %v5405_v36  ;;  %v7905_v36 = vsel %vm1477_vm3, 0, %v1725_v30  ;;  %v7917_v3 = vperm.slane %v2724_v8, %v5947_v9 }
 0x1a8   : > { %v7890_v19 = vperm.slane %v1876_v13, %v5742_v33  ;;  %v1848_v40 = vsel %vm1477_vm3, %v1847_v37, %v5406_v23  ;;  %v2300_v12 = vperm.slane %v2296_v51, %v5742_v33  ;;  %9672 = vst [vmem:[#allocation27_spill] sm:$0xff] %v7898_v50  ;;  %v7911_v37 = vperm.slane %v2332_v32, %v5947_v9  ;;  %v9680_v50 = vld [vmem:[#allocation50_spill] sm:$0xff] }
 0x1a9   : > { %9673 = vst [vmem:[#allocation107_spill] sm:$0xff] %v7901_v63  ;;  %v1852_v38 = vperm.slane %v1848_v40, %v5742_v33  ;;  %v7914_v51 = vperm.slane %v2276_v15, %v5947_v9  ;;  %v2274_v48 = vsel %vm1477_vm3, %v2273_v39, %v7818_v26  ;;  %v7922_v40 = vperm.slane %v2722_v16, %v5947_v9  ;;  %v9679_v26 = vld [vmem:[#allocation46_spill] sm:$0xff] }
 0x1aa   : > { %9674 = vst [vmem:[#allocation108_spill] sm:$0xff] %v7917_v3  ;;  %v7925_v30 = vsel %vm1477_vm3, 0, %v1753_v55  ;;  %v7928_v44 = vsel %vm1477_vm3, 0, %v2173_v31  ;;  %v1881_v53 = vrot.slane %v7890_v19, 4  ;;  %v9678_v15 = vrot.slane %v7738_v6, 4 }
 0x1ab   : > { %9675 = vst [vmem:[#allocation109_spill] sm:$0xff] %v7922_v40  ;;  %v3296_v16 = vshrl.u32 %v9679_v26, 16  ;;  %v1853_v39 = vrot.slane %v1852_v38, 4  ;;  %v2301_v13 = vrot.slane %v2300_v12, 4  ;;  %v1856_v31 = vsel %vm1477_vm3, %v1852_v38, %v1855_v61  ;;  %v5407_v61 = vld [vmem:[%s5456_s16 + $0x138] sm:$0xf] }
 0x1ac   : > { %9676 = vst [vmem:[#allocation110_spill] sm:$0xff] %v7925_v30  ;;  %v2304_v7 = vsel %vm1477_vm3, %v2300_v12, %v9678_v15  ;;  %v1451_v8 = vpop.permute.xlu2 %1450  ;;  %v1429_v41 = vpop.permute.xlu1 %1428  ;;  %v3661_v4 = vpack.i.b16 %v7925_v30, %v7905_v36  ;;  %v3297_v15 = vshrl.u32 %v9680_v50, 16  ;;  %v2089_v62 = vrot.slane %v9662_v59, 4 }
 0x1ad   : > { %9677 = vst [vmem:[#allocation111_spill] sm:$0xff] %v7928_v44  ;;  %v3219_v23 = vrot.slane %v1451_v8, 4  ;;  %v1219_v55 = vpop.permute.xlu0 %1218  ;;  %v1869_v63 = vrot.slane %v1429_v41, 4  ;;  %v7941_v40 = vperm.slane %v2304_v7, %v5947_v9  ;;  %v3687_v8 = vshrl.u32 %v7878_v52, 16 }
 0x1ae   : > { %v3191_v3 = vrot.slane %v1219_v55, 4  ;;  %v7954_v7 = vperm.slane %v1856_v31, %v5947_v9  ;;  %v9683_v31 = vrot.slane %v7852_v28, 4 }
 0x1af   : > { %v3220_v32 = vsel %vm1477_vm3, %v3219_v23, %v7249_v42  ;;  %v1870_v12 = vsel %vm1477_vm3, %v1869_v63, %v9681_v0  ;;  %v2302_v42 = vsel %vm1477_vm3, %v2301_v13, %v7738_v6  ;;  %v7962_v63 = vsel %vm1477_vm3, %v1853_v39, %v7828_v24 }
 0x1b0   : > { %v3224_v41 = vperm.slane %v3220_v32, %v5742_v33  ;;  %v3192_v38 = vsel %vm1477_vm3, %v3191_v3, %v5407_v61  ;;  %v1874_v55 = vperm.slane %v1870_v12, %v5742_v33  ;;  %v7965_v32 = vunpack.c.l.b16 %v3661_v4 }
 0x1b1   : > { %v3196_v23 = vperm.slane %v3192_v38, %v5742_v33  ;;  %v7967_v12 = vpack.i.b16 %v3297_v15, %v3296_v16  ;;  %v3686_v13 = vshrl.u32 %v7928_v44, 16  ;;  %v7976_v4 = vsel %vm1477_vm3, 0, %v2089_v62 }
 0x1b2   : > { %v1882_v3 = vsel %vm1477_vm3, %v1881_v53, %v1874_v55  ;;  %v1883_v6 = vrot.slane %v1874_v55, 4  ;;  %v3225_v38 = vrot.slane %v3224_v41, 4  ;;  %9685 = vst [vmem:[#allocation112_spill] sm:$0xff] %v7976_v4  ;;  %v7987_v39 = vperm.slane %v2274_v48, %v5947_v9 }
 0x1b3   : > { %9682 = vst [vmem:[#allocation85_spill] sm:$0xff] %v7967_v12  ;;  %v3197_v61 = vrot.slane %v3196_v23, 4  ;;  %v3200_v59 = vsel %vm1477_vm3, %v3196_v23, %v9683_v31  ;;  %v7981_v15 = vperm.slane %v1882_v3, %v5947_v9  ;;  %v7990_v53 = vperm.slane %v2302_v42, %v5947_v9 }
 0x1b4   : > { %v1449_v0 = vpop.permute.xlu2 %1448  ;;  %v1435_v25 = vpop.permute.xlu1 %1434  ;;  %v7984_v14 = vperm.slane %v3200_v59, %v5947_v9  ;;  %9688 = vst [vmem:[#allocation115_spill] sm:$0xff] %v7987_v39  ;;  %v7994_v62 = vsel %vm1477_vm3, %v7890_v19, %v1883_v6  ;;  %v3872_v6 = vshrl.u32 %v7987_v39, 16 }
 0x1b5   : > { %v3198_v16 = vsel %vm1477_vm3, %v3197_v61, %v7852_v28  ;;  %9686 = vst [vmem:[#allocation113_spill] sm:$0xff] %v7981_v15  ;;  %v2771_v55 = vrot.slane %v1449_v0, 4  ;;  %v1433_v23 = vpop.permute.xlu0 %1432  ;;  %v3213_v31 = vrot.slane %v1435_v25, 4  ;;  %v9690_v28 = vld [vmem:[#allocation91_spill] sm:$0xff]  ;;  %v9691_v0 = vld [vmem:[#allocation49_spill] sm:$0xff]  ;;  %v8000_v61 = vpack.i.b16 %v3687_v8, %v3686_v13 }
 0x1b6   : > { %9687 = vst [vmem:[#allocation114_spill] sm:$0xff] %v7984_v14  ;;  %v2765_v43 = vrot.slane %v1433_v23, 4  ;;  %v9692_v23 = vld [vmem:[#allocation87_spill] sm:$0xff]  ;;  %v8008_v14 = vperm.slane %v7908_v27, %v5947_v9  ;;  %v2285_v8 = vrot.slane %v7987_v39, 4 }
 0x1b7   : > { %9689 = vst [vmem:[#allocation116_spill] sm:$0xff] %v7990_v53  ;;  %v2772_v3 = vsel %vm1477_vm3, %v2771_v55, %v9690_v28  ;;  %v3214_v25 = vsel %vm1477_vm3, %v3213_v31, %v9691_v0  ;;  %v3873_v55 = vshrl.u32 %v7990_v53, 16 }
 0x1b8   : > { %v2776_v59 = vperm.slane %v2772_v3, %v5742_v33  ;;  %v2766_v48 = vsel %vm1477_vm3, %v2765_v43, %v9692_v23  ;;  %v3218_v42 = vperm.slane %v3214_v25, %v5742_v33  ;;  %9693 = vst [vmem:[#allocation91_spill] sm:$0xff] %v8008_v14  ;;  %v2313_v43 = vrot.slane %v7990_v53, 4 }
 0x1b9   : > { %v2770_v19 = vperm.slane %v2766_v48, %v5742_v33  ;;  %v8017_v3 = vperm.slane %v3198_v16, %v5947_v9  ;;  %v8019_v27 = vpack.i.b16 %v3873_v55, %v3872_v6 }
 0x1ba   : > { %v2777_v13 = vrot.slane %v2776_v59, 4  ;;  %v3226_v31 = vsel %vm1477_vm3, %v3225_v38, %v3218_v42  ;;  %v3227_v28 = vrot.slane %v3218_v42, 4  ;;  %v3968_v42 = vshrl.u32 %v8008_v14, 16 }
 0x1bb   : > { %9694 = vst [vmem:[#allocation49_spill] sm:$0xff] %v8017_v3  ;;  %v2779_v0 = vrot.slane %v2770_v19, 4  ;;  %v8025_v39 = vperm.slane %v3226_v31, %v5947_v9  ;;  %v8030_v3 = vsel %vm1477_vm3, 0, %v2285_v8  ;;  %v8033_v6 = vsel %vm1477_vm3, 0, %v2313_v43 }
 0x1bc   : > { %v2778_v23 = vsel %vm1477_vm3, %v2777_v13, %v2770_v19  ;;  %v3228_v48 = vsel %vm1477_vm3, %v3224_v41, %v3227_v28  ;;  %v4062_v50 = vpop.permute.xlu2 %4061  ;;  %v1439_v38 = vpop.permute.xlu1 %1438  ;;  %v2341_v19 = vrot.slane %v8008_v14, 4  ;;  %v9704_v14 = vld [vmem:[#allocation24_spill] sm:$0xff] }
 0x1bd   : > { %9695 = vst [vmem:[#allocation87_spill] sm:$0xff] %v8025_v39  ;;  %v2780_v53 = vsel %vm1477_vm3, %v2776_v59, %v2779_v0  ;;  %v1455_v16 = vpop.permute.xlu0 %1454  ;;  %v8037_v41 = vperm.slane %v2778_v23, %v5947_v9  ;;  %v8040_v55 = vperm.slane %v3228_v48, %v5947_v9  ;;  %v2345_v31 = vrot.slane %v1439_v38, 4  ;;  %v9701_v23 = vld [vmem:[#allocation89_spill] sm:$0xff]  ;;  %v9702_v48 = vld [vmem:[#allocation26_spill] sm:$0xff] }
 0x1be   : > { %v2351_v13 = vrot.slane %v1455_v16, 4  ;;  %v8043_v28 = vperm.slane %v2780_v53, %v5947_v9  ;;  %v9699_v59 = vpack.c.b16 %v7638_v2, %v7142_v29  ;;  %v3885_v0 = vshrl.u32 %v7941_v40, 16 }
 0x1bf   : > { %9696 = vst [vmem:[#allocation117_spill] sm:$0xff] %v8037_v41  ;;  %v2346_v16 = vsel %vm1477_vm3, %v2345_v31, %v9702_v48  ;;  %v3877_v53 = vpack.i.b16 %v8033_v6, %v8030_v3  ;;  %v8061_v38 = vperm.slane %v7962_v63, %v5947_v9  ;;  %v3848_v31 = vshrl.u32 %v7848_v1, 16 }
 0x1c0   : > { %9697 = vst [vmem:[#allocation118_spill] sm:$0xff] %v8040_v55  ;;  %v8049_v8 = vsel %vm4613_vm4, %v9699_v59, %v4062_v50  ;;  %v2352_v25 = vsel %vm1477_vm3, %v2351_v13, %v9701_v23  ;;  %v2350_v2 = vperm.slane %v2346_v16, %v5742_v33  ;;  %v8066_v50 = vsel %vm1477_vm3, 0, %v2341_v19 }
 0x1c1   : > { %9698 = vst [vmem:[#allocation119_spill] sm:$0xff] %v8043_v28  ;;  %v2356_v29 = vperm.slane %v2352_v25, %v5742_v33  ;;  %v3884_v59 = vshrl.u32 %v7914_v51, 16  ;;  %v3980_v13 = vshrl.u32 %v7911_v37, 16  ;;  %v3849_v23 = vshrl.u32 %v8061_v38, 16 }
 0x1c2   : > { %9700 = vst [vmem:[#allocation120_spill] sm:$0xff] %v8049_v8  ;;  %v1837_v48 = vrot.slane %v7848_v1, 4  ;;  %v2359_v63 = vrot.slane %v2350_v2, 4  ;;  %v1865_v25 = vrot.slane %v8061_v38, 4  ;;  %v4219_v16 = vunpack.c.l.b16 %v3877_v53 }
 0x1c3   : > { %9703 = vst [vmem:[#allocation89_spill] sm:$0xff] %v8061_v38  ;;  %v2357_v43 = vrot.slane %v2356_v29, 4  ;;  %v3886_v8 = vpack.i.b16 %v3885_v0, %v3884_v59  ;;  %v8074_v55 = vpack.i.b16 %v3849_v23, %v3848_v31  ;;  %v3944_v19 = vshrl.u32 %v7981_v15, 16  ;;  %v9706_v23 = vld [vmem:[#allocation29_spill] sm:$0xff] }
 0x1c4   : > { %v1437_v28 = vpop.permute.xlu1 %1436  ;;  %v1781_v41 = vrot.slane %v9704_v14, 4  ;;  %v2360_v26 = vsel %vm1477_vm3, %v2356_v29, %v2359_v63  ;;  %v8081_v1 = vsel %vm1477_vm3, 0, %v1865_v25  ;;  %v1838_v31 = vsel %vm1477_vm3, 0, %v1837_v48 }
 0x1c5   : > { %v2358_v39 = vsel %vm1477_vm3, %v2357_v43, %v2350_v2  ;;  %v1453_v12 = vpop.permute.xlu0 %1452  ;;  %v1897_v56 = vrot.slane %v1437_v28, 4  ;;  %v8087_v53 = vperm.slane %v2360_v26, %v5947_v9  ;;  %v4271_v43 = vunpack.c.l.b16 %v3886_v8  ;;  %v9707_v2 = vld [vmem:[#allocation30_spill] sm:$0xff]  ;;  %v9708_v8 = vld [vmem:[#allocation23_spill] sm:$0xff] }
 0x1c6   : > { %v8084_v0 = vperm.slane %v2358_v39, %v5947_v9  ;;  %v1903_v59 = vrot.slane %v1453_v12, 4  ;;  %v1893_v29 = vrot.slane %v7981_v15, 4  ;;  %v3853_v28 = vpack.i.b16 %v8081_v1, %v1838_v31 }
 0x1c7   : > { %v1898_v38 = vsel %vm1477_vm3, %v1897_v56, %v9706_v23  ;;  %v3981_v48 = vshrl.u32 %v8087_v53, 16  ;;  %v8102_v56 = vsel %vm1477_vm3, 0, %v1781_v41  ;;  %v1809_v23 = vrot.slane %v9708_v8, 4 }
 0x1c8   : > { %9705 = vst [vmem:[#allocation26_spill] sm:$0xff] %v8084_v0  ;;  %v1904_v63 = vsel %vm1477_vm3, %v1903_v59, %v9707_v2  ;;  %v1902_v39 = vperm.slane %v1898_v38, %v5742_v33  ;;  %v3969_v12 = vshrl.u32 %v8084_v0, 16  ;;  %v2369_v26 = vrot.slane %v8084_v0, 4 }
 0x1c9   : > { %v1908_v25 = vperm.slane %v1904_v63, %v5742_v33  ;;  %v4055_v38 = vunpack.c.l.b16 %v8074_v55  ;;  %v3982_v0 = vpack.i.b16 %v3981_v48, %v3980_v13  ;;  %v8112_v63 = vsel %vm1477_vm3, 0, %v1809_v23 }
 0x1ca   : > { %v1911_v15 = vrot.slane %v1902_v39, 4  ;;  %v3970_v45 = vpack.i.b16 %v3969_v12, %v3968_v42  ;;  %v8106_v21 = vsel %vm1477_vm3, 0, %v2369_v26  ;;  %v1894_v58 = vsel %vm1477_vm3, 0, %v1893_v29 }
 0x1cb   : > { %v1909_v59 = vrot.slane %v1908_v25, 4  ;;  %v3973_v2 = vpack.i.b16 %v8106_v21, %v8066_v50  ;;  %v4075_v4 = vunpack.c.l.b16 %v3853_v28  ;;  %v3757_v42 = vpack.i.b16 %v8112_v63, %v8102_v56  ;;  %v9710_v28 = vld [vmem:[#allocation92_spill] sm:$0xff] }
 0x1cc   : > { %v1443_v46 = vpop.permute.xlu1 %1442  ;;  %v4200_v41 = vunpack.c.l.b16 %v3970_v45  ;;  %v4272_v24 = vunpack.c.l.b16 %v3982_v0  ;;  %v9709_v48 = vunpack.c.l.b16 %v8019_v27  ;;  %v3758_v45 = vshrl.u32 %v8102_v56, 16 }
 0x1cd   : > { %v1910_v12 = vsel %vm1477_vm3, %v1909_v59, %v1902_v39  ;;  %v1459_v26 = vpop.permute.xlu0 %1458  ;;  %v3241_v55 = vrot.slane %v1443_v46, 4  ;;  %v4220_v60 = vunpack.c.l.b16 %v3973_v2  ;;  %v1912_v29 = vsel %vm1477_vm3, %v1908_v25, %v1911_v15  ;;  %v9711_v46 = vld [vmem:[#allocation82_spill] sm:$0xff] }
 0x1ce   : > { %v8119_v52 = vperm.slane %v1910_v12, %v5947_v9  ;;  %v3247_v13 = vrot.slane %v1459_v26, 4  ;;  %v4204_v23 = vpack.c.b16 %v4200_v41, %v9709_v48  ;;  %v4276_v15 = vpack.c.b16 %v4272_v24, %v4271_v43 }
 0x1cf   : > { %v3242_v44 = vsel %vm1477_vm3, %v3241_v55, %v9710_v28  ;;  %v4224_v30 = vpack.c.b16 %v4220_v60, %v4219_v16  ;;  %v8136_v25 = vunpack.c.l.b16 %v3757_v42  ;;  %v3855_v60 = vshrl.u32 %v8081_v1, 16 }
 0x1d0   : > { %v3248_v0 = vsel %vm1477_vm3, %v3247_v13, %v9711_v46  ;;  %v3246_v59 = vperm.slane %v3242_v44, %v5742_v33  ;;  %4211 = vrot.lane.b32.xlu0 %v4204_v23, %s5419_s18  ;;  %v3945_v27 = vshrl.u32 %v8119_v52, 16  ;;  %v1921_v2 = vrot.slane %v8119_v52, 4 }
 0x1d1   : > { %v3252_v41 = vperm.slane %v3248_v0, %v5742_v33  ;;  %4231 = vrot.lane.b32.xlu1 %v4224_v30, %s5420_s19  ;;  %v3854_v44 = vshrl.u32 %v1838_v31, 16  ;;  %v3950_v48 = vshrl.u32 %v1894_v58, 16  ;;  %v8143_v30 = vperm.slane %v7845_v10, %v5947_v9  ;;  %v9712_v10 = vld [vmem:[#allocation20_spill] sm:$0xff] }
 0x1d2   : > { %v3255_v16 = vrot.slane %v3246_v59, 4  ;;  %v3946_v12 = vpack.i.b16 %v3945_v27, %v3944_v19  ;;  %v1922_v26 = vsel %vm1477_vm3, 0, %v1921_v2  ;;  %v8147_v19 = vperm.slane %v7994_v62, %v5947_v9  ;;  %v9713_v62 = vld [vmem:[#allocation17_spill] sm:$0xff] }
 0x1d3   : > { %v3253_v55 = vrot.slane %v3252_v41, 4  ;;  %v3949_v13 = vpack.i.b16 %v1922_v26, %v1894_v58  ;;  %v3951_v23 = vshrl.u32 %v1922_v26, 16  ;;  %v3856_v39 = vpack.i.b16 %v3855_v60, %v3854_v44 }
 0x1d4   : > { %v3256_v28 = vsel %vm1477_vm3, %v3252_v41, %v3255_v16  ;;  %v1441_v46 = vpop.permute.xlu1 %1440  ;;  %v4056_v0 = vunpack.c.l.b16 %v3946_v12  ;;  %v8150_v31 = vperm.slane %v1912_v29, %v5947_v9  ;;  %v4079_v12 = vpack.c.b16 %v8136_v25, %v7965_v32 }
 0x1d5   : > { %v1457_v24 = vpop.permute.xlu0 %1456  ;;  %v2793_v1 = vrot.slane %v1441_v46, 4  ;;  %v4076_v43 = vunpack.c.l.b16 %v3949_v13  ;;  %v3254_v58 = vsel %vm1477_vm3, %v3253_v55, %v3246_v59  ;;  %v3952_v2 = vpack.i.b16 %v3951_v23, %v3950_v48 }
 0x1d6   : > { %v2799_v42 = vrot.slane %v1457_v24, 4  ;;  %v4060_v27 = vpack.c.b16 %v4056_v0, %v4055_v38  ;;  %v8154_v41 = vperm.slane %v3256_v28, %v5947_v9  ;;  %v3860_v38 = vshrl.u32 %v8143_v30, 16 }
 0x1d7   : > { %v2794_v60 = vsel %vm1477_vm3, %v2793_v1, %v9712_v10  ;;  %v4080_v16 = vpack.c.b16 %v4076_v43, %v4075_v4  ;;  %v3861_v59 = vshrl.u32 %v7954_v7, 16  ;;  %v8168_v44 = vperm.slane %v3254_v58, %v5947_v9 }
 0x1d8   : > { %v2800_v26 = vsel %vm1477_vm3, %v2799_v42, %v9713_v62  ;;  %v2798_v29 = vperm.slane %v2794_v60, %v5742_v33  ;;  %4283 = vrot.lane.b32.xlu0 %v4276_v15, %s5419_s18  ;;  %4067 = vrot.lane.b32.xlu2 %v4060_v27, %s5419_s18  ;;  %v3956_v32 = vshrl.u32 %v8147_v19, 16  ;;  %v3957_v25 = vshrl.u32 %v8150_v31, 16 }
 0x1d9   : > { %v2804_v4 = vperm.slane %v2800_v26, %v5742_v33  ;;  %4087 = vrot.lane.b32.xlu1 %v4080_v16, %s5420_s19  ;;  %v4095_v13 = vunpack.c.l.b16 %v3856_v39  ;;  %v4096_v15 = vunpack.c.l.b16 %v3952_v2  ;;  %v3862_v48 = vpack.i.b16 %v3861_v59, %v3860_v38 }
 0x1da   : > { %v2807_v55 = vrot.slane %v2798_v29, 4  ;;  %v3958_v28 = vpack.i.b16 %v3957_v25, %v3956_v32  ;;  %v3878_v46 = vshrl.u32 %v8030_v3, 16  ;;  %v3879_v0 = vshrl.u32 %v8033_v6, 16 }
 0x1db   : > { %v2805_v23 = vrot.slane %v2804_v4, 4  ;;  %v3974_v33 = vshrl.u32 %v8066_v50, 16  ;;  %v3975_v1 = vshrl.u32 %v8106_v21, 16  ;;  %v2287_v43 = vrot.slane %v7914_v51, 4 }
 0x1dc   : > { %v2808_v24 = vsel %vm1477_vm3, %v2804_v4, %v2807_v55  ;;  %v4127_v42 = vunpack.c.l.b16 %v3862_v48  ;;  %v4128_v39 = vunpack.c.l.b16 %v3958_v28  ;;  %v3880_v27 = vpack.i.b16 %v3879_v0, %v3878_v46 }
 0x1dd   : > { %v2806_v58 = vsel %vm1477_vm3, %v2805_v23, %v2798_v29  ;;  %v8185_v3 = vperm.slane %v2808_v24, %v5947_v9  ;;  %v4100_v6 = vpack.c.b16 %v4096_v15, %v4095_v13  ;;  %v3976_v10 = vpack.i.b16 %v3975_v1, %v3974_v33  ;;  %v4064_v38 = vpop.permute.xlu0 %4063 }
 0x1de   : > { %v8182_v2 = vperm.slane %v2806_v58, %v5947_v9  ;;  %v4132_v60 = vpack.c.b16 %v4128_v39, %v4127_v42  ;;  %v2288_v50 = vsel %vm1477_vm3, 0, %v2287_v43  ;;  %v2315_v21 = vrot.slane %v7941_v40, 4 }
 0x1df   : > { %v2343_v16 = vrot.slane %v7911_v37, 4  ;;  %v4239_v62 = vunpack.c.l.b16 %v3880_v27  ;;  %v4240_v26 = vunpack.c.l.b16 %v3976_v10  ;;  %v2371_v29 = vrot.slane %v8087_v53, 4 }
 0x1e0   : > { %9714 = vst [vmem:[#allocation24_spill] sm:$0xff] %v8182_v2  ;;  %4085 = vrot.lane.b32.xlu2 %v4079_v12, %s5420_s19  ;;  %4107 = vrot.lane.b32.xlu0 %v4100_v6, %s5421_s20  ;;  %v1839_v9 = vrot.slane %v8143_v30, 4  ;;  %v2316_v59 = vsel %vm1477_vm3, 0, %v2315_v21  ;;  %v1867_v32 = vrot.slane %v7954_v7, 4  ;;  %v1895_v12 = vrot.slane %v8147_v19, 4 }
 0x1e1   : > { %4139 = vrot.lane.b32.xlu1 %v4132_v60, %s5419_s18  ;;  %v2344_v4 = vsel %vm1477_vm3, 0, %v2343_v16  ;;  %v2372_v25 = vsel %vm1477_vm3, 0, %v2371_v29  ;;  %v3890_v55 = vshrl.u32 %v2288_v50, 16  ;;  %v3891_v13 = vshrl.u32 %v2316_v59, 16 }
 0x1e2   : > { %v3986_v15 = vshrl.u32 %v2344_v4, 16  ;;  %v3987_v48 = vshrl.u32 %v2372_v25, 16  ;;  %v1840_v23 = vsel %vm1477_vm3, 0, %v1839_v9  ;;  %v1868_v28 = vsel %vm1477_vm3, 0, %v1867_v32 }
 0x1e3   : > { %v1896_v46 = vsel %vm1477_vm3, 0, %v1895_v12  ;;  %v9715_v0 = vpack.c.b16 %v7775_v35, %v7667_v34  ;;  %v3892_v33 = vpack.i.b16 %v3891_v13, %v3890_v55  ;;  %v1923_v1 = vrot.slane %v8150_v31, 4 }
 0x1e4   : > { %v3865_v43 = vpack.i.b16 %v1868_v28, %v1840_v23  ;;  %v4244_v58 = vpack.c.b16 %v4240_v26, %v4239_v62  ;;  %v3988_v42 = vpack.i.b16 %v3987_v48, %v3986_v15  ;;  %v3866_v39 = vshrl.u32 %v1840_v23, 16 }
 0x1e5   : > { %v8207_v24 = vsel %vm4613_vm4, %v9715_v0, %v4064_v38  ;;  %v3867_v27 = vshrl.u32 %v1868_v28, 16  ;;  %v4311_v6 = vunpack.c.l.b16 %v3892_v33  ;;  %v1924_v10 = vsel %vm1477_vm3, 0, %v1923_v1 }
 0x1e6   : > { %v3962_v60 = vshrl.u32 %v1896_v46, 16  ;;  %v3889_v21 = vpack.i.b16 %v2316_v59, %v2288_v50  ;;  %v4312_v16 = vunpack.c.l.b16 %v3988_v42  ;;  %v3961_v29 = vpack.i.b16 %v1924_v10, %v1896_v46 }
 0x1e7   : > { %v3963_v9 = vshrl.u32 %v1924_v10, 16  ;;  %v3985_v34 = vpack.i.b16 %v2372_v25, %v2344_v4  ;;  %v4147_v35 = vunpack.c.l.b16 %v3865_v43  ;;  %v3868_v38 = vpack.i.b16 %v3867_v27, %v3866_v39 }
 0x1e8   : > { %4251 = vrot.lane.b32.xlu2 %v4244_v58, %s5421_s20  ;;  %v9716_v32 = vrot.slane %v7727_v5, 4  ;;  %v2257_v26 = vrot.slane %v7837_v22, 4  ;;  %v4316_v12 = vpack.c.b16 %v4312_v16, %v4311_v6  ;;  %v4148_v55 = vunpack.c.l.b16 %v3961_v29 }
 0x1e9   : > { %v4292_v13 = vunpack.c.l.b16 %v3985_v34  ;;  %v3964_v15 = vpack.i.b16 %v3963_v9, %v3962_v60  ;;  %v4291_v50 = vunpack.c.l.b16 %v3889_v21  ;;  %v4167_v59 = vunpack.c.l.b16 %v3868_v38 }
 0x1ea   : > { %v8215_v62 = vsel %vm1477_vm3, 0, %v9716_v32  ;;  %v2258_v48 = vsel %vm1477_vm3, 0, %v2257_v26  ;;  %4323 = vrot.lane.b32.xlu0 %v4316_v12, %s5421_s20  ;;  %v4152_v25 = vpack.c.b16 %v4148_v55, %v4147_v35  ;;  %v4237_v46 = vunpack.c.l.b16 %v8000_v61 }
 0x1eb   : > { %v3782_v4 = vshrl.u32 %v8215_v62, 16  ;;  %v4168_v23 = vunpack.c.l.b16 %v3964_v15  ;;  %v3783_v28 = vshrl.u32 %v2258_v48, 16  ;;  %v3655_v0 = vpack.i.b16 %v7504_v18, %v7518_v57  ;;  %v9718_v15 = vld [vmem:[#allocation110_spill] sm:$0xff] }
 0x1ec   : > { %v3751_v33 = vpack.i.b16 %v9708_v8, %v9704_v14  ;;  %v3680_v1 = vshrl.u32 %v7670_v49, 16  ;;  %v3681_v43 = vshrl.u32 %v7641_v17, 16  ;;  %4159 = vrot.lane.b32.xlu1 %v4152_v25, %s5420_s19  ;;  %v4296_v58 = vpack.c.b16 %v4292_v13, %v4291_v50 }
 0x1ed   : > { %v3784_v42 = vpack.i.b16 %v3783_v28, %v3782_v4  ;;  %v3776_v39 = vshrl.u32 %v7727_v5, 16  ;;  %v3777_v27 = vshrl.u32 %v7837_v22, 16  ;;  %v4041_v6 = vunpack.c.l.b16 %v3655_v0 }
 0x1ee   : > { %v4042_v61 = vunpack.c.l.b16 %v3751_v33  ;;  %v3682_v10 = vpack.i.b16 %v3681_v43, %v3680_v1  ;;  %v2175_v18 = vrot.slane %v7655_v54, 4  ;;  %v2203_v14 = vrot.slane %v7646_v47, 4  ;;  %v9721_v33 = vld [vmem:[#allocation111_spill] sm:$0xff]  ;;  %v9722_v1 = vld [vmem:[#allocation106_spill] sm:$0xff] }
 0x1ef   : > { %v4238_v57 = vunpack.c.l.b16 %v3784_v42  ;;  %v3778_v60 = vpack.i.b16 %v3777_v27, %v3776_v39  ;;  %v2231_v8 = vrot.slane %v7731_v20, 4  ;;  %v4172_v21 = vpack.c.b16 %v4168_v23, %v4167_v59 }
 0x1f0   : > { %4303 = vrot.lane.b32.xlu2 %v4296_v58, %s5420_s19  ;;  %v4047_v16 = vpack.c.b16 %v4042_v61, %v4041_v6  ;;  %v2176_v29 = vsel %vm1477_vm3, 0, %v2175_v18  ;;  %v2259_v9 = vrot.slane %v7799_v11, 4  ;;  %v4197_v34 = vunpack.c.l.b16 %v3682_v10 }
 0x1f1   : > { %v4198_v35 = vunpack.c.l.b16 %v3778_v60  ;;  %v2204_v38 = vsel %vm1477_vm3, 0, %v2203_v14  ;;  %v2232_v32 = vsel %vm1477_vm3, 0, %v2231_v8  ;;  %v4066_v26 = vpop.permute.xlu1 %4065  ;;  %v9717_v13 = vshrl.u32 %v7905_v36, 16 }
 0x1f2   : > { %v2260_v12 = vsel %vm1477_vm3, 0, %v2259_v9  ;;  %v3697_v55 = vpack.i.b16 %v2204_v38, %v2176_v29  ;;  %v9719_v50 = vshrl.u32 %v9718_v15, 16  ;;  %v9720_v4 = vshrl.u32 %v8112_v63, 16  ;;  %4179 = vrot.lane.b32.xlu0 %v4172_v21, %s5421_s20  ;;  %v9726_v15 = vld [vmem:[#allocation103_spill] sm:$0xff] }
 0x1f3   : > { %v4243_v23 = vpack.c.b16 %v4238_v57, %v4237_v46  ;;  %v8250_v28 = vsel %vm4613_vm4, %v4047_v16, %v4066_v26  ;;  %v3793_v0 = vpack.i.b16 %v2260_v12, %v2232_v32  ;;  %v3685_v43 = vpack.i.b16 %v9722_v1, %v9721_v33  ;;  %v9724_v57 = vld [vmem:[#allocation93_spill] sm:$0xff]  ;;  %v9729_v33 = vld [vmem:[#allocation102_spill] sm:$0xff] }
 0x1f4   : > { %v3664_v59 = vpack.i.b16 %v9719_v50, %v9717_v13  ;;  %v3760_v25 = vpack.i.b16 %v9720_v4, %v3758_v45  ;;  %v4203_v58 = vpack.c.b16 %v4198_v35, %v4197_v34  ;;  %v3781_v39 = vpack.i.b16 %v2258_v48, %v8215_v62  ;;  %v9723_v45 = vld [vmem:[#allocation72_spill] sm:$0xff] }
 0x1f5   : > { %4249 = vrot.lane.b32.xlu1 %v4243_v23, %s5421_s20  ;;  %v4289_v56 = vunpack.c.l.b16 %v3697_v55  ;;  %v4290_v63 = vunpack.c.l.b16 %v3793_v0  ;;  %v3585_v27 = vshrl.u32 %v9723_v45, 16  ;;  %v3698_v6 = vshrl.u32 %v2176_v29, 16  ;;  %v9727_v50 = vld [vmem:[#allocation112_spill] sm:$0xff] }
 0x1f6   : > { %v4093_v36 = vunpack.c.l.b16 %v3664_v59  ;;  %v4094_v42 = vunpack.c.l.b16 %v3760_v25  ;;  %v4217_v61 = vunpack.c.l.b16 %v3685_v43  ;;  %v4218_v10 = vunpack.c.l.b16 %v3781_v39 }
 0x1f7   : > { %v3699_v18 = vshrl.u32 %v2204_v38, 16  ;;  %v9725_v60 = vshrl.u32 %v9724_v57, 16  ;;  %v3794_v8 = vshrl.u32 %v2232_v32, 16  ;;  %v3795_v21 = vshrl.u32 %v2260_v12, 16 }
 0x1f8   : > { %v4099_v46 = vpack.c.b16 %v4094_v42, %v4093_v36  ;;  %v3692_v16 = vshrl.u32 %v7655_v54, 16  ;;  %4209 = vrot.lane.b32.xlu2 %v4203_v58, %s5419_s18  ;;  %v4295_v62 = vpack.c.b16 %v4290_v63, %v4289_v56  ;;  %v3693_v9 = vshrl.u32 %v7646_v47, 16  ;;  %v9731_v63 = vld [vmem:[#allocation10_spill] sm:$0xff] }
 0x1f9   : > { %v3586_v14 = vpack.i.b16 %v3585_v27, %v9725_v60  ;;  %v3700_v48 = vpack.i.b16 %v3699_v18, %v3698_v6  ;;  %v3788_v34 = vshrl.u32 %v7731_v20, 16  ;;  %v3796_v35 = vpack.i.b16 %v3795_v21, %v3794_v8  ;;  %v4084_v55 = vpop.permute.xlu1 %4083  ;;  %v9733_v18 = vld [vmem:[#allocation5_spill] sm:$0xff] }
 0x1fa   : > { %v3789_v26 = vshrl.u32 %v7799_v11, 16  ;;  %v2117_v38 = vrot.slane %v9724_v57, 4  ;;  %v4223_v13 = vpack.c.b16 %v4218_v10, %v4217_v61  ;;  %v3694_v32 = vpack.i.b16 %v3693_v9, %v3692_v16  ;;  %4301 = vrot.lane.b32.xlu0 %v4295_v62, %s5420_s19  ;;  %v9732_v61 = vld [vmem:[#allocation60_spill] sm:$0xff] }
 0x1fb   : > { %v4196_v29 = vunpack.c.l.b16 %v3586_v14  ;;  %v2145_v12 = vrot.slane %v9723_v45, 4  ;;  %v3493_v59 = vpack.i.b16 %v9727_v50, %v9726_v15  ;;  %v8271_v4 = vsel %vm4626_vm5, %v8207_v24, %v4084_v55  ;;  %v9734_v14 = vld [vmem:[#allocation41_spill] sm:$0xff] }
 0x1fc   : > { %9728 = vst [vmem:[#allocation29_spill] sm:$0xff] %v8271_v4  ;;  %v4309_v25 = vunpack.c.l.b16 %v3700_v48  ;;  %v4310_v23 = vunpack.c.l.b16 %v3796_v35  ;;  %v3790_v0 = vpack.i.b16 %v3789_v26, %v3788_v34  ;;  %v9730_v1 = vunpack.c.l.b16 %v9729_v33  ;;  %v9745_v45 = vld [vmem:[#allocation85_spill] sm:$0xff] }
 0x1fd   : > { %v4269_v58 = vunpack.c.l.b16 %v3694_v32  ;;  %v8276_v36 = vsel %vm1477_vm3, 0, %v2117_v38  ;;  %v8279_v42 = vsel %vm1477_vm3, 0, %v2145_v12  ;;  %4105 = vrot.lane.b32.xlu1 %v4099_v46, %s5421_s20  ;;  %v4215_v56 = vunpack.c.l.b16 %v3493_v59 }
 0x1fe   : > { %v4202_v43 = vpack.c.b16 %v4196_v29, %v9730_v1  ;;  %v4270_v39 = vunpack.c.l.b16 %v3790_v0  ;;  %v3589_v24 = vpack.i.b16 %v8279_v42, %v8276_v36  ;;  %v1727_v27 = vrot.slane %v9731_v63, 4  ;;  %v9735_v0 = vld [vmem:[#allocation67_spill] sm:$0xff]  ;;  %v9736_v1 = vld [vmem:[#allocation28_spill] sm:$0xff] }
 0x1ff   : > { %v4315_v6 = vpack.c.b16 %v4310_v23, %v4309_v25  ;;  %v1755_v10 = vrot.slane %v9732_v61, 4  ;;  %v1783_v60 = vrot.slane %v9733_v18, 4  ;;  %v1811_v8 = vrot.slane %v9734_v14, 4 }
 0x200   : > { %v4216_v21 = vunpack.c.l.b16 %v3589_v24  ;;  %v1728_v16 = vsel %vm1477_vm3, 0, %v1727_v27  ;;  %v3668_v62 = vshrl.u32 %v9731_v63, 16  ;;  %v3669_v46 = vshrl.u32 %v9732_v61, 16  ;;  %4229 = vrot.lane.b32.xlu2 %v4223_v13, %s5420_s19  ;;  %v9737_v24 = vld [vmem:[#allocation8_spill] sm:$0xff] }
 0x201   : > { %v4275_v48 = vpack.c.b16 %v4270_v39, %v4269_v58  ;;  %v1756_v9 = vsel %vm1477_vm3, 0, %v1755_v10  ;;  %v1784_v34 = vsel %vm1477_vm3, 0, %v1783_v60  ;;  %v1812_v29 = vsel %vm1477_vm3, 0, %v1811_v8  ;;  %v9738_v10 = vld [vmem:[#allocation94_spill] sm:$0xff] }
 0x202   : > { %v3674_v35 = vshrl.u32 %v1728_v16, 16  ;;  %v3675_v26 = vshrl.u32 %v1756_v9, 16  ;;  %v3770_v38 = vshrl.u32 %v1784_v34, 16  ;;  %v3771_v55 = vshrl.u32 %v1812_v29, 16  ;;  %4207 = vrot.lane.b32.xlu0 %v4202_v43, %s5419_s18 }
 0x203   : > { %v4222_v32 = vpack.c.b16 %v4216_v21, %v4215_v56  ;;  %v3670_v12 = vpack.i.b16 %v3669_v46, %v3668_v62  ;;  %v3764_v59 = vshrl.u32 %v9733_v18, 16  ;;  %v3765_v25 = vshrl.u32 %v9734_v14, 16 }
 0x204   : > { %v3676_v13 = vpack.i.b16 %v3675_v26, %v3674_v35  ;;  %v3772_v23 = vpack.i.b16 %v3771_v55, %v3770_v38  ;;  %v3500_v33 = vshrl.u32 %v9735_v0, 16  ;;  %v3501_v58 = vshrl.u32 %v9736_v1, 16 }
 0x205   : > { %v3766_v39 = vpack.i.b16 %v3765_v25, %v3764_v59  ;;  %v3596_v27 = vshrl.u32 %v9737_v24, 16  ;;  %v3597_v60 = vshrl.u32 %v9738_v10, 16  ;;  %v2063_v56 = vrot.slane %v9735_v0, 4  ;;  %4321 = vrot.lane.b32.xlu1 %v4315_v6, %s5421_s20 }
 0x206   : > { %v4165_v8 = vunpack.c.l.b16 %v3676_v13  ;;  %v4166_v21 = vunpack.c.l.b16 %v3772_v23  ;;  %v3502_v62 = vpack.i.b16 %v3501_v58, %v3500_v33  ;;  %v2091_v43 = vrot.slane %v9736_v1, 4 }
 0x207   : > { %v4125_v46 = vunpack.c.l.b16 %v3670_v12  ;;  %v4126_v35 = vunpack.c.l.b16 %v3766_v39  ;;  %v3598_v26 = vpack.i.b16 %v3597_v60, %v3596_v27  ;;  %v2119_v38 = vrot.slane %v9737_v24, 4  ;;  %v9739_v27 = vld [vmem:[#allocation69_spill] sm:$0xff]  ;;  %v9742_v24 = vld [vmem:[#allocation31_spill] sm:$0xff] }
 0x208   : > { %v4171_v55 = vpack.c.b16 %v4166_v21, %v4165_v8  ;;  %v8307_v59 = vsel %vm1477_vm3, 0, %v2063_v56  ;;  %v8310_v25 = vsel %vm1477_vm3, 0, %v2091_v43  ;;  %v2147_v4 = vrot.slane %v9738_v10, 4  ;;  %4281 = vrot.lane.b32.xlu2 %v4275_v48, %s5419_s18  ;;  %v9740_v21 = vld [vmem:[#allocation68_spill] sm:$0xff] }
 0x209   : > { %v4267_v6 = vunpack.c.l.b16 %v3502_v62  ;;  %v4268_v13 = vunpack.c.l.b16 %v3598_v26  ;;  %v8315_v23 = vsel %vm1477_vm3, 0, %v2119_v38  ;;  %v3505_v12 = vpack.i.b16 %v8310_v25, %v8307_v59  ;;  %v9741_v38 = vld [vmem:[#allocation86_spill] sm:$0xff] }
 0x20a   : > { %v8320_v33 = vsel %vm1477_vm3, 0, %v2147_v4  ;;  %v3673_v58 = vpack.i.b16 %v1756_v9, %v1728_v16  ;;  %v3769_v39 = vpack.i.b16 %v1812_v29, %v1784_v34  ;;  %v3476_v60 = vshrl.u32 %v9739_v27, 16  ;;  %4227 = vrot.lane.b32.xlu0 %v4222_v32, %s5420_s19  ;;  %v9743_v9 = vld [vmem:[#allocation15_spill] sm:$0xff] }
 0x20b   : > { %v4131_v56 = vpack.c.b16 %v4126_v35, %v4125_v46  ;;  %v3601_v8 = vpack.i.b16 %v8320_v33, %v8315_v23  ;;  %v4287_v48 = vunpack.c.l.b16 %v3505_v12  ;;  %v3477_v62 = vshrl.u32 %v9740_v21, 16  ;;  %v9744_v29 = vld [vmem:[#allocation59_spill] sm:$0xff] }
 0x20c   : > { %v4145_v43 = vunpack.c.l.b16 %v3673_v58  ;;  %v4146_v26 = vunpack.c.l.b16 %v3769_v39  ;;  %v3572_v10 = vshrl.u32 %v9741_v38, 16  ;;  %v3573_v4 = vshrl.u32 %v9742_v24, 16 }
 0x20d   : > { %v4288_v1 = vunpack.c.l.b16 %v3601_v8  ;;  %v3478_v16 = vpack.i.b16 %v3477_v62, %v3476_v60  ;;  %v3392_v34 = vshrl.u32 %v9743_v9, 16  ;;  %v3393_v46 = vshrl.u32 %v9744_v29, 16  ;;  %4177 = vrot.lane.b32.xlu1 %v4171_v55, %s5421_s20 }
 0x20e   : > { %v4274_v35 = vpack.c.b16 %v4268_v13, %v4267_v6  ;;  %v4151_v12 = vpack.c.b16 %v4146_v26, %v4145_v43  ;;  %v3574_v0 = vpack.i.b16 %v3573_v4, %v3572_v10  ;;  %v4193_v57 = vunpack.c.l.b16 %v9745_v45  ;;  %v9746_v26 = vld [vmem:[#allocation46_spill] sm:$0xff] }
 0x20f   : > { %v4294_v32 = vpack.c.b16 %v4288_v1, %v4287_v48  ;;  %v3394_v58 = vpack.i.b16 %v3393_v46, %v3392_v34  ;;  %v3494_v39 = vshrl.u32 %v9726_v15, 16  ;;  %v3495_v14 = vshrl.u32 %v9727_v50, 16 }
 0x210   : > { %v4124_v18 = vunpack.c.l.b16 %v3574_v0  ;;  %v3590_v60 = vshrl.u32 %v8276_v36, 16  ;;  %v3591_v8 = vshrl.u32 %v8279_v42, 16  ;;  %v1615_v62 = vrot.slane %v9739_v27, 4  ;;  %4137 = vrot.lane.b32.xlu2 %v4131_v56, %s5419_s18  ;;  %v9758_v27 = vld [vmem:[#allocation63_spill] sm:$0xff] }
 0x211   : > { %v4123_v55 = vunpack.c.l.b16 %v3478_v16  ;;  %v3496_v6 = vpack.i.b16 %v3495_v14, %v3494_v39  ;;  %v1643_v10 = vrot.slane %v9740_v21, 4  ;;  %v1671_v45 = vrot.slane %v9741_v38, 4  ;;  %v9747_v16 = vld [vmem:[#allocation50_spill] sm:$0xff]  ;;  %v9757_v38 = vld [vmem:[#allocation9_spill] sm:$0xff] }
 0x212   : > { %v4194_v1 = vunpack.c.l.b16 %v3394_v58  ;;  %v3592_v13 = vpack.i.b16 %v3591_v8, %v3590_v60  ;;  %v8342_v15 = vsel %vm1477_vm3, 0, %v1615_v62  ;;  %v1699_v50 = vrot.slane %v9742_v24, 4  ;;  %4279 = vrot.lane.b32.xlu0 %v4274_v35, %s5419_s18  ;;  %v9748_v8 = vld [vmem:[#allocation83_spill] sm:$0xff] }
 0x213   : > { %v4130_v36 = vpack.c.b16 %v4124_v18, %v4123_v55  ;;  %v4235_v0 = vunpack.c.l.b16 %v3496_v6  ;;  %v8346_v42 = vsel %vm1477_vm3, 0, %v1643_v10  ;;  %v8349_v56 = vsel %vm1477_vm3, 0, %v1671_v45  ;;  %v9750_v55 = vld [vmem:[#allocation14_spill] sm:$0xff] }
 0x214   : > { %v4236_v14 = vunpack.c.l.b16 %v3592_v13  ;;  %v8353_v48 = vsel %vm1477_vm3, 0, %v1699_v50  ;;  %v3481_v43 = vpack.i.b16 %v8346_v42, %v8342_v15  ;;  %v1949_v4 = vrot.slane %v9746_v26, 4 }
 0x215   : > { %v3577_v18 = vpack.i.b16 %v8353_v48, %v8349_v56  ;;  %v1977_v34 = vrot.slane %v9747_v16, 4  ;;  %v2005_v46 = vrot.slane %v9743_v9, 4  ;;  %v2033_v58 = vrot.slane %v9744_v29, 4  ;;  %4299 = vrot.lane.b32.xlu1 %v4294_v32, %s5420_s19  ;;  %v9752_v32 = vld [vmem:[#allocation64_spill] sm:$0xff] }
 0x216   : > { %v4201_v35 = vpack.c.b16 %v4194_v1, %v4193_v57  ;;  %v4242_v39 = vpack.c.b16 %v4236_v14, %v4235_v0  ;;  %v1950_v60 = vsel %vm1477_vm3, 0, %v1949_v4  ;;  %v9749_v62 = vshrl.u32 %v9748_v8, 16  ;;  %v9754_v1 = vld [vmem:[#allocation7_spill] sm:$0xff] }
 0x217   : > { %v9751_v6 = vshrl.u32 %v9750_v55, 16  ;;  %v4144_v45 = vunpack.c.l.b16 %v3577_v18  ;;  %v1978_v13 = vsel %vm1477_vm3, 0, %v1977_v34  ;;  %v2006_v50 = vsel %vm1477_vm3, 0, %v2005_v46 }
 0x218   : > { %v2034_v9 = vsel %vm1477_vm3, 0, %v2033_v58  ;;  %v4143_v16 = vunpack.c.l.b16 %v3481_v43  ;;  %v3301_v29 = vpack.i.b16 %v1978_v13, %v1950_v60  ;;  %v9753_v57 = vshrl.u32 %v9752_v32, 16  ;;  %4157 = vrot.lane.b32.xlu2 %v4151_v12, %s5420_s19  ;;  %v9756_v58 = vld [vmem:[#allocation45_spill] sm:$0xff] }
 0x219   : > { %v3472_v10 = vpack.i.b16 %v9751_v6, %v9749_v62  ;;  %v3397_v26 = vpack.i.b16 %v2034_v9, %v2006_v50  ;;  %v9755_v0 = vshrl.u32 %v9754_v1, 16  ;;  %v3302_v8 = vshrl.u32 %v1950_v60, 16 }
 0x21a   : > { %v3303_v62 = vshrl.u32 %v1978_v13, 16  ;;  %v3398_v18 = vshrl.u32 %v2006_v50, 16  ;;  %v4150_v55 = vpack.c.b16 %v4144_v45, %v4143_v16  ;;  %v3399_v46 = vshrl.u32 %v2034_v9, 16  ;;  %4135 = vrot.lane.b32.xlu0 %v4130_v36, %s5419_s18 }
 0x21b   : > { %v3568_v14 = vpack.i.b16 %v9755_v0, %v9753_v57  ;;  %v4091_v4 = vunpack.c.l.b16 %v3472_v10  ;;  %v4214_v34 = vunpack.c.l.b16 %v3397_v26  ;;  %v3308_v43 = vshrl.u32 %v9756_v58, 16  ;;  %v9759_v10 = vld [vmem:[#allocation61_spill] sm:$0xff] }
 0x21c   : > { %v3304_v24 = vpack.i.b16 %v3303_v62, %v3302_v8  ;;  %v3309_v21 = vshrl.u32 %v9757_v38, 16  ;;  %v3404_v32 = vshrl.u32 %v9758_v27, 16  ;;  %v4213_v57 = vunpack.c.l.b16 %v3301_v29  ;;  %v9762_v62 = vld [vmem:[#allocation53_spill] sm:$0xff] }
 0x21d   : > { %v4092_v6 = vunpack.c.l.b16 %v3568_v14  ;;  %v3400_v12 = vpack.i.b16 %v3399_v46, %v3398_v18  ;;  %v3405_v60 = vshrl.u32 %v9759_v10, 16  ;;  %v3506_v26 = vshrl.u32 %v8307_v59, 16  ;;  %4205 = vrot.lane.b32.xlu1 %v4201_v35, %s5419_s18  ;;  %v9766_v59 = vld [vmem:[#allocation76_spill] sm:$0xff] }
 0x21e   : > { %v4233_v13 = vunpack.c.l.b16 %v3304_v24  ;;  %v3310_v50 = vpack.i.b16 %v3309_v21, %v3308_v43  ;;  %v3507_v9 = vshrl.u32 %v8310_v25, 16  ;;  %v3602_v0 = vshrl.u32 %v8315_v23, 16  ;;  %v9764_v21 = vld [vmem:[#allocation70_spill] sm:$0xff] }
 0x21f   : > { %v4098_v1 = vpack.c.b16 %v4092_v6, %v4091_v4  ;;  %v4234_v16 = vunpack.c.l.b16 %v3400_v12  ;;  %v3406_v45 = vpack.i.b16 %v3405_v60, %v3404_v32  ;;  %v3603_v14 = vshrl.u32 %v8320_v33, 16  ;;  %v9760_v4 = vld [vmem:[#allocation37_spill] sm:$0xff]  ;;  %v9769_v60 = vld [vmem:[#allocation48_spill] sm:$0xff] }
 0x220   : > { %v4221_v36 = vpack.c.b16 %v4214_v34, %v4213_v57  ;;  %v3508_v29 = vpack.i.b16 %v3507_v9, %v3506_v26  ;;  %v9761_v8 = vshrl.u32 %v9760_v4, 16  ;;  %v9763_v18 = vshrl.u32 %v9762_v62, 16  ;;  %4247 = vrot.lane.b32.xlu2 %v4242_v39, %s5421_s20  ;;  %v9768_v34 = vld [vmem:[#allocation36_spill] sm:$0xff] }
 0x221   : > { %v9765_v6 = vshrl.u32 %v9764_v21, 16  ;;  %v9767_v46 = vshrl.u32 %v9766_v59, 16  ;;  %v4241_v43 = vpack.c.b16 %v4234_v16, %v4233_v13  ;;  %v4265_v35 = vunpack.c.l.b16 %v3310_v50  ;;  %v9772_v50 = vld [vmem:[#allocation101_spill] sm:$0xff] }
 0x222   : > { %v3280_v24 = vpack.i.b16 %v9763_v18, %v9761_v8  ;;  %v4266_v12 = vunpack.c.l.b16 %v3406_v45  ;;  %v3604_v32 = vpack.i.b16 %v3603_v14, %v3602_v0  ;;  %v3284_v57 = vshrl.u32 %v9768_v34, 16  ;;  %v9770_v8 = vld [vmem:[#allocation16_spill] sm:$0xff]  ;;  %v9773_v16 = vld [vmem:[#allocation89_spill] sm:$0xff]  ;;  %4155 = vrot.lane.b32.xlu0 %v4150_v55, %s5420_s19 }
 0x223   : > { %v3376_v25 = vpack.i.b16 %v9767_v46, %v9765_v6  ;;  %v3285_v26 = vshrl.u32 %v9769_v60, 16  ;;  %v4307_v9 = vunpack.c.l.b16 %v3508_v29  ;;  %v3380_v62 = vshrl.u32 %v9770_v8, 16  ;;  %v9771_v18 = vld [vmem:[#allocation44_spill] sm:$0xff]  ;;  %v9774_v0 = vld [vmem:[#allocation113_spill] sm:$0xff] }
 0x224   : > { %v4089_v23 = vunpack.c.l.b16 %v3280_v24  ;;  %v4308_v4 = vunpack.c.l.b16 %v3604_v32  ;;  %v3381_v21 = vshrl.u32 %v9771_v18, 16  ;;  %v3847_v45 = vpack.i.b16 %v9773_v16, %v9772_v50 }
 0x225   : > { %v4090_v33 = vunpack.c.l.b16 %v3376_v25  ;;  %v3286_v13 = vpack.i.b16 %v3285_v26, %v3284_v57  ;;  %v3943_v39 = vpack.i.b16 %v8119_v52, %v9774_v0  ;;  %v4273_v14 = vpack.c.b16 %v4266_v12, %v4265_v35  ;;  %4225 = vrot.lane.b32.xlu1 %v4221_v36, %s5420_s19  ;;  %v9775_v35 = vld [vmem:[#allocation104_spill] sm:$0xff]  ;;  %v9776_v26 = vld [vmem:[#allocation49_spill] sm:$0xff] }
 0x226   : > { %v3382_v24 = vpack.i.b16 %v3381_v21, %v3380_v62  ;;  %v3482_v29 = vshrl.u32 %v8342_v15, 16  ;;  %v3483_v6 = vshrl.u32 %v8346_v42, 16  ;;  %v4314_v46 = vpack.c.b16 %v4308_v4, %v4307_v9  ;;  %v9777_v62 = vld [vmem:[#allocation87_spill] sm:$0xff] }
 0x227   : > { %v8400_v59 = vpack.c.b16 %v4090_v33, %v4089_v23  ;;  %v4121_v25 = vunpack.c.l.b16 %v3286_v13  ;;  %v8409_v32 = vunpack.c.l.b16 %v3847_v45  ;;  %v8411_v23 = vunpack.c.l.b16 %v3943_v39 }
 0x228   : > { %v4122_v33 = vunpack.c.l.b16 %v3382_v24  ;;  %v3484_v57 = vpack.i.b16 %v3483_v6, %v3482_v29  ;;  %v3578_v52 = vshrl.u32 %v8349_v56, 16  ;;  %v3579_v55 = vshrl.u32 %v8353_v48, 16  ;;  %4103 = vrot.lane.b32.xlu2 %v4098_v1, %s5421_s20 }
 0x229   : > { %v3920_v12 = vshrl.u32 %v9775_v35, 16  ;;  %v3921_v15 = vshrl.u32 %v9776_v26, 16  ;;  %v4016_v42 = vshrl.u32 %v9777_v62, 16  ;;  %v4017_v9 = vshrl.u32 %v8168_v44, 16 }
 0x22a   : > { %v4129_v4 = vpack.c.b16 %v4122_v33, %v4121_v25  ;;  %v4048_v21 = vpack.c.b16 %v8411_v23, %v8409_v32  ;;  %v3580_v13 = vpack.i.b16 %v3579_v55, %v3578_v52  ;;  %v1503_v36 = vrot.slane %v9768_v34, 4  ;;  %4245 = vrot.lane.b32.xlu0 %v4241_v43, %s5421_s20 }
 0x22b   : > { %v3922_v56 = vpack.i.b16 %v3921_v15, %v3920_v12  ;;  %v4018_v50 = vpack.i.b16 %v4017_v9, %v4016_v42  ;;  %v1531_v48 = vrot.slane %v9769_v60, 4  ;;  %v1559_v16 = vrot.slane %v9770_v8, 4 }
 0x22c   : > { %v4163_v45 = vunpack.c.l.b16 %v3484_v57  ;;  %v4164_v0 = vunpack.c.l.b16 %v3580_v13  ;;  %v1587_v39 = vrot.slane %v9771_v18, 4  ;;  %v1951_v24 = vrot.slane %v9756_v58, 4 }
 0x22d   : > { %v4487_v29 = vunpack.c.l.b16 %v3922_v56  ;;  %v4488_v6 = vunpack.c.l.b16 %v4018_v50  ;;  %v1504_v25 = vsel %vm1477_vm3, 0, %v1503_v36  ;;  %v1532_v32 = vsel %vm1477_vm3, 0, %v1531_v48  ;;  %4277 = vrot.lane.b32.xlu1 %v4273_v14, %s5419_s18 }
 0x22e   : > { %v4170_v1 = vpack.c.b16 %v4164_v0, %v4163_v45  ;;  %v1560_v23 = vsel %vm1477_vm3, 0, %v1559_v16  ;;  %v1588_v33 = vsel %vm1477_vm3, 0, %v1587_v39  ;;  %v3289_v52 = vpack.i.b16 %v1532_v32, %v1504_v25 }
 0x22f   : > { %v3385_v57 = vpack.i.b16 %v1588_v33, %v1560_v23  ;;  %v1952_v55 = vsel %vm1477_vm3, 0, %v1951_v24  ;;  %v1979_v12 = vrot.slane %v9757_v38, 4  ;;  %v2007_v15 = vrot.slane %v9758_v27, 4 }
 0x230   : > { %v8437_v42 = vunpack.c.l.b16 %v3289_v52  ;;  %v2035_v9 = vrot.slane %v9759_v10, 4  ;;  %v3290_v43 = vshrl.u32 %v1504_v25, 16  ;;  %v3291_v13 = vshrl.u32 %v1532_v32, 16  ;;  %4319 = vrot.lane.b32.xlu2 %v4314_v46, %s5421_s20  ;;  %v9778_v52 = vld [vmem:[#allocation109_spill] sm:$0xff]  ;;  %v9779_v25 = vld [vmem:[#allocation27_spill] sm:$0xff] }
 0x231   : > { %v8440_v36 = vunpack.c.l.b16 %v3385_v57  ;;  %v1980_v56 = vsel %vm1477_vm3, 0, %v1979_v12  ;;  %v2008_v50 = vsel %vm1477_vm3, 0, %v2007_v15  ;;  %v3386_v48 = vshrl.u32 %v1560_v23, 16  ;;  %v9780_v23 = vld [vmem:[#allocation117_spill] sm:$0xff] }
 0x232   : > { %v2036_v16 = vsel %vm1477_vm3, 0, %v2035_v9  ;;  %v3313_v45 = vpack.i.b16 %v1980_v56, %v1952_v55  ;;  %v3292_v0 = vpack.i.b16 %v3291_v13, %v3290_v43  ;;  %v3387_v39 = vshrl.u32 %v1588_v33, 16  ;;  %v4068_v9 = vpop.permute.xlu2 %4067  ;;  %4101 = vrot.lane.b32.xlu0 %v8400_v59, %s5421_s20  ;;  %v9785_v10 = vld [vmem:[#allocation105_spill] sm:$0xff] }
 0x233   : > { %v4492_v14 = vpack.c.b16 %v4488_v6, %v4487_v29  ;;  %v3409_v24 = vpack.i.b16 %v2036_v16, %v2008_v50  ;;  %v3896_v18 = vshrl.u32 %v9778_v52, 16  ;;  %v3897_v32 = vshrl.u32 %v9779_v25, 16  ;;  %v9781_v29 = vld [vmem:[#allocation115_spill] sm:$0xff]  ;;  %v9782_v6 = vld [vmem:[#allocation116_spill] sm:$0xff] }
 0x234   : > { %v4149_v57 = vpack.c.b16 %v8440_v36, %v8437_v42  ;;  %v8450_v12 = vunpack.c.l.b16 %v3313_v45  ;;  %v3388_v15 = vpack.i.b16 %v3387_v39, %v3386_v48  ;;  %v3992_v8 = vshrl.u32 %v9780_v23, 16  ;;  %v9783_v48 = vld [vmem:[#allocation91_spill] sm:$0xff]  ;;  %v9784_v45 = vld [vmem:[#allocation26_spill] sm:$0xff] }
 0x235   : > { %v8453_v60 = vunpack.c.l.b16 %v3409_v24  ;;  %v3898_v33 = vpack.i.b16 %v3897_v32, %v3896_v18  ;;  %v3993_v46 = vshrl.u32 %v8182_v2, 16  ;;  %v3871_v43 = vpack.i.b16 %v9782_v6, %v9781_v29  ;;  %4133 = vrot.lane.b32.xlu1 %v4129_v4, %s5419_s18 }
 0x236   : > { %v8461_v13 = vsel %vm4613_vm4, %v4048_v21, %v4068_v9  ;;  %v4161_v42 = vunpack.c.l.b16 %v3292_v0  ;;  %v4162_v36 = vunpack.c.l.b16 %v3388_v15  ;;  %v3967_v39 = vpack.i.b16 %v9784_v45, %v9783_v48 }
 0x237   : > { %v4293_v24 = vpack.c.b16 %v8453_v60, %v8450_v12  ;;  %v3994_v18 = vpack.i.b16 %v3993_v46, %v3992_v8  ;;  %v4343_v32 = vunpack.c.l.b16 %v3898_v33  ;;  %v8467_v34 = vunpack.c.l.b16 %v3871_v43  ;;  %v9786_v12 = vld [vmem:[#allocation114_spill] sm:$0xff] }
 0x238   : > { %v8470_v29 = vpack.c.b16 %v4162_v36, %v4161_v42  ;;  %v8472_v59 = vunpack.c.l.b16 %v3967_v39  ;;  %v3314_v21 = vshrl.u32 %v1952_v55, 16  ;;  %v3315_v9 = vshrl.u32 %v1980_v56, 16  ;;  %v9787_v46 = vld [vmem:[#allocation118_spill] sm:$0xff]  ;;  %4175 = vrot.lane.b32.xlu2 %v4170_v1, %s5421_s20 }
 0x239   : > { %v4344_v0 = vunpack.c.l.b16 %v3994_v18  ;;  %v3410_v15 = vshrl.u32 %v2008_v50, 16  ;;  %v3411_v6 = vshrl.u32 %v2036_v16, 16  ;;  %v3932_v48 = vshrl.u32 %v9785_v10, 16 }
 0x23a   : > { %v4192_v60 = vpack.c.b16 %v8472_v59, %v8467_v34  ;;  %v3316_v8 = vpack.i.b16 %v3315_v9, %v3314_v21  ;;  %v3933_v33 = vshrl.u32 %v9786_v12, 16  ;;  %v4028_v43 = vshrl.u32 %v9787_v46, 16  ;;  %v8484_v34 = vpop.permute.xlu0 %4081  ;;  %v4086_v39 = vpop.permute.xlu2 %4085  ;;  %4499 = vrot.lane.b32.xlu0 %v4492_v14, %s5419_s18 }
 0x23b   : > { %v4348_v4 = vpack.c.b16 %v4344_v0, %v4343_v32  ;;  %v3412_v42 = vpack.i.b16 %v3411_v6, %v3410_v15  ;;  %v4029_v55 = vshrl.u32 %v8154_v41, 16  ;;  %v2733_v56 = vrot.slane %v9778_v52, 4 }
 0x23c   : > { %v4305_v50 = vunpack.c.l.b16 %v3316_v8  ;;  %v3934_v16 = vpack.i.b16 %v3933_v33, %v3932_v48  ;;  %v2761_v36 = vrot.slane %v9779_v25, 4  ;;  %v2789_v45 = vrot.slane %v9780_v23, 4  ;;  %v9790_v23 = vld [vmem:[#allocation119_spill] sm:$0xff] }
 0x23d   : > { %v4306_v18 = vunpack.c.l.b16 %v3412_v42  ;;  %v4030_v59 = vpack.i.b16 %v4029_v55, %v4028_v43  ;;  %v2734_v1 = vsel %vm1477_vm3, 0, %v2733_v56  ;;  %v2817_v32 = vrot.slane %v8182_v2, 4  ;;  %4153 = vrot.lane.b32.xlu1 %v4149_v57, %s5420_s19 }
 0x23e   : > { %v8491_v21 = vsel %vm4626_vm5, %v8250_v28, %v4086_v39  ;;  %v4559_v9 = vunpack.c.l.b16 %v3934_v16  ;;  %v2762_v0 = vsel %vm1477_vm3, 0, %v2761_v36  ;;  %v2790_v15 = vsel %vm1477_vm3, 0, %v2789_v45 }
 0x23f   : > { %v4313_v6 = vpack.c.b16 %v4306_v18, %v4305_v50  ;;  %v4560_v48 = vunpack.c.l.b16 %v4030_v59  ;;  %v2818_v8 = vsel %vm1477_vm3, 0, %v2817_v32  ;;  %v3901_v33 = vpack.i.b16 %v2762_v0, %v2734_v1 }
 0x240   : > { %v3997_v43 = vpack.i.b16 %v2818_v8, %v2790_v15  ;;  %v3883_v14 = vpack.i.b16 %v7941_v40, %v7914_v51  ;;  %v3979_v28 = vpack.i.b16 %v8087_v53, %v7911_v37  ;;  %v3181_v42 = vrot.slane %v9775_v35, 4  ;;  %4297 = vrot.lane.b32.xlu2 %v4293_v24, %s5420_s19 }
 0x241   : > { %v4564_v55 = vpack.c.b16 %v4560_v48, %v4559_v9  ;;  %v8502_v56 = vunpack.c.l.b16 %v3901_v33  ;;  %v3209_v50 = vrot.slane %v9776_v26, 4  ;;  %v3237_v16 = vrot.slane %v9777_v62, 4 }
 0x242   : > { %v8506_v36 = vunpack.c.l.b16 %v3997_v43  ;;  %v4259_v45 = vunpack.c.l.b16 %v3883_v14  ;;  %v4260_v57 = vunpack.c.l.b16 %v3979_v28  ;;  %v8509_v39 = vsel %vm1477_vm3, 0, %v3181_v42  ;;  %v4212_v48 = vpop.permute.xlu0 %4211  ;;  %v4252_v33 = vpop.permute.xlu2 %4251  ;;  %v9788_v28 = vld [vmem:[#allocation108_spill] sm:$0xff]  ;;  %4173 = vrot.lane.b32.xlu0 %v8470_v29, %s5421_s20 }
 0x243   : > { %v3210_v37 = vsel %vm1477_vm3, 0, %v3209_v50  ;;  %v3238_v51 = vsel %vm1477_vm3, 0, %v3237_v16  ;;  %v3265_v40 = vrot.slane %v8168_v44, 4  ;;  %v3902_v53 = vshrl.u32 %v2734_v1, 16  ;;  %v4232_v50 = vpop.permute.xlu1 %4231 }
 0x244   : > { %v4368_v18 = vpack.c.b16 %v8506_v36, %v8502_v56  ;;  %v4264_v59 = vpack.c.b16 %v4260_v57, %v4259_v45  ;;  %v3925_v32 = vpack.i.b16 %v3210_v37, %v8509_v39  ;;  %v3903_v9 = vshrl.u32 %v2762_v0, 16  ;;  %v9789_v57 = vld [vmem:[#allocation107_spill] sm:$0xff] }
 0x245   : > { %v3266_v43 = vsel %vm1477_vm3, 0, %v3265_v40  ;;  %v3998_v14 = vshrl.u32 %v2790_v15, 16  ;;  %v3999_v24 = vshrl.u32 %v2818_v8, 16  ;;  %v3908_v42 = vshrl.u32 %v9788_v28, 16  ;;  %4355 = vrot.lane.b32.xlu1 %v4348_v4, %s5419_s18 }
 0x246   : > { %v4691_v1 = vsel %vm4613_vm4, %v4192_v60, %v4212_v48  ;;  %v4021_v16 = vpack.i.b16 %v3266_v43, %v3238_v51  ;;  %v4507_v56 = vunpack.c.l.b16 %v3925_v32  ;;  %v3904_v36 = vpack.i.b16 %v3903_v9, %v3902_v53 }
 0x247   : > { %v4699_v45 = vsel %vm4626_vm5, %v4691_v1, %v4232_v50  ;;  %v4000_v0 = vpack.i.b16 %v3999_v24, %v3998_v14  ;;  %v3909_v2 = vshrl.u32 %v9789_v57, 16  ;;  %v4004_v40 = vshrl.u32 %v9790_v23, 16 }
 0x248   : > { %v4710_v15 = vsel %vm4635_vm6, %v4699_v45, %v4252_v33  ;;  %v4508_v8 = vunpack.c.l.b16 %v4021_v16  ;;  %v4383_v25 = vunpack.c.l.b16 %v3904_v36  ;;  %v4005_v29 = vshrl.u32 %v8185_v3, 16  ;;  %4317 = vrot.lane.b32.xlu2 %v4313_v6, %s5421_s20 }
 0x249   : > { %4912 = vmatpush.bf16.msra.mxu2 %v4710_v15  ;;  %v4384_v60 = vunpack.c.l.b16 %v4000_v0  ;;  %v3910_v48 = vpack.i.b16 %v3909_v2, %v3908_v42  ;;  %v3679_v53 = vpack.i.b16 %v7641_v17, %v7670_v49  ;;  %v3775_v32 = vpack.i.b16 %v7837_v22, %v7727_v5 }
 0x24a   : > { %v4512_v9 = vpack.c.b16 %v4508_v8, %v4507_v56  ;;  %v4006_v14 = vpack.i.b16 %v4005_v29, %v4004_v40  ;;  %v3859_v4 = vpack.i.b16 %v7954_v7, %v8143_v30  ;;  %v3955_v33 = vpack.i.b16 %v8150_v31, %v8147_v19  ;;  %v4284_v5 = vpop.permute.xlu0 %4283  ;;  %v4304_v22 = vpop.permute.xlu2 %4303  ;;  %4571 = vrot.lane.b32.xlu0 %v4564_v55, %s5419_s18 }
 0x24b   : > { %v4388_v24 = vpack.c.b16 %v4384_v60, %v4383_v25  ;;  %v4415_v1 = vunpack.c.l.b16 %v3910_v48  ;;  %v4185_v50 = vunpack.c.l.b16 %v3679_v53  ;;  %v4186_v2 = vunpack.c.l.b16 %v3775_v32  ;;  %v4088_v19 = vpop.permute.xlu1 %4087 }
 0x24c   : > { %v4416_v42 = vunpack.c.l.b16 %v4006_v14  ;;  %v4115_v16 = vunpack.c.l.b16 %v3859_v4  ;;  %v4116_v17 = vunpack.c.l.b16 %v3955_v33  ;;  %v3926_v49 = vshrl.u32 %v8509_v39, 16 }
 0x24d   : > { %v4191_v56 = vpack.c.b16 %v4186_v2, %v4185_v50  ;;  %v3927_v36 = vshrl.u32 %v3210_v37, 16  ;;  %v4022_v45 = vshrl.u32 %v3238_v51, 16  ;;  %v4023_v7 = vshrl.u32 %v3266_v43, 16  ;;  %4375 = vrot.lane.b32.xlu1 %v4368_v18, %s5420_s19 }
 0x24e   : > { %v4723_v30 = vsel %vm4613_vm4, %v4264_v59, %v4284_v5  ;;  %v4420_v31 = vpack.c.b16 %v4416_v42, %v4415_v1  ;;  %v4120_v25 = vpack.c.b16 %v4116_v17, %v4115_v16  ;;  %v3183_v6 = vrot.slane %v9785_v10, 4 }
 0x24f   : > { %v8543_v0 = vsel %vm4626_vm5, %v4723_v30, %v4304_v22  ;;  %v4634_v39 = vsel %vm4626_vm5, %v8461_v13, %v4088_v19  ;;  %v3928_v40 = vpack.i.b16 %v3927_v36, %v3926_v49  ;;  %v4024_v15 = vpack.i.b16 %v4023_v7, %v4022_v45 }
 0x250   : > { %v3184_v37 = vsel %vm1477_vm3, 0, %v3183_v6  ;;  %v3211_v55 = vrot.slane %v9786_v12, 4  ;;  %v3239_v51 = vrot.slane %v9787_v46, 4  ;;  %v3267_v59 = vrot.slane %v8154_v41, 4  ;;  %4519 = vrot.lane.b32.xlu2 %v4512_v9, %s5420_s19 }
 0x251   : > { %v4527_v43 = vunpack.c.l.b16 %v3928_v40  ;;  %v4528_v8 = vunpack.c.l.b16 %v4024_v15  ;;  %v3938_v29 = vshrl.u32 %v3184_v37, 16  ;;  %v2735_v60 = vrot.slane %v9788_v28, 4 }
 0x252   : > { %v3212_v48 = vsel %vm1477_vm3, 0, %v3211_v55  ;;  %v3240_v13 = vsel %vm1477_vm3, 0, %v3239_v51  ;;  %v3268_v53 = vsel %vm1477_vm3, 0, %v3267_v59  ;;  %v2763_v18 = vrot.slane %v9789_v57, 4  ;;  %v4210_v16 = vpop.permute.xlu2 %4209  ;;  %v4108_v17 = vpop.permute.xlu0 %4107  ;;  %4395 = vrot.lane.b32.xlu0 %v4388_v24, %s5421_s20  ;;  %v9791_v59 = vld [vmem:[#allocation11_spill] sm:$0xff] }
 0x253   : > { %v4532_v32 = vpack.c.b16 %v4528_v8, %v4527_v43  ;;  %v3939_v14 = vshrl.u32 %v3212_v48, 16  ;;  %v4034_v4 = vshrl.u32 %v3240_v13, 16  ;;  %v4035_v33 = vshrl.u32 %v3268_v53, 16  ;;  %v4140_v45 = vpop.permute.xlu1 %4139 }
 0x254   : > { %v2736_v1 = vsel %vm1477_vm3, 0, %v2735_v60  ;;  %v2764_v50 = vsel %vm1477_vm3, 0, %v2763_v18  ;;  %v2791_v2 = vrot.slane %v9790_v23, 4  ;;  %v2819_v42 = vrot.slane %v8185_v3, 4  ;;  %v9793_v60 = vld [vmem:[#allocation99_spill] sm:$0xff] }
 0x255   : > { %v3940_v49 = vpack.i.b16 %v3939_v14, %v3938_v29  ;;  %v4036_v5 = vpack.i.b16 %v4035_v33, %v4034_v4  ;;  %v3913_v22 = vpack.i.b16 %v2764_v50, %v2736_v1  ;;  %v3937_v36 = vpack.i.b16 %v3212_v48, %v3184_v37  ;;  %4427 = vrot.lane.b32.xlu1 %v4420_v31, %s5419_s18  ;;  %v9794_v14 = vld [vmem:[#allocation84_spill] sm:$0xff] }
 0x256   : > { %v4688_v9 = vsel %vm4613_vm4, %v4191_v56, %v4210_v16  ;;  %v4646_v7 = vsel %vm4635_vm6, %v4634_v39, %v4108_v17  ;;  %v2792_v30 = vsel %vm1477_vm3, 0, %v2791_v2  ;;  %v2820_v19 = vsel %vm1477_vm3, 0, %v2819_v42  ;;  %v9792_v39 = vld [vmem:[#allocation43_spill] sm:$0xff] }
 0x257   : > { %v4659_v6 = vsel %vm4613_vm4, %v4120_v25, %v4140_v45  ;;  %4884 = vmatpush.bf16.msra.mxu0 %v4646_v7  ;;  %v4599_v40 = vunpack.c.l.b16 %v3940_v49  ;;  %v4600_v15 = vunpack.c.l.b16 %v4036_v5  ;;  %v4009_v55 = vpack.i.b16 %v2820_v19, %v2792_v30 }
 0x258   : > { %v4435_v37 = vunpack.c.l.b16 %v3913_v22  ;;  %v4033_v51 = vpack.i.b16 %v3268_v53, %v3240_v13  ;;  %v4579_v24 = vunpack.c.l.b16 %v3937_v36  ;;  %v3704_v56 = vshrl.u32 %v9791_v59, 16  ;;  %4539 = vrot.lane.b32.xlu2 %v4532_v32, %s5421_s20 }
 0x259   : > { %v4604_v43 = vpack.c.b16 %v4600_v15, %v4599_v40  ;;  %v4436_v8 = vunpack.c.l.b16 %v4009_v55  ;;  %v3705_v29 = vshrl.u32 %v9792_v39, 16  ;;  %v3800_v48 = vshrl.u32 %v9793_v60, 16  ;;  %v9796_v55 = vld [vmem:[#allocation40_spill] sm:$0xff] }
 0x25a   : > { %v4580_v18 = vunpack.c.l.b16 %v4033_v51  ;;  %v3801_v25 = vshrl.u32 %v9794_v14, 16  ;;  %v3914_v4 = vshrl.u32 %v2736_v1, 16  ;;  %v3915_v33 = vshrl.u32 %v2764_v50, 16  ;;  %v4230_v5 = vpop.permute.xlu2 %4229  ;;  %v9795_v1 = vld [vmem:[#allocation57_spill] sm:$0xff] }
 0x25b   : > { %v4440_v2 = vpack.c.b16 %v4436_v8, %v4435_v37  ;;  %v3706_v31 = vpack.i.b16 %v3705_v29, %v3704_v56  ;;  %v4010_v42 = vshrl.u32 %v2792_v30, 16  ;;  %v4011_v13 = vshrl.u32 %v2820_v19, 16  ;;  %4611 = vrot.lane.b32.xlu0 %v4604_v43, %s5421_s20  ;;  %v9799_v56 = vld [vmem:[#allocation55_spill] sm:$0xff]  ;;  %v9800_v8 = vld [vmem:[#allocation18_spill] sm:$0xff] }
 0x25c   : > { %v4584_v53 = vpack.c.b16 %v4580_v18, %v4579_v24  ;;  %v3802_v16 = vpack.i.b16 %v3801_v25, %v3800_v48  ;;  %v3916_v17 = vpack.i.b16 %v3915_v33, %v3914_v4  ;;  %v3691_v49 = vpack.i.b16 %v7646_v47, %v7655_v54  ;;  %v9797_v54 = vld [vmem:[#allocation98_spill] sm:$0xff]  ;;  %v4324_v51 = vpop.permute.xlu0 %4323 }
 0x25d   : > { %v4341_v22 = vunpack.c.l.b16 %v3706_v31  ;;  %v4012_v36 = vpack.i.b16 %v4011_v13, %v4010_v42  ;;  %v3787_v45 = vpack.i.b16 %v7799_v11, %v7731_v20  ;;  %v3728_v50 = vshrl.u32 %v9795_v1, 16  ;;  %4447 = vrot.lane.b32.xlu1 %v4440_v2, %s5420_s19  ;;  %v9798_v11 = vld [vmem:[#allocation79_spill] sm:$0xff]  ;;  %v9801_v42 = vld [vmem:[#allocation96_spill] sm:$0xff] }
 0x25e   : > { %v8581_v32 = vsel %vm4626_vm5, %v4688_v9, %v4230_v5  ;;  %v4342_v7 = vunpack.c.l.b16 %v3802_v16  ;;  %v4455_v30 = vunpack.c.l.b16 %v3916_v17  ;;  %v4257_v19 = vunpack.c.l.b16 %v3691_v49  ;;  %v4160_v4 = vpop.permute.xlu1 %4159  ;;  %v9802_v13 = vld [vmem:[#allocation95_spill] sm:$0xff] }
 0x25f   : > { %v4456_v40 = vunpack.c.l.b16 %v4012_v36  ;;  %v4258_v15 = vunpack.c.l.b16 %v3787_v45  ;;  %v3729_v47 = vshrl.u32 %v9796_v55, 16  ;;  %v3824_v37 = vshrl.u32 %v9797_v54, 16 }
 0x260   : > { %v4347_v20 = vpack.c.b16 %v4342_v7, %v4341_v22  ;;  %v3825_v24 = vshrl.u32 %v9798_v11, 16  ;;  %v3740_v43 = vshrl.u32 %v9799_v56, 16  ;;  %v3741_v9 = vshrl.u32 %v9800_v8, 16  ;;  %4591 = vrot.lane.b32.xlu2 %v4584_v53, %s5420_s19 }
 0x261   : > { %v4742_v29 = vsel %vm4635_vm6, %v8543_v0, %v4324_v51  ;;  %v4460_v48 = vpack.c.b16 %v4456_v40, %v4455_v30  ;;  %v4263_v18 = vpack.c.b16 %v4258_v15, %v4257_v19  ;;  %v3730_v25 = vpack.i.b16 %v3729_v47, %v3728_v50 }
 0x262   : > { %4926 = vmatpush.bf16.msra.mxu3 %v4742_v29  ;;  %v3826_v33 = vpack.i.b16 %v3825_v24, %v3824_v37  ;;  %v3742_v31 = vpack.i.b16 %v3741_v9, %v3740_v43  ;;  %v3836_v2 = vshrl.u32 %v9801_v42, 16  ;;  %v3837_v16 = vshrl.u32 %v9802_v13, 16  ;;  %v4282_v7 = vpop.permute.xlu2 %4281  ;;  %v9803_v43 = vld [vmem:[#allocation5_spill] sm:$0xff] }
 0x263   : > { %v4667_v17 = vsel %vm4626_vm5, %v4659_v6, %v4160_v4  ;;  %v4485_v49 = vunpack.c.l.b16 %v3730_v25  ;;  %v2621_v5 = vrot.slane %v9791_v59, 4  ;;  %v2649_v0 = vrot.slane %v9792_v39, 4  ;;  %4353 = vrot.lane.b32.xlu0 %v4347_v20, %s5419_s18  ;;  %v9804_v9 = vld [vmem:[#allocation41_spill] sm:$0xff] }
 0x264   : > { %v4486_v22 = vunpack.c.l.b16 %v3826_v33  ;;  %v3838_v36 = vpack.i.b16 %v3837_v16, %v3836_v2  ;;  %v4557_v45 = vunpack.c.l.b16 %v3742_v31  ;;  %v2677_v50 = vrot.slane %v9793_v60, 4  ;;  %v4180_v4 = vpop.permute.xlu0 %4179 }
 0x265   : > { %v2622_v30 = vsel %vm1477_vm3, 0, %v2621_v5  ;;  %v2650_v19 = vsel %vm1477_vm3, 0, %v2649_v0  ;;  %v2705_v40 = vrot.slane %v9794_v14, 4  ;;  %v3667_v6 = vpack.i.b16 %v9732_v61, %v9731_v63  ;;  %4467 = vrot.lane.b32.xlu1 %v4460_v48, %s5421_s20 }
 0x266   : > { %v4720_v53 = vsel %vm4613_vm4, %v4263_v18, %v4282_v7  ;;  %v4491_v15 = vpack.c.b16 %v4486_v22, %v4485_v49  ;;  %v4558_v47 = vunpack.c.l.b16 %v3838_v36  ;;  %v2678_v37 = vsel %vm1477_vm3, 0, %v2677_v50 }
 0x267   : > { %v2706_v51 = vsel %vm1477_vm3, 0, %v2705_v40  ;;  %v3709_v24 = vpack.i.b16 %v2650_v19, %v2622_v30  ;;  %v3763_v29 = vpack.i.b16 %v9804_v9, %v9803_v43  ;;  %v4113_v25 = vunpack.c.l.b16 %v3667_v6  ;;  %v4250_v49 = vpop.permute.xlu1 %4249 }
 0x268   : > { %v4563_v33 = vpack.c.b16 %v4558_v47, %v4557_v45  ;;  %v3805_v63 = vpack.i.b16 %v2706_v51, %v2678_v37  ;;  %v3069_v61 = vrot.slane %v9795_v1, 4  ;;  %v3097_v20 = vrot.slane %v9796_v55, 4  ;;  %4497 = vrot.lane.b32.xlu2 %v4491_v15, %s5419_s18 }
 0x269   : > { %v4678_v18 = vsel %vm4635_vm6, %v4667_v17, %v4180_v4  ;;  %v4361_v31 = vunpack.c.l.b16 %v3709_v24  ;;  %v4114_v2 = vunpack.c.l.b16 %v3763_v29  ;;  %v3125_v16 = vrot.slane %v9797_v54, 4 }
 0x26a   : > { %4898 = vmatpush.bf16.msra.mxu1 %v4678_v18  ;;  %v4362_v5 = vunpack.c.l.b16 %v3805_v63  ;;  %v3070_v0 = vsel %vm1477_vm3, 0, %v3069_v61  ;;  %v3098_v48 = vsel %vm1477_vm3, 0, %v3097_v20  ;;  %v3153_v22 = vrot.slane %v9798_v11, 4  ;;  %v4138_v24 = vpop.permute.xlu2 %4137  ;;  %v9806_v61 = vld [vmem:[#allocation62_spill] sm:$0xff] }
 0x26b   : > { %v4707_v36 = vsel %vm4635_vm6, %v8581_v32, %v4250_v49  ;;  %v4119_v45 = vpack.c.b16 %v4114_v2, %v4113_v25  ;;  %v3126_v17 = vsel %vm1477_vm3, 0, %v3125_v16  ;;  %v3733_v50 = vpack.i.b16 %v3098_v48, %v3070_v0  ;;  %4569 = vrot.lane.b32.xlu0 %v4563_v33, %s5419_s18  ;;  %v9805_v25 = vld [vmem:[#allocation58_spill] sm:$0xff]  ;;  %v9807_v2 = vld [vmem:[#allocation97_spill] sm:$0xff]  ;;  %v9810_v33 = vld [vmem:[#allocation80_spill] sm:$0xff] }
 0x26c   : > { %4913 = vmatpush.bf16.msra.mxu2 %v4707_v36  ;;  %v4367_v7 = vpack.c.b16 %v4362_v5, %v4361_v31  ;;  %v3154_v40 = vsel %vm1477_vm3, 0, %v3153_v22  ;;  %v3710_v6 = vshrl.u32 %v2622_v30, 16  ;;  %v3711_v47 = vshrl.u32 %v2650_v19, 16  ;;  %v9808_v30 = vld [vmem:[#allocation100_spill] sm:$0xff]  ;;  %v4302_v49 = vpop.permute.xlu0 %4301  ;;  %v9809_v5 = vld [vmem:[#allocation66_spill] sm:$0xff]  ;;  %v9811_v36 = vld [vmem:[#allocation93_spill] sm:$0xff] }
 0x26d   : > { %v3829_v43 = vpack.i.b16 %v3154_v40, %v3126_v17  ;;  %v4505_v9 = vunpack.c.l.b16 %v3733_v50  ;;  %v3806_v29 = vshrl.u32 %v2678_v37, 16  ;;  %v3807_v4 = vshrl.u32 %v2706_v51, 16 }
 0x26e   : > { %v4656_v32 = vsel %vm4613_vm4, %v4119_v45, %v4138_v24  ;;  %v3712_v15 = vpack.i.b16 %v3711_v47, %v3710_v6  ;;  %v3716_v63 = vshrl.u32 %v9805_v25, 16  ;;  %v3717_v20 = vshrl.u32 %v9806_v61, 16  ;;  %4373 = vrot.lane.b32.xlu1 %v4367_v7, %s5420_s19  ;;  %v9812_v45 = vld [vmem:[#allocation72_spill] sm:$0xff] }
 0x26f   : > { %v4506_v18 = vunpack.c.l.b16 %v3829_v43  ;;  %v3808_v31 = vpack.i.b16 %v3807_v4, %v3806_v29  ;;  %v3812_v16 = vshrl.u32 %v9807_v2, 16  ;;  %v3813_v19 = vshrl.u32 %v9808_v30, 16  ;;  %v4106_v29 = vpop.permute.xlu1 %4105 }
 0x270   : > { %v4381_v37 = vunpack.c.l.b16 %v3712_v15  ;;  %v3718_v51 = vpack.i.b16 %v3717_v20, %v3716_v63  ;;  %v3487_v22 = vpack.i.b16 %v9810_v33, %v9809_v5  ;;  %v3583_v50 = vpack.i.b16 %v9812_v45, %v9811_v36 }
 0x271   : > { %v4729_v6 = vsel %vm4626_vm5, %v4720_v53, %v4302_v49  ;;  %v4511_v47 = vpack.c.b16 %v4506_v18, %v4505_v9  ;;  %v4382_v24 = vunpack.c.l.b16 %v3808_v31  ;;  %v3814_v43 = vpack.i.b16 %v3813_v19, %v3812_v16 }
 0x272   : > { %v4413_v4 = vunpack.c.l.b16 %v3718_v51  ;;  %v4183_v39 = vunpack.c.l.b16 %v3487_v22  ;;  %v4184_v59 = vunpack.c.l.b16 %v3583_v50  ;;  %v3734_v14 = vshrl.u32 %v3070_v0, 16  ;;  %v4158_v31 = vpop.permute.xlu2 %4157 }
 0x273   : > { %v4643_v7 = vsel %vm4635_vm6, %v8491_v21, %v4106_v29  ;;  %4517 = vrot.lane.b32.xlu2 %v4511_v47, %s5420_s19  ;;  %v4387_v15 = vpack.c.b16 %v4382_v24, %v4381_v37  ;;  %v4414_v63 = vunpack.c.l.b16 %v3814_v43  ;;  %v3735_v20 = vshrl.u32 %v3098_v48, 16 }
 0x274   : > { %4885 = vmatpush.bf16.msra.mxu0 %v4643_v7  ;;  %v4190_v5 = vpack.c.b16 %v4184_v59, %v4183_v39  ;;  %v3830_v33 = vshrl.u32 %v3126_v17, 16  ;;  %v3831_v53 = vshrl.u32 %v3154_v40, 16  ;;  %v3071_v9 = vrot.slane %v9799_v56, 4  ;;  %v4208_v37 = vpop.permute.xlu0 %4207 }
 0x275   : > { %v4419_v18 = vpack.c.b16 %v4414_v63, %v4413_v4  ;;  %v3736_v16 = vpack.i.b16 %v3735_v20, %v3734_v14  ;;  %v3099_v19 = vrot.slane %v9800_v8, 4  ;;  %v3127_v0 = vrot.slane %v9801_v42, 4  ;;  %4393 = vrot.lane.b32.xlu0 %v4387_v15, %s5421_s20 }
 0x276   : > { %v8642_v21 = vsel %vm4626_vm5, %v4656_v32, %v4158_v31  ;;  %v3832_v49 = vpack.i.b16 %v3831_v53, %v3830_v33  ;;  %v3072_v48 = vsel %vm1477_vm3, 0, %v3071_v9  ;;  %v3155_v59 = vrot.slane %v9802_v13, 4 }
 0x277   : > { %v4525_v39 = vunpack.c.l.b16 %v3736_v16  ;;  %v3100_v17 = vsel %vm1477_vm3, 0, %v3099_v19  ;;  %v3128_v40 = vsel %vm1477_vm3, 0, %v3127_v0  ;;  %v3746_v14 = vshrl.u32 %v3072_v48, 16  ;;  %4425 = vrot.lane.b32.xlu1 %v4419_v18, %s5419_s18  ;;  %v4322_v43 = vpop.permute.xlu1 %4321 }
 0x278   : > { %v4526_v51 = vunpack.c.l.b16 %v3832_v49  ;;  %v3156_v22 = vsel %vm1477_vm3, 0, %v3155_v59  ;;  %v3747_v36 = vshrl.u32 %v3100_v17, 16  ;;  %v3842_v32 = vshrl.u32 %v3128_v40, 16 }
 0x279   : > { %v4685_v45 = vsel %vm4613_vm4, %v4190_v5, %v4208_v37  ;;  %v3843_v50 = vshrl.u32 %v3156_v22, 16  ;;  %v2623_v47 = vrot.slane %v9805_v25, 4  ;;  %v2651_v24 = vrot.slane %v9806_v61, 4  ;;  %v9814_v37 = vld [vmem:[#allocation81_spill] sm:$0xff] }
 0x27a   : > { %v4531_v29 = vpack.c.b16 %v4526_v51, %v4525_v39  ;;  %v3748_v4 = vpack.i.b16 %v3747_v36, %v3746_v14  ;;  %v2679_v7 = vrot.slane %v9807_v2, 4  ;;  %v2707_v15 = vrot.slane %v9808_v30, 4  ;;  %v4248_v0 = vpop.permute.xlu2 %4247  ;;  %v9813_v39 = vld [vmem:[#allocation77_spill] sm:$0xff]  ;;  %v9815_v36 = vld [vmem:[#allocation71_spill] sm:$0xff] }
 0x27b   : > { %v4739_v63 = vsel %vm4635_vm6, %v4729_v6, %v4322_v43  ;;  %v3844_v20 = vpack.i.b16 %v3843_v50, %v3842_v32  ;;  %v2624_v33 = vsel %vm1477_vm3, 0, %v2623_v47  ;;  %v2652_v53 = vsel %vm1477_vm3, 0, %v2651_v24 }
 0x27c   : > { %4927 = vmatpush.bf16.msra.mxu3 %v4739_v63  ;;  %4537 = vrot.lane.b32.xlu2 %v4531_v29, %s5421_s20  ;;  %v4597_v5 = vunpack.c.l.b16 %v3748_v4  ;;  %v2680_v9 = vsel %vm1477_vm3, 0, %v2679_v7  ;;  %v2708_v18 = vsel %vm1477_vm3, 0, %v2707_v15  ;;  %v3721_v31 = vpack.i.b16 %v2652_v53, %v2624_v33  ;;  %v4228_v29 = vpop.permute.xlu0 %4227  ;;  %v9816_v7 = vld [vmem:[#allocation90_spill] sm:$0xff] }
 0x27d   : > { %v4598_v16 = vunpack.c.l.b16 %v3844_v20  ;;  %v3817_v19 = vpack.i.b16 %v2708_v18, %v2680_v9  ;;  %v3745_v49 = vpack.i.b16 %v3100_v17, %v3072_v48  ;;  %v3841_v59 = vpack.i.b16 %v3156_v22, %v3128_v40 }
 0x27e   : > { %v4433_v6 = vunpack.c.l.b16 %v3721_v31  ;;  %v3512_v14 = vshrl.u32 %v9813_v39, 16  ;;  %v3513_v51 = vshrl.u32 %v9814_v37, 16  ;;  %v3608_v32 = vshrl.u32 %v9815_v36, 16 }
 0x27f   : > { %v4603_v50 = vpack.c.b16 %v4598_v16, %v4597_v5  ;;  %v4434_v47 = vunpack.c.l.b16 %v3817_v19  ;;  %v4577_v24 = vunpack.c.l.b16 %v3745_v49  ;;  %v4578_v43 = vunpack.c.l.b16 %v3841_v59  ;;  %v4178_v31 = vpop.permute.xlu1 %4177  ;;  %v9818_v59 = vld [vmem:[#allocation28_spill] sm:$0xff] }
 0x280   : > { %v3514_v4 = vpack.i.b16 %v3513_v51, %v3512_v14  ;;  %v3609_v15 = vshrl.u32 %v9816_v7, 16  ;;  %v3722_v63 = vshrl.u32 %v2624_v33, 16  ;;  %v3723_v20 = vshrl.u32 %v2652_v53, 16  ;;  %v9817_v53 = vld [vmem:[#allocation67_spill] sm:$0xff]  ;;  %v9819_v14 = vld [vmem:[#allocation8_spill] sm:$0xff] }
 0x281   : > { %4609 = vrot.lane.b32.xlu0 %v4603_v50, %s5421_s20  ;;  %v4439_v48 = vpack.c.b16 %v4434_v47, %v4433_v6  ;;  %v4695_v17 = vsel %vm4626_vm5, %v4685_v45, %v4228_v29  ;;  %v4583_v40 = vpack.c.b16 %v4578_v43, %v4577_v24  ;;  %v3818_v22 = vshrl.u32 %v2680_v9, 16  ;;  %v9820_v45 = vld [vmem:[#allocation94_spill] sm:$0xff] }
 0x282   : > { %v4704_v61 = vsel %vm4635_vm6, %v4695_v17, %v4248_v0  ;;  %v3610_v5 = vpack.i.b16 %v3609_v15, %v3608_v32  ;;  %v4339_v16 = vunpack.c.l.b16 %v3514_v4  ;;  %v3724_v19 = vpack.i.b16 %v3723_v20, %v3722_v63  ;;  %v9821_v32 = vld [vmem:[#allocation78_spill] sm:$0xff]  ;;  %v4104_v29 = vpop.permute.xlu2 %4103  ;;  %v9824_v63 = vld [vmem:[#allocation29_spill] sm:$0xff] }
 0x283   : > { %4445 = vrot.lane.b32.xlu1 %v4439_v48, %s5420_s19  ;;  %v4675_v49 = vsel %vm4635_vm6, %v8642_v21, %v4178_v31  ;;  %4914 = vmatpush.bf16.msra.mxu2 %v4704_v61  ;;  %v3819_v33 = vshrl.u32 %v2708_v18, 16  ;;  %v3499_v6 = vpack.i.b16 %v9818_v59, %v9817_v53  ;;  %v3595_v51 = vpack.i.b16 %v9820_v45, %v9819_v14  ;;  %v9822_v47 = vld [vmem:[#allocation22_spill] sm:$0xff]  ;;  %v9823_v18 = vld [vmem:[#allocation35_spill] sm:$0xff]  ;;  %v9825_v17 = vld [vmem:[#allocation13_spill] sm:$0xff] }
 0x284   : > { %4899 = vmatpush.bf16.msra.mxu1 %v4675_v49  ;;  %4589 = vrot.lane.b32.xlu2 %v4583_v40, %s5420_s19  ;;  %v4340_v9 = vunpack.c.l.b16 %v3610_v5  ;;  %v4453_v0 = vunpack.c.l.b16 %v3724_v19  ;;  %v3536_v50 = vshrl.u32 %v9821_v32, 16  ;;  %v3537_v24 = vshrl.u32 %v9822_v47, 16  ;;  %v9826_v19 = vld [vmem:[#allocation74_spill] sm:$0xff]  ;;  %v9827_v53 = vld [vmem:[#allocation73_spill] sm:$0xff]  ;;  %v9828_v14 = vld [vmem:[#allocation88_spill] sm:$0xff] }
 0x285   : > { %v3820_v43 = vpack.i.b16 %v3819_v33, %v3818_v22  ;;  %v4255_v21 = vunpack.c.l.b16 %v3499_v6  ;;  %v4256_v61 = vunpack.c.l.b16 %v3595_v51  ;;  %v3632_v4 = vshrl.u32 %v9823_v18, 16  ;;  %v4280_v22 = vpop.permute.xlu0 %4279  ;;  %v9829_v51 = vld [vmem:[#allocation4_spill] sm:$0xff] }
 0x286   : > { %v4346_v15 = vpack.c.b16 %v4340_v9, %v4339_v16  ;;  %v4640_v20 = vsel %vm4635_vm6, %v9824_v63, %v4104_v29  ;;  %v3538_v48 = vpack.i.b16 %v3537_v24, %v3536_v50  ;;  %v3633_v31 = vshrl.u32 %v9825_v17, 16 }
 0x287   : > { %v4454_v40 = vunpack.c.l.b16 %v3820_v43  ;;  %v4262_v5 = vpack.c.b16 %v4256_v61, %v4255_v21  ;;  %4886 = vmatpush.bf16.msra.mxu0 %v4640_v20  ;;  %v3548_v49 = vshrl.u32 %v9826_v19, 16  ;;  %v3549_v59 = vshrl.u32 %v9827_v53, 16  ;;  %v4300_v29 = vpop.permute.xlu1 %4299 }
 0x288   : > { %v3634_v33 = vpack.i.b16 %v3633_v31, %v3632_v4  ;;  %v4483_v6 = vunpack.c.l.b16 %v3538_v48  ;;  %v3644_v45 = vshrl.u32 %v9828_v14, 16  ;;  %v3645_v16 = vshrl.u32 %v9829_v51, 16 }
 0x289   : > { %4351 = vrot.lane.b32.xlu0 %v4346_v15, %s5419_s18  ;;  %v4459_v9 = vpack.c.b16 %v4454_v40, %v4453_v0  ;;  %v4717_v50 = vsel %vm4613_vm4, %v4262_v5, %v4280_v22  ;;  %v3550_v24 = vpack.i.b16 %v3549_v59, %v3548_v49  ;;  %v2509_v43 = vrot.slane %v9813_v39, 4  ;;  %v9837_v39 = vld [vmem:[#allocation59_spill] sm:$0xff] }
 0x28a   : > { %v4484_v21 = vunpack.c.l.b16 %v3634_v33  ;;  %v3646_v61 = vpack.i.b16 %v3645_v16, %v3644_v45  ;;  %v2537_v63 = vrot.slane %v9814_v37, 4  ;;  %v2565_v4 = vrot.slane %v9815_v36, 4  ;;  %v4320_v33 = vpop.permute.xlu2 %4319  ;;  %v9830_v45 = vld [vmem:[#allocation69_spill] sm:$0xff]  ;;  %v9831_v16 = vld [vmem:[#allocation68_spill] sm:$0xff]  ;;  %v9832_v37 = vld [vmem:[#allocation86_spill] sm:$0xff] }
 0x28b   : > { %4465 = vrot.lane.b32.xlu1 %v4459_v9, %s5421_s20  ;;  %v4727_v20 = vsel %vm4626_vm5, %v4717_v50, %v4300_v29  ;;  %v4555_v48 = vunpack.c.l.b16 %v3550_v24  ;;  %v2510_v15 = vsel %vm1477_vm3, 0, %v2509_v43  ;;  %v2593_v0 = vrot.slane %v9816_v7, 4  ;;  %v9833_v50 = vld [vmem:[#allocation31_spill] sm:$0xff] }
 0x28c   : > { %v4490_v31 = vpack.c.b16 %v4484_v21, %v4483_v6  ;;  %v4556_v40 = vunpack.c.l.b16 %v3646_v61  ;;  %v2538_v5 = vsel %vm1477_vm3, 0, %v2537_v63  ;;  %v2566_v49 = vsel %vm1477_vm3, 0, %v2565_v4  ;;  %v9834_v6 = vld [vmem:[#allocation46_spill] sm:$0xff]  ;;  %v9836_v63 = vld [vmem:[#allocation15_spill] sm:$0xff] }
 0x28d   : > { %v2594_v59 = vsel %vm1477_vm3, 0, %v2593_v0  ;;  %v3517_v22 = vpack.i.b16 %v2538_v5, %v2510_v15  ;;  %v3475_v9 = vpack.i.b16 %v9831_v16, %v9830_v45  ;;  %v3571_v24 = vpack.i.b16 %v9833_v50, %v9832_v37  ;;  %v9835_v21 = vld [vmem:[#allocation50_spill] sm:$0xff]  ;;  %v4136_v45 = vpop.permute.xlu0 %4135 }
 0x28e   : > { %4495 = vrot.lane.b32.xlu2 %v4490_v31, %s5419_s18  ;;  %v4562_v43 = vpack.c.b16 %v4556_v40, %v4555_v48  ;;  %v3613_v29 = vpack.i.b16 %v2594_v59, %v2566_v49  ;;  %v3295_v61 = vpack.i.b16 %v9835_v21, %v9834_v6  ;;  %v3391_v4 = vpack.i.b16 %v9837_v39, %v9836_v63 }
 0x28f   : > { %v4359_v7 = vunpack.c.l.b16 %v3517_v22  ;;  %v4111_v0 = vunpack.c.l.b16 %v3475_v9  ;;  %v4112_v36 = vunpack.c.l.b16 %v3571_v24  ;;  %v4736_v25 = vsel %vm4635_vm6, %v4727_v20, %v4320_v33  ;;  %v4206_v50 = vpop.permute.xlu1 %4205 }
 0x290   : > { %v4360_v30 = vunpack.c.l.b16 %v3613_v29  ;;  %v4181_v16 = vunpack.c.l.b16 %v3295_v61  ;;  %v4182_v2 = vunpack.c.l.b16 %v3391_v4  ;;  %4928 = vmatpush.bf16.msra.mxu3 %v4736_v25  ;;  %v2957_v37 = vrot.slane %v9821_v32, 4  ;;  %v9838_v61 = vld [vmem:[#allocation75_spill] sm:$0xff] }
 0x291   : > { %4567 = vrot.lane.b32.xlu0 %v4562_v43, %s5419_s18  ;;  %v4118_v48 = vpack.c.b16 %v4112_v36, %v4111_v0  ;;  %v2985_v31 = vrot.slane %v9822_v47, 4  ;;  %v3013_v40 = vrot.slane %v9823_v18, 4  ;;  %v3041_v39 = vrot.slane %v9825_v17, 4 }
 0x292   : > { %v4366_v22 = vpack.c.b16 %v4360_v30, %v4359_v7  ;;  %v4189_v9 = vpack.c.b16 %v4182_v2, %v4181_v16  ;;  %v2958_v20 = vsel %vm1477_vm3, 0, %v2957_v37  ;;  %v3518_v33 = vshrl.u32 %v2510_v15, 16  ;;  %v9839_v15 = vld [vmem:[#allocation33_spill] sm:$0xff]  ;;  %v4176_v0 = vpop.permute.xlu2 %4175 }
 0x293   : > { %v4653_v24 = vsel %vm4613_vm4, %v4118_v48, %v4136_v45  ;;  %v2986_v25 = vsel %vm1477_vm3, 0, %v2985_v31  ;;  %v3014_v29 = vsel %vm1477_vm3, 0, %v3013_v40  ;;  %v3042_v36 = vsel %vm1477_vm3, 0, %v3041_v39  ;;  %v9840_v48 = vld [vmem:[#allocation34_spill] sm:$0xff] }
 0x294   : > { %4371 = vrot.lane.b32.xlu1 %v4366_v22, %s5420_s19  ;;  %v4682_v43 = vsel %vm4613_vm4, %v4189_v9, %v4206_v50  ;;  %v3541_v6 = vpack.i.b16 %v2986_v25, %v2958_v20  ;;  %v3637_v21 = vpack.i.b16 %v3042_v36, %v3014_v29  ;;  %v3519_v30 = vshrl.u32 %v2538_v5, 16  ;;  %v9841_v22 = vld [vmem:[#allocation32_spill] sm:$0xff] }
 0x295   : > { %v3614_v2 = vshrl.u32 %v2566_v49, 16  ;;  %v3615_v7 = vshrl.u32 %v2594_v59, 16  ;;  %v3524_v63 = vshrl.u32 %v9838_v61, 16  ;;  %v3525_v4 = vshrl.u32 %v9839_v15, 16  ;;  %v4156_v5 = vpop.permute.xlu0 %4155 }
 0x296   : > { %v4503_v45 = vunpack.c.l.b16 %v3541_v6  ;;  %v4504_v16 = vunpack.c.l.b16 %v3637_v21  ;;  %v3520_v37 = vpack.i.b16 %v3519_v30, %v3518_v33  ;;  %v3620_v31 = vshrl.u32 %v9840_v48, 16 }
 0x297   : > { %v3616_v40 = vpack.i.b16 %v3615_v7, %v3614_v2  ;;  %v3526_v39 = vpack.i.b16 %v3525_v4, %v3524_v63  ;;  %v3621_v47 = vshrl.u32 %v9841_v22, 16  ;;  %v3542_v9 = vshrl.u32 %v2958_v20, 16  ;;  %v4226_v33 = vpop.permute.xlu1 %4225 }
 0x298   : > { %v4510_v50 = vpack.c.b16 %v4504_v16, %v4503_v45  ;;  %v4379_v32 = vunpack.c.l.b16 %v3520_v37  ;;  %v3543_v49 = vshrl.u32 %v2986_v25, 16  ;;  %v3638_v59 = vshrl.u32 %v3014_v29, 16 }
 0x299   : > { %v4380_v17 = vunpack.c.l.b16 %v3616_v40  ;;  %v3622_v18 = vpack.i.b16 %v3621_v47, %v3620_v31  ;;  %v4411_v8 = vunpack.c.l.b16 %v3526_v39  ;;  %v4663_v56 = vsel %vm4626_vm5, %v4653_v24, %v4156_v5 }
 0x29a   : > { %4515 = vrot.lane.b32.xlu2 %v4510_v50, %s5420_s19  ;;  %v4672_v6 = vsel %vm4635_vm6, %v4663_v56, %v4176_v0  ;;  %v3544_v21 = vpack.i.b16 %v3543_v49, %v3542_v9  ;;  %v3639_v30 = vshrl.u32 %v3042_v36, 16  ;;  %v2959_v2 = vrot.slane %v9826_v19, 4 }
 0x29b   : > { %v4386_v20 = vpack.c.b16 %v4380_v17, %v4379_v32  ;;  %v4412_v7 = vunpack.c.l.b16 %v3622_v18  ;;  %v4693_v63 = vsel %vm4626_vm5, %v4682_v43, %v4226_v33  ;;  %4900 = vmatpush.bf16.msra.mxu1 %v4672_v6  ;;  %v2987_v25 = vrot.slane %v9827_v53, 4  ;;  %v8735_v18 = vpop.permute.xlu2 %4297 }
 0x29c   : > { %v3640_v47 = vpack.i.b16 %v3639_v30, %v3638_v59  ;;  %v4523_v29 = vunpack.c.l.b16 %v3544_v21  ;;  %v2960_v24 = vsel %vm1477_vm3, 0, %v2959_v2  ;;  %v3015_v4 = vrot.slane %v9828_v14, 4 }
 0x29d   : > { %4391 = vrot.lane.b32.xlu0 %v4386_v20, %s5421_s20  ;;  %v4418_v56 = vpack.c.b16 %v4412_v7, %v4411_v8  ;;  %v2988_v36 = vsel %vm1477_vm3, 0, %v2987_v25  ;;  %v3043_v0 = vrot.slane %v9829_v51, 4  ;;  %v3554_v32 = vshrl.u32 %v2960_v24, 16  ;;  %v4246_v49 = vpop.permute.xlu0 %4245  ;;  %v9842_v7 = vld [vmem:[#allocation61_spill] sm:$0xff] }
 0x29e   : > { %v4524_v17 = vunpack.c.l.b16 %v3640_v47  ;;  %v3016_v43 = vsel %vm1477_vm3, 0, %v3015_v4  ;;  %v3555_v45 = vshrl.u32 %v2988_v36, 16  ;;  %v2511_v16 = vrot.slane %v9838_v61, 4 }
 0x29f   : > { %4423 = vrot.lane.b32.xlu1 %v4418_v56, %s5419_s18  ;;  %v3044_v37 = vsel %vm1477_vm3, 0, %v3043_v0  ;;  %v3650_v31 = vshrl.u32 %v3016_v43, 16  ;;  %v2539_v8 = vrot.slane %v9839_v15, 4  ;;  %v2567_v40 = vrot.slane %v9840_v48, 4  ;;  %v4278_v47 = vpop.permute.xlu1 %4277  ;;  %v9865_v48 = vld [vmem:[#allocation117_spill] sm:$0xff] }
 0x2a0   : > { %v4530_v39 = vpack.c.b16 %v4524_v17, %v4523_v29  ;;  %v3556_v9 = vpack.i.b16 %v3555_v45, %v3554_v32  ;;  %v3651_v50 = vshrl.u32 %v3044_v37, 16  ;;  %v2512_v5 = vsel %vm1477_vm3, 0, %v2511_v16 }
 0x2a1   : > { %v2540_v59 = vsel %vm1477_vm3, 0, %v2539_v8  ;;  %v2568_v33 = vsel %vm1477_vm3, 0, %v2567_v40  ;;  %v2595_v6 = vrot.slane %v9841_v22, 4  ;;  %v3307_v21 = vpack.i.b16 %v9757_v38, %v9756_v58  ;;  %v9844_v40 = vld [vmem:[#allocation42_spill] sm:$0xff]  ;;  %v9864_v22 = vld [vmem:[#allocation27_spill] sm:$0xff] }
 0x2a2   : > { %4535 = vrot.lane.b32.xlu2 %v4530_v39, %s5421_s20  ;;  %v3652_v30 = vpack.i.b16 %v3651_v50, %v3650_v31  ;;  %v4595_v2 = vunpack.c.l.b16 %v3556_v9  ;;  %v3529_v20 = vpack.i.b16 %v2540_v59, %v2512_v5  ;;  %v3403_v25 = vpack.i.b16 %v9842_v7, %v9758_v27  ;;  %v9843_v31 = vld [vmem:[#allocation3_spill] sm:$0xff] }
 0x2a3   : > { %v2596_v29 = vsel %vm1477_vm3, 0, %v2595_v6  ;;  %v4253_v4 = vunpack.c.l.b16 %v3307_v21  ;;  %v4701_v56 = vsel %vm4635_vm6, %v4693_v63, %v4246_v49  ;;  %v3553_v0 = vpack.i.b16 %v2988_v36, %v2960_v24  ;;  %v4318_v9 = vpop.permute.xlu2 %4317  ;;  %v9845_v6 = vld [vmem:[#allocation54_spill] sm:$0xff]  ;;  %v9846_v24 = vld [vmem:[#allocation65_spill] sm:$0xff] }
 0x2a4   : > { %v4596_v32 = vunpack.c.l.b16 %v3652_v30  ;;  %v3625_v17 = vpack.i.b16 %v2596_v29, %v2568_v33  ;;  %v4431_v45 = vunpack.c.l.b16 %v3529_v20  ;;  %v4254_v16 = vunpack.c.l.b16 %v3403_v25  ;;  %4915 = vmatpush.bf16.msra.mxu2 %v4701_v56  ;;  %v9847_v56 = vld [vmem:[#allocation120_spill] sm:$0xff] }
 0x2a5   : > { %v3649_v38 = vpack.i.b16 %v3044_v37, %v3016_v43  ;;  %v4575_v58 = vunpack.c.l.b16 %v3553_v0  ;;  %v3320_v8 = vshrl.u32 %v9843_v31, 16  ;;  %v3321_v39 = vshrl.u32 %v9844_v40, 16  ;;  %v4102_v25 = vpop.permute.xlu0 %4101 }
 0x2a6   : > { %v4602_v27 = vpack.c.b16 %v4596_v32, %v4595_v2  ;;  %v4432_v50 = vunpack.c.l.b16 %v3625_v17  ;;  %v4261_v7 = vpack.c.b16 %v4254_v16, %v4253_v4  ;;  %v3416_v21 = vshrl.u32 %v9845_v6, 16  ;;  %v9848_v16 = vld [vmem:[#allocation36_spill] sm:$0xff] }
 0x2a7   : > { %v4576_v15 = vunpack.c.l.b16 %v3649_v38  ;;  %v3322_v63 = vpack.i.b16 %v3321_v39, %v3320_v8  ;;  %v3417_v36 = vshrl.u32 %v9846_v24, 16  ;;  %v3530_v49 = vshrl.u32 %v2512_v5, 16  ;;  %v9849_v5 = vld [vmem:[#allocation48_spill] sm:$0xff] }
 0x2a8   : > { %4607 = vrot.lane.b32.xlu0 %v4602_v27, %s5421_s20  ;;  %v4438_v30 = vpack.c.b16 %v4432_v50, %v4431_v45  ;;  %v4714_v43 = vsel %vm4613_vm4, %v4261_v7, %v4278_v47  ;;  %v3531_v37 = vshrl.u32 %v2540_v59, 16  ;;  %v3626_v20 = vshrl.u32 %v2568_v33, 16  ;;  %v9850_v8 = vld [vmem:[#allocation16_spill] sm:$0xff]  ;;  %v4134_v47 = vpop.permute.xlu1 %4133  ;;  %v9852_v7 = vld [vmem:[#allocation38_spill] sm:$0xff] }
 0x2a9   : > { %v4628_v2 = vsel %vm4626_vm5, %v9847_v56, %v8484_v34  ;;  %v4582_v4 = vpack.c.b16 %v4576_v15, %v4575_v58  ;;  %v3418_v0 = vpack.i.b16 %v3417_v36, %v3416_v21  ;;  %v3627_v32 = vshrl.u32 %v2596_v29, 16  ;;  %v9851_v45 = vld [vmem:[#allocation44_spill] sm:$0xff] }
 0x2aa   : > { %4443 = vrot.lane.b32.xlu1 %v4438_v30, %s5420_s19  ;;  %v3532_v17 = vpack.i.b16 %v3531_v37, %v3530_v49  ;;  %v3283_v38 = vpack.i.b16 %v9849_v5, %v9848_v16  ;;  %v3379_v39 = vpack.i.b16 %v9851_v45, %v9850_v8  ;;  %v4637_v59 = vsel %vm4635_vm6, %v4628_v2, %v4102_v25  ;;  %v9853_v37 = vld [vmem:[#allocation52_spill] sm:$0xff]  ;;  %v9855_v2 = vld [vmem:[#allocation19_spill] sm:$0xff]  ;;  %v9858_v16 = vld [vmem:[#allocation21_spill] sm:$0xff] }
 0x2ab   : > { %4587 = vrot.lane.b32.xlu2 %v4582_v4, %s5420_s19  ;;  %v4337_v33 = vunpack.c.l.b16 %v3322_v63  ;;  %v4338_v27 = vunpack.c.l.b16 %v3418_v0  ;;  %v3628_v34 = vpack.i.b16 %v3627_v32, %v3626_v20  ;;  %4887 = vmatpush.bf16.msra.mxu0 %v4637_v59  ;;  %v4725_v15 = vsel %vm4626_vm5, %v4714_v43, %v8735_v18  ;;  %v8775_v56 = vpop.permute.xlu2 %4519  ;;  %v9854_v63 = vld [vmem:[#allocation25_spill] sm:$0xff]  ;;  %v9856_v0 = vld [vmem:[#allocation39_spill] sm:$0xff]  ;;  %v9859_v8 = vld [vmem:[#allocation12_spill] sm:$0xff] }
 0x2ac   : > { %v4451_v29 = vunpack.c.l.b16 %v3532_v17  ;;  %v4110_v58 = vunpack.c.l.b16 %v3379_v39  ;;  %v4733_v50 = vsel %vm4635_vm6, %v4725_v15, %v4318_v9  ;;  %v3344_v21 = vshrl.u32 %v9852_v7, 16  ;;  %v9857_v43 = vld [vmem:[#allocation51_spill] sm:$0xff] }
 0x2ad   : > { %v4345_v36 = vpack.c.b16 %v4338_v27, %v4337_v33  ;;  %v4452_v49 = vunpack.c.l.b16 %v3628_v34  ;;  %v4109_v30 = vunpack.c.l.b16 %v3283_v38  ;;  %4929 = vmatpush.bf16.msra.mxu3 %v4733_v50  ;;  %v3345_v25 = vshrl.u32 %v9853_v37, 16  ;;  %v4500_v27 = vpop.permute.xlu0 %4499 }
 0x2ae   : > { %v3440_v20 = vshrl.u32 %v9854_v63, 16  ;;  %v3441_v4 = vshrl.u32 %v9855_v2, 16  ;;  %v3356_v18 = vshrl.u32 %v9856_v0, 16  ;;  %v3357_v32 = vshrl.u32 %v9857_v43, 16 }
 0x2af   : > { %v4117_v17 = vpack.c.b16 %v4110_v58, %v4109_v30  ;;  %v3346_v9 = vpack.i.b16 %v3345_v25, %v3344_v21  ;;  %v3452_v5 = vshrl.u32 %v9858_v16, 16  ;;  %v3453_v45 = vshrl.u32 %v9859_v8, 16 }
 0x2b0   : > { %4349 = vrot.lane.b32.xlu0 %v4345_v36, %s5419_s18  ;;  %v4458_v38 = vpack.c.b16 %v4452_v49, %v4451_v29  ;;  %v3442_v39 = vpack.i.b16 %v3441_v4, %v3440_v20  ;;  %v3358_v59 = vpack.i.b16 %v3357_v32, %v3356_v18  ;;  %v2397_v33 = vrot.slane %v9843_v31, 4  ;;  %v4154_v29 = vpop.permute.xlu1 %4153 }
 0x2b1   : > { %v4481_v34 = vunpack.c.l.b16 %v3346_v9  ;;  %v3454_v15 = vpack.i.b16 %v3453_v45, %v3452_v5  ;;  %v2425_v50 = vrot.slane %v9844_v40, 4  ;;  %v2453_v61 = vrot.slane %v9845_v6, 4 }
 0x2b2   : > { %4463 = vrot.lane.b32.xlu1 %v4458_v38, %s5421_s20  ;;  %v4482_v58 = vunpack.c.l.b16 %v3442_v39  ;;  %v4553_v21 = vunpack.c.l.b16 %v3358_v59  ;;  %v2398_v30 = vsel %vm1477_vm3, 0, %v2397_v33  ;;  %v2481_v36 = vrot.slane %v9846_v24, 4 }
 0x2b3   : > { %v4554_v49 = vunpack.c.l.b16 %v3454_v15  ;;  %v2426_v25 = vsel %vm1477_vm3, 0, %v2425_v50  ;;  %v2454_v20 = vsel %vm1477_vm3, 0, %v2453_v61  ;;  %v3919_v4 = vpack.i.b16 %v9776_v26, %v9775_v35  ;;  %v4540_v33 = vpop.permute.xlu2 %4539 }
 0x2b4   : > { %v4489_v18 = vpack.c.b16 %v4482_v58, %v4481_v34  ;;  %v2482_v32 = vsel %vm1477_vm3, 0, %v2481_v36  ;;  %v3325_v9 = vpack.i.b16 %v2426_v25, %v2398_v30  ;;  %v4015_v5 = vpack.i.b16 %v8168_v44, %v9777_v62 }
 0x2b5   : > { %v4650_v45 = vsel %vm4613_vm4, %v4117_v17, %v4134_v47  ;;  %v4561_v38 = vpack.c.b16 %v4554_v49, %v4553_v21  ;;  %v3421_v39 = vpack.i.b16 %v2482_v32, %v2454_v20  ;;  %v4475_v59 = vunpack.c.l.b16 %v3919_v4  ;;  %v4174_v36 = vpop.permute.xlu0 %4173 }
 0x2b6   : > { %4493 = vrot.lane.b32.xlu2 %v4489_v18, %s5419_s18  ;;  %v4357_v15 = vunpack.c.l.b16 %v3325_v9  ;;  %v4476_v61 = vunpack.c.l.b16 %v4015_v5  ;;  %v2845_v50 = vrot.slane %v9852_v7, 4  ;;  %v2873_v35 = vrot.slane %v9853_v37, 4 }
 0x2b7   : > { %v4358_v26 = vunpack.c.l.b16 %v3421_v39  ;;  %v2901_v34 = vrot.slane %v9854_v63, 4  ;;  %v2929_v58 = vrot.slane %v9855_v2, 4  ;;  %v3326_v44 = vshrl.u32 %v2398_v30, 16 }
 0x2b8   : > { %4565 = vrot.lane.b32.xlu0 %v4561_v38, %s5419_s18  ;;  %v4480_v62 = vpack.c.b16 %v4476_v61, %v4475_v59  ;;  %v2846_v47 = vsel %vm1477_vm3, 0, %v2845_v50  ;;  %v2874_v17 = vsel %vm1477_vm3, 0, %v2873_v35  ;;  %v3327_v21 = vshrl.u32 %v2426_v25, 16  ;;  %v8810_v24 = vpop.permute.xlu1 %4355  ;;  %v9860_v25 = vld [vmem:[#allocation6_spill] sm:$0xff] }
 0x2b9   : > { %v4365_v49 = vpack.c.b16 %v4358_v26, %v4357_v15  ;;  %v2902_v4 = vsel %vm1477_vm3, 0, %v2901_v34  ;;  %v2930_v18 = vsel %vm1477_vm3, 0, %v2929_v58  ;;  %v3349_v9 = vpack.i.b16 %v2874_v17, %v2846_v47  ;;  %v9861_v34 = vld [vmem:[#allocation2_spill] sm:$0xff] }
 0x2ba   : > { %v4819_v5 = vsel %vm4613_vm4, %v4480_v62, %v4500_v27  ;;  %v4661_v39 = vsel %vm4626_vm5, %v4650_v45, %v4154_v29  ;;  %v3445_v30 = vpack.i.b16 %v2930_v18, %v2902_v4  ;;  %v3328_v38 = vpack.i.b16 %v3327_v21, %v3326_v44  ;;  %v9862_v62 = vld [vmem:[#allocation56_spill] sm:$0xff]  ;;  %v9863_v45 = vld [vmem:[#allocation47_spill] sm:$0xff] }
 0x2bb   : > { %4369 = vrot.lane.b32.xlu1 %v4365_v49, %s5420_s19  ;;  %v3422_v59 = vshrl.u32 %v2454_v20, 16  ;;  %v3423_v61 = vshrl.u32 %v2482_v32, 16  ;;  %v3332_v50 = vshrl.u32 %v9860_v25, 16  ;;  %v4827_v15 = vsel %vm4626_vm5, %v4819_v5, %v8775_v56  ;;  %v8821_v44 = vpop.permute.xlu2 %4591 }
 0x2bc   : > { %v4501_v35 = vunpack.c.l.b16 %v3349_v9  ;;  %v4502_v26 = vunpack.c.l.b16 %v3445_v30  ;;  %v3333_v58 = vshrl.u32 %v9861_v34, 16  ;;  %v3428_v29 = vshrl.u32 %v9862_v62, 16 }
 0x2bd   : > { %v3424_v27 = vpack.i.b16 %v3423_v61, %v3422_v59  ;;  %v3429_v6 = vshrl.u32 %v9863_v45, 16  ;;  %v3895_v49 = vpack.i.b16 %v9864_v22, %v9778_v52  ;;  %v4669_v21 = vsel %vm4635_vm6, %v4661_v39, %v4174_v36  ;;  %v9866_v59 = vld [vmem:[#allocation24_spill] sm:$0xff] }
 0x2be   : > { %v4509_v20 = vpack.c.b16 %v4502_v26, %v4501_v35  ;;  %v3334_v32 = vpack.i.b16 %v3333_v58, %v3332_v50  ;;  %v4838_v56 = vsel %vm4635_vm6, %v4827_v15, %v4540_v33  ;;  %v4377_v9 = vunpack.c.l.b16 %v3328_v38  ;;  %4901 = vmatpush.bf16.msra.mxu1 %v4669_v21  ;;  %v4572_v35 = vpop.permute.xlu0 %4571 }
 0x2bf   : > { %v4378_v5 = vunpack.c.l.b16 %v3424_v27  ;;  %v3430_v30 = vpack.i.b16 %v3429_v6, %v3428_v29  ;;  %v3991_v61 = vpack.i.b16 %v9866_v59, %v9865_v48  ;;  %4968 = vmatpush.bf16.msrb.mxu2 %v4838_v56  ;;  %v4331_v52 = vunpack.c.l.b16 %v3895_v49 }
 0x2c0   : > { %4513 = vrot.lane.b32.xlu2 %v4509_v20, %s5420_s19  ;;  %v4409_v53 = vunpack.c.l.b16 %v3334_v32  ;;  %v3350_v22 = vshrl.u32 %v2846_v47, 16  ;;  %v3351_v19 = vshrl.u32 %v2874_v17, 16  ;;  %v3446_v36 = vshrl.u32 %v2902_v4, 16  ;;  %v4376_v15 = vpop.permute.xlu1 %4375 }
 0x2c1   : > { %v4385_v50 = vpack.c.b16 %v4378_v5, %v4377_v9  ;;  %v4410_v26 = vunpack.c.l.b16 %v3430_v30  ;;  %v3447_v39 = vshrl.u32 %v2930_v18, 16  ;;  %v2399_v38 = vrot.slane %v9860_v25, 4 }
 0x2c2   : > { %v3352_v33 = vpack.i.b16 %v3351_v19, %v3350_v22  ;;  %v2427_v6 = vrot.slane %v9861_v34, 4  ;;  %v2455_v48 = vrot.slane %v9862_v62, 4  ;;  %v4332_v27 = vunpack.c.l.b16 %v3991_v61 }
 0x2c3   : > { %4389 = vrot.lane.b32.xlu0 %v4385_v50, %s5421_s20  ;;  %v4417_v58 = vpack.c.b16 %v4410_v26, %v4409_v53  ;;  %v3448_v29 = vpack.i.b16 %v3447_v39, %v3446_v36  ;;  %v2483_v47 = vrot.slane %v9863_v45, 4  ;;  %v2400_v49 = vsel %vm1477_vm3, 0, %v2399_v38  ;;  %v8838_v56 = vpop.permute.xlu2 %4497 }
 0x2c4   : > { %v4521_v17 = vunpack.c.l.b16 %v3352_v33  ;;  %v2428_v4 = vsel %vm1477_vm3, 0, %v2427_v6  ;;  %v2456_v19 = vsel %vm1477_vm3, 0, %v2455_v48  ;;  %v3338_v21 = vshrl.u32 %v2400_v49, 16 }
 0x2c5   : > { %4421 = vrot.lane.b32.xlu1 %v4417_v58, %s5419_s18  ;;  %v4522_v18 = vunpack.c.l.b16 %v3448_v29  ;;  %v2484_v20 = vsel %vm1477_vm3, 0, %v2483_v47  ;;  %v3337_v32 = vpack.i.b16 %v2428_v4, %v2400_v49  ;;  %v3339_v9 = vshrl.u32 %v2428_v4, 16 }
 0x2c6   : > { %v3433_v53 = vpack.i.b16 %v2484_v20, %v2456_v19  ;;  %v3434_v5 = vshrl.u32 %v2456_v19, 16  ;;  %v3435_v30 = vshrl.u32 %v2484_v20, 16  ;;  %v4336_v59 = vpack.c.b16 %v4332_v27, %v4331_v52  ;;  %v4396_v38 = vpop.permute.xlu0 %4395 }
 0x2c7   : > { %v4529_v61 = vpack.c.b16 %v4522_v18, %v4521_v17  ;;  %v3931_v22 = vpack.i.b16 %v9786_v12, %v9785_v10  ;;  %v4027_v50 = vpack.i.b16 %v8154_v41, %v9787_v46  ;;  %v4429_v26 = vunpack.c.l.b16 %v3337_v32 }
 0x2c8   : > { %v4430_v36 = vunpack.c.l.b16 %v3433_v53  ;;  %v3340_v39 = vpack.i.b16 %v3339_v9, %v3338_v21  ;;  %v3436_v33 = vpack.i.b16 %v3435_v30, %v3434_v5  ;;  %v2847_v58 = vrot.slane %v9856_v0, 4  ;;  %v4428_v12 = vpop.permute.xlu1 %4427 }
 0x2c9   : > { %4533 = vrot.lane.b32.xlu2 %v4529_v61, %s5421_s20  ;;  %v4547_v6 = vunpack.c.l.b16 %v3931_v22  ;;  %v4548_v48 = vunpack.c.l.b16 %v4027_v50  ;;  %v2875_v52 = vrot.slane %v9857_v43, 4  ;;  %v2903_v10 = vrot.slane %v9858_v16, 4 }
 0x2ca   : > { %v4437_v27 = vpack.c.b16 %v4430_v36, %v4429_v26  ;;  %v4449_v29 = vunpack.c.l.b16 %v3340_v39  ;;  %v4450_v47 = vunpack.c.l.b16 %v3436_v33  ;;  %v2848_v46 = vsel %vm1477_vm3, 0, %v2847_v58 }
 0x2cb   : > { %v4552_v41 = vpack.c.b16 %v4548_v48, %v4547_v6  ;;  %v2876_v17 = vsel %vm1477_vm3, 0, %v2875_v52  ;;  %v2931_v49 = vrot.slane %v9859_v8, 4  ;;  %v4755_v4 = vsel %vm4613_vm4, %v4336_v59, %v8810_v24 }
 0x2cc   : > { %4441 = vrot.lane.b32.xlu0 %v4437_v27, %s5420_s19  ;;  %v4457_v19 = vpack.c.b16 %v4450_v47, %v4449_v29  ;;  %v2904_v18 = vsel %vm1477_vm3, 0, %v2903_v10  ;;  %v3361_v20 = vpack.i.b16 %v2876_v17, %v2848_v46  ;;  %v3727_v53 = vpack.i.b16 %v9796_v55, %v9795_v1 }
 0x2cd   : > { %v4851_v32 = vsel %vm4613_vm4, %v4552_v41, %v4572_v35  ;;  %v2932_v21 = vsel %vm1477_vm3, 0, %v2931_v49  ;;  %v3823_v9 = vpack.i.b16 %v9798_v11, %v9797_v54  ;;  %v4518_v5 = vpop.permute.xlu2 %4517  ;;  %v4763_v24 = vsel %vm4626_vm5, %v4755_v4, %v4376_v15 }
 0x2ce   : > { %4461 = vrot.lane.b32.xlu1 %v4457_v19, %s5421_s20  ;;  %v3457_v30 = vpack.i.b16 %v2932_v21, %v2904_v18  ;;  %v3907_v61 = vpack.i.b16 %v9789_v57, %v9788_v28  ;;  %v4003_v35 = vpack.i.b16 %v8185_v3, %v9790_v23  ;;  %v4774_v22 = vsel %vm4635_vm6, %v4763_v24, %v4396_v38  ;;  %v4612_v50 = vpop.permute.xlu0 %4611 }
 0x2cf   : > { %v4474_v59 = vunpack.c.l.b16 %v3823_v9  ;;  %v4859_v1 = vsel %vm4626_vm5, %v4851_v32, %v8821_v44  ;;  %v4573_v55 = vunpack.c.l.b16 %v3361_v20  ;;  %4940 = vmatpush.bf16.msrb.mxu0 %v4774_v22  ;;  %v3363_v11 = vshrl.u32 %v2876_v17, 16  ;;  %v9870_v22 = vld [vmem:[#allocation55_spill] sm:$0xff] }
 0x2d0   : > { %v4574_v54 = vunpack.c.l.b16 %v3457_v30  ;;  %v4473_v26 = vunpack.c.l.b16 %v3727_v53  ;;  %v3458_v15 = vshrl.u32 %v2904_v18, 16  ;;  %v3459_v36 = vshrl.u32 %v2932_v21, 16  ;;  %v4448_v57 = vpop.permute.xlu1 %4447  ;;  %v9869_v21 = vld [vmem:[#allocation43_spill] sm:$0xff] }
 0x2d1   : > { %v4870_v39 = vsel %vm4635_vm6, %v4859_v1, %v4612_v50  ;;  %v3362_v28 = vshrl.u32 %v2848_v46, 16  ;;  %v4404_v23 = vunpack.c.l.b16 %v4003_v35  ;;  %v4403_v48 = vunpack.c.l.b16 %v3907_v61  ;;  %v9871_v1 = vld [vmem:[#allocation18_spill] sm:$0xff] }
 0x2d2   : > { %v4581_v33 = vpack.c.b16 %v4574_v54, %v4573_v55  ;;  %4982 = vmatpush.bf16.msrb.mxu3 %v4870_v39  ;;  %v4479_v3 = vpack.c.b16 %v4474_v59, %v4473_v26  ;;  %v3460_v38 = vpack.i.b16 %v3459_v36, %v3458_v15  ;;  %v3343_v46 = vpack.i.b16 %v9853_v37, %v9852_v7  ;;  %v9867_v7 = vld [vmem:[#allocation84_spill] sm:$0xff] }
 0x2d3   : > { %v3364_v44 = vpack.i.b16 %v3363_v11, %v3362_v28  ;;  %v4408_v29 = vpack.c.b16 %v4404_v23, %v4403_v48  ;;  %v3319_v49 = vpack.i.b16 %v9844_v40, %v9843_v31  ;;  %v3355_v18 = vpack.i.b16 %v9857_v43, %v9856_v0  ;;  %v9873_v28 = vld [vmem:[#allocation13_spill] sm:$0xff]  ;;  %v9875_v23 = vld [vmem:[#allocation100_spill] sm:$0xff] }
 0x2d4   : > { %4585 = vrot.lane.b32.xlu2 %v4581_v33, %s5420_s19  ;;  %v4816_v6 = vsel %vm4613_vm4, %v4479_v3, %v8838_v56  ;;  %v4594_v58 = vunpack.c.l.b16 %v3460_v38  ;;  %v3331_v32 = vpack.i.b16 %v9861_v34, %v9860_v25  ;;  %v3799_v37 = vpack.i.b16 %v9867_v7, %v9793_v60  ;;  %v9872_v33 = vld [vmem:[#allocation35_spill] sm:$0xff]  ;;  %v9874_v3 = vld [vmem:[#allocation97_spill] sm:$0xff] }
 0x2d5   : > { %v4825_v52 = vsel %vm4626_vm5, %v4816_v6, %v4518_v5  ;;  %v4593_v10 = vunpack.c.l.b16 %v3364_v44  ;;  %v4787_v17 = vsel %vm4613_vm4, %v4408_v29, %v4428_v12  ;;  %v9868_v12 = vld [vmem:[#allocation11_spill] sm:$0xff]  ;;  %v3835_v35 = vpack.i.b16 %v9802_v13, %v9801_v42  ;;  %v9876_v44 = vld [vmem:[#allocation78_spill] sm:$0xff] }
 0x2d6   : > { %v4538_v27 = vpop.permute.xlu2 %4537  ;;  %v4354_v41 = vpop.permute.xlu0 %4353  ;;  %v4795_v4 = vsel %vm4626_vm5, %v4787_v17, %v4448_v57  ;;  %v3703_v53 = vpack.i.b16 %v9869_v21, %v9868_v12  ;;  %v4330_v24 = vunpack.c.l.b16 %v3799_v37  ;;  %v3439_v34 = vpack.i.b16 %v9855_v2, %v9854_v63  ;;  %v9877_v6 = vld [vmem:[#allocation22_spill] sm:$0xff] }
 0x2d7   : > { %v4835_v47 = vsel %vm4635_vm6, %v4825_v52, %v4538_v27  ;;  %v4601_v56 = vpack.c.b16 %v4594_v58, %v4593_v10  ;;  %v3739_v60 = vpack.i.b16 %v9871_v1, %v9870_v22  ;;  %v8901_v50 = vunpack.c.l.b16 %v3343_v46  ;;  %v9878_v27 = vld [vmem:[#allocation58_spill] sm:$0xff] }
 0x2d8   : > { %4969 = vmatpush.bf16.msrb.mxu2 %v4835_v47  ;;  %v4468_v19 = vpop.permute.xlu1 %4467  ;;  %v4329_v59 = vunpack.c.l.b16 %v3703_v53  ;;  %v8903_v26 = vunpack.c.l.b16 %v3439_v34  ;;  %v4546_v15 = vunpack.c.l.b16 %v3835_v35  ;;  %v3631_v57 = vpack.i.b16 %v9873_v28, %v9872_v33  ;;  %v9879_v29 = vld [vmem:[#allocation62_spill] sm:$0xff]  ;;  %v9885_v28 = vld [vmem:[#allocation73_spill] sm:$0xff] }
 0x2d9   : > { %v4806_v20 = vsel %vm4635_vm6, %v4795_v4, %v4468_v19  ;;  %v4545_v63 = vunpack.c.l.b16 %v3739_v60  ;;  %v3811_v38 = vpack.i.b16 %v9875_v23, %v9874_v3  ;;  %v3535_v48 = vpack.i.b16 %v9877_v6, %v9876_v44  ;;  %v8935_v35 = vld [vmem:[%s9145_s1] sm:$0xff]  ;;  %v9882_v60 = vld [vmem:[#allocation77_spill] sm:$0xff] }
 0x2da   : > { %4954 = vmatpush.bf16.msrb.mxu1 %v4806_v20  ;;  %v4335_v61 = vpack.c.b16 %v4330_v24, %v4329_v59  ;;  %v4477_v13 = vpack.c.b16 %v8903_v26, %v8901_v50  ;;  %v3715_v47 = vpack.i.b16 %v9879_v29, %v9878_v27  ;;  %v3427_v46 = vpack.i.b16 %v9863_v45, %v9862_v62  ;;  %v9881_v34 = vld [vmem:[#allocation90_spill] sm:$0xff] }
 0x2db   : > { %v4551_v2 = vpack.c.b16 %v4546_v15, %v4545_v63  ;;  %v4472_v17 = vunpack.c.l.b16 %v3631_v57  ;;  %v4402_v4 = vunpack.c.l.b16 %v3811_v38  ;;  %v8920_v19 = vunpack.c.l.b16 %v3331_v32  ;;  %5337 = vmatmul.msk.bf16.vlgmr.msra.gmra.mxu2 %vm4626_vm5, %v8935_v35  ;;  %5338 = vmatmul.msk.bf16.vlgmr.msra.gmra.mxu3 %vm4626_vm5, %v8935_v35  ;;  %v9884_v33 = vld [vmem:[#allocation74_spill] sm:$0xff] }
 0x2dc   : > { %4605 = vrot.lane.b32.xlu2 %v4601_v56, %s5421_s20  ;;  %v4752_v25 = vsel %vm4613_vm4, %v4335_v61, %v4354_v41  ;;  %v8922_v20 = vunpack.c.l.b16 %v3427_v46  ;;  %v4471_v7 = vunpack.c.l.b16 %v3535_v48  ;;  %v4401_v37 = vunpack.c.l.b16 %v3715_v47  ;;  %5335 = vmatmul.msk.bf16.vlgmr.msra.gmra.mxu0 %vm4626_vm5, %v8935_v35  ;;  %v9886_v29 = vld [vmem:[#allocation34_spill] sm:$0xff]  ;;  %v9888_v46 = vld [vmem:[#allocation75_spill] sm:$0xff] }
 0x2dd   : > { %5336 = vmatmul.msk.bf16.vlgmr.msra.gmra.mxu1 %vm4626_vm5, %v8935_v35  ;;  %v3547_v57 = vpack.i.b16 %v9885_v28, %v9884_v33  ;;  %v3451_v50 = vpack.i.b16 %v9859_v8, %v9858_v16  ;;  %v9890_v26 = vld [vmem:[#allocation54_spill] sm:$0xff] }
 0x2de   : > { %v4590_v9 = vpop.permute.xlu2 %4589  ;;  %v4570_v5 = vpop.permute.xlu0 %4569  ;;  %v4405_v12 = vpack.c.b16 %v8922_v20, %v8920_v19  ;;  %v4478_v21 = vpack.c.b16 %v4472_v17, %v4471_v7  ;;  %v4407_v53 = vpack.c.b16 %v4402_v4, %v4401_v37  ;;  %v9889_v17 = vld [vmem:[#allocation33_spill] sm:$0xff] }
 0x2df   : > { %v4848_v39 = vsel %vm4613_vm4, %v4551_v2, %v4570_v5  ;;  %v3643_v2 = vpack.i.b16 %v9829_v51, %v9828_v14  ;;  %v9887_v14 = vld [vmem:[#allocation32_spill] sm:$0xff] }
 0x2e0   : > { %v4374_v30 = vpop.permute.xlu1 %4373  ;;  %v4857_v52 = vsel %vm4626_vm5, %v4848_v39, %v4590_v9  ;;  %v3619_v51 = vpack.i.b16 %v9887_v14, %v9886_v29 }
 0x2e1   : > { %v4761_v55 = vsel %vm4626_vm5, %v4752_v25, %v4374_v30  ;;  %v9880_v25 = vld [vmem:[#allocation71_spill] sm:$0xff]  ;;  %v4544_v6 = vunpack.c.l.b16 %v3643_v2 }
 0x2e2   : > { %v3607_v22 = vpack.i.b16 %v9881_v34, %v9880_v25  ;;  %v4400_v37 = vunpack.c.l.b16 %v3619_v51 }
 0x2e4   : > { %v4328_v15 = vunpack.c.l.b16 %v3607_v22  ;;  %v4542_v22 = vunpack.c.l.b16 %v3451_v50 }
 0x2e7   : > { %v4394_v54 = vpop.permute.xlu0 %4393 }
 0x2e8   : > { %v4771_v11 = vsel %vm4635_vm6, %v4761_v55, %v4394_v54  ;;  %v4496_v36 = vpop.permute.xlu2 %4495  ;;  %v9883_v55 = vld [vmem:[#allocation81_spill] sm:$0xff] }
 0x2e9   : > { %4941 = vmatpush.bf16.msrb.mxu0 %v4771_v11  ;;  %v4426_v42 = vpop.permute.xlu1 %4425  ;;  %v4813_v9 = vsel %vm4613_vm4, %v4478_v21, %v4496_v36  ;;  %v3511_v54 = vpack.i.b16 %v9883_v55, %v9882_v60 }
 0x2ea   : > { %v4784_v62 = vsel %vm4613_vm4, %v4407_v53, %v4426_v42 }
 0x2eb   : > { %v4327_v42 = vunpack.c.l.b16 %v3511_v54  ;;  %v4541_v54 = vunpack.c.l.b16 %v3355_v18 }
 0x2ed   : > { %v4334_v63 = vpack.c.b16 %v4328_v15, %v4327_v42  ;;  %v4549_v15 = vpack.c.b16 %v4542_v22, %v4541_v54 }
 0x2f3   : > { %v4610_v58 = vpop.permute.xlu0 %4609 }
 0x2f4   : > { %v4516_v10 = vpop.permute.xlu2 %4515  ;;  %v4867_v41 = vsel %vm4635_vm6, %v4857_v52, %v4610_v58  ;;  %v4543_v58 = vunpack.c.l.b16 %v3547_v57 }
 0x2f5   : > { %v4446_v56 = vpop.permute.xlu1 %4445  ;;  %4983 = vmatpush.bf16.msrb.mxu3 %v4867_v41  ;;  %v4823_v45 = vsel %vm4626_vm5, %v4813_v9, %v4516_v10 }
 0x2f6   : > { %v4793_v32 = vsel %vm4626_vm5, %v4784_v62, %v4446_v56  ;;  %v4550_v52 = vpack.c.b16 %v4544_v6, %v4543_v58  ;;  %v3523_v56 = vpack.i.b16 %v9889_v17, %v9888_v46 }
 0x2f8   : > { %v4399_v21 = vunpack.c.l.b16 %v3523_v56 }
 0x2fa   : > { %v4406_v53 = vpack.c.b16 %v4400_v37, %v4399_v21 }
 0x2fb   : > { %v4352_v5 = vpop.permute.xlu0 %4351 }
 0x2fc   : > { %v4536_v24 = vpop.permute.xlu2 %4535  ;;  %v4749_v39 = vsel %vm4613_vm4, %v4334_v63, %v4352_v5 }
 0x2fd   : > { %v4466_v30 = vpop.permute.xlu1 %4465  ;;  %v4832_v59 = vsel %vm4635_vm6, %v4823_v45, %v4536_v24 }
 0x2fe   : > { %4970 = vmatpush.bf16.msrb.mxu2 %v4832_v59  ;;  %v4803_v61 = vsel %vm4635_vm6, %v4793_v32, %v4466_v30 }
 0x2ff   : > { %4955 = vmatpush.bf16.msrb.mxu1 %v4803_v61 }
 0x303   : > { %v4568_v1 = vpop.permute.xlu0 %4567 }
 0x304   : > { %v4845_v27 = vsel %vm4613_vm4, %v4550_v52, %v4568_v1 }
 0x305   : > { %v4588_v11 = vpop.permute.xlu2 %4587 }
 0x306   : > { %v4372_v36 = vpop.permute.xlu1 %4371  ;;  %v4855_v41 = vsel %vm4626_vm5, %v4845_v27, %v4588_v11  ;;  %v4325_v11 = vunpack.c.l.b16 %v3319_v49 }
 0x307   : > { %v4759_v3 = vsel %vm4626_vm5, %v4749_v39, %v4372_v36 }
 0x30f   : > { %v4392_v23 = vpop.permute.xlu0 %4391 }
 0x310   : > { %v4494_v38 = vpop.permute.xlu2 %4493  ;;  %v4768_v44 = vsel %vm4635_vm6, %v4759_v3, %v4392_v23 }
 0x311   : > { %4942 = vmatpush.bf16.msrb.mxu0 %v4768_v44  ;;  %v4424_v48 = vpop.permute.xlu1 %4423  ;;  %v4810_v9 = vsel %vm4613_vm4, %v4477_v13, %v4494_v38  ;;  %v9891_v13 = vld [vmem:[#allocation65_spill] sm:$0xff] }
 0x312   : > { %v4781_v62 = vsel %vm4613_vm4, %v4406_v53, %v4424_v48  ;;  %v3415_v25 = vpack.i.b16 %v9891_v13, %v9890_v26 }
 0x314   : > { %v4326_v60 = vunpack.c.l.b16 %v3415_v25 }
 0x316   : > { %v4333_v36 = vpack.c.b16 %v4326_v60, %v4325_v11 }
 0x31a   : > { %v4514_v47 = vpop.permute.xlu2 %4513  ;;  %v4608_v10 = vpop.permute.xlu0 %4607 }
 0x31b   : > { %v4864_v4 = vsel %vm4635_vm6, %v4855_v41, %v4608_v10  ;;  %v4821_v45 = vsel %vm4626_vm5, %v4810_v9, %v4514_v47 }
 0x31c   : > { %v4444_v7 = vpop.permute.xlu1 %4443  ;;  %4984 = vmatpush.bf16.msrb.mxu3 %v4864_v4 }
 0x31d   : > { %v4791_v32 = vsel %vm4626_vm5, %v4781_v62, %v4444_v7 }
 0x322   : > { %v4350_v5 = vpop.permute.xlu0 %4349 }
 0x323   : > { %v4534_v24 = vpop.permute.xlu2 %4533  ;;  %v4746_v8 = vsel %vm4613_vm4, %v4333_v36, %v4350_v5 }
 0x324   : > { %v4464_v30 = vpop.permute.xlu1 %4463  ;;  %v4829_v59 = vsel %vm4635_vm6, %v4821_v45, %v4534_v24 }
 0x325   : > { %4971 = vmatpush.bf16.msrb.mxu2 %v4829_v59  ;;  %v4800_v61 = vsel %vm4635_vm6, %v4791_v32, %v4464_v30 }
 0x326   : > { %4956 = vmatpush.bf16.msrb.mxu1 %v4800_v61 }
 0x328   : > { %5341 = vmatmul.msk.bf16.vlgmr.msrb.gmra.mxu2 %vm4626_vm5, %v8935_v35 }
 0x32a   : > { %v4566_v34 = vpop.permute.xlu0 %4565 }
 0x32b   : > { %v4842_v16 = vsel %vm4613_vm4, %v4549_v15, %v4566_v34 }
 0x32d   : > { %v4370_v1 = vpop.permute.xlu1 %4369 }
 0x32e   : > { %v4586_v55 = vpop.permute.xlu2 %4585  ;;  %v4757_v42 = vsel %vm4626_vm5, %v4746_v8, %v4370_v1 }
 0x32f   : > { %v4853_v33 = vsel %vm4626_vm5, %v4842_v16, %v4586_v55 }
 0x335   : > { %v4390_v63 = vpop.permute.xlu0 %4389 }
 0x336   : > { %v4606_v2 = vpop.permute.xlu2 %4605  ;;  %v4765_v39 = vsel %vm4635_vm6, %v4757_v42, %v4390_v63 }
 0x337   : > { %v4422_v0 = vpop.permute.xlu1 %4421  ;;  %4943 = vmatpush.bf16.msrb.mxu0 %v4765_v39  ;;  %v4861_v43 = vsel %vm4635_vm6, %v4853_v33, %v4606_v2 }
 0x338   : > { %4985 = vmatpush.bf16.msrb.mxu3 %v4861_v43  ;;  %v4778_v31 = vsel %vm4613_vm4, %v4405_v12, %v4422_v0 }
 0x33a   : > { %5339 = vmatmul.msk.bf16.vlgmr.msrb.gmra.mxu0 %vm4626_vm5, %v8935_v35 }
 0x33b   : > { %5342 = vmatmul.msk.bf16.vlgmr.msrb.gmra.mxu3 %vm4626_vm5, %v8935_v35 }
 0x33e   : > { %v4442_v40 = vpop.permute.xlu0 %4441 }
 0x33f   : > { %v4789_v49 = vsel %vm4626_vm5, %v4778_v31, %v4442_v40 }
 0x340   : > { %v4462_v18 = vpop.permute.xlu1 %4461 }
 0x341   : > { %v4797_v28 = vsel %vm4635_vm6, %v4789_v49, %v4462_v18 }
 0x342   : > { %4957 = vmatpush.bf16.msrb.mxu1 %v4797_v28 }
 0x345   : > { %5340 = vmatmul.msk.bf16.vlgmr.msrb.gmra.mxu1 %vm4626_vm5, %v8935_v35 }
 0x359   : > { %v9002_v57 = vpop.f32.mrf.mxu0 }
 0x35a   : > { %v9006_v23 = vpop.f32.mrf.mxu1  ;;  %v5012_v20 = vmul.f32 %v9002_v57, %v9002_v57 }
 0x35b   : > { %v5013_v12 = vmul.f32 %v9006_v23, %v9006_v23  ;;  %v4992_v44 = vadd.f32 %v9006_v23, %v9002_v57 }
 0x35d   : > { %v5028_v6 = vadd.f32 %v5013_v12, %v5012_v20 }
 0x35e   : > { %v9004_v3 = vpop.f32.mrf.mxu2  ;;  %v9008_v38 = vpop.f32.mrf.mxu3 }
 0x35f   : > { %v5014_v48 = vmul.f32 %v9004_v3, %v9004_v3  ;;  %v4993_v29 = vadd.f32 %v4992_v44, %v9004_v3  ;;  %v5015_v51 = vmul.f32 %v9008_v38, %v9008_v38 }
 0x361   : > { %v9010_v19 = vpop.f32.mrf.mxu0  ;;  %v5029_v14 = vadd.f32 %v5028_v6, %v5014_v48  ;;  %v4994_v46 = vadd.f32 %v4993_v29, %v9008_v38 }
 0x362   : > { %v9022_v58 = vpop.f32.mrf.mxu1  ;;  %v5020_v47 = vmul.f32 %v9010_v19, %v9010_v19 }
 0x363   : > { %v5021_v10 = vmul.f32 %v9022_v58, %v9022_v58  ;;  %v5001_v41 = vadd.f32 %v9022_v58, %v9010_v19  ;;  %v5030_v4 = vadd.f32 %v5029_v14, %v5015_v51 }
 0x365   : > { %v5037_v7 = vadd.f32 %v5021_v10, %v5020_v47 }
 0x366   : > { %v9018_v35 = vpop.f32.mrf.mxu2  ;;  %v9024_v52 = vpop.f32.mrf.mxu3 }
 0x367   : > { %v5022_v37 = vmul.f32 %v9018_v35, %v9018_v35  ;;  %v5002_v53 = vadd.f32 %v5001_v41, %v9018_v35  ;;  %v5023_v30 = vmul.f32 %v9024_v52, %v9024_v52 }
 0x369   : > { %v5038_v61 = vadd.f32 %v5037_v7, %v5022_v37  ;;  %v5003_v25 = vadd.f32 %v5002_v53, %v9024_v52 }
 0x36b   : > { %v5039_v60 = vadd.f32 %v5038_v61, %v5023_v30 }
 0x3ab   : > { %v9040_v56 = vpop.f32.mrf.mxu2 }
 0x3ac   : > { %v5018_v45 = vmul.f32 %v9040_v56, %v9040_v56 }
 0x3b3   : > { %v9067_v11 = vpop.f32.mrf.mxu2 }
 0x3b4   : > { %v5026_v63 = vmul.f32 %v9067_v11, %v9067_v11 }
 0x3b7   : > { %v9026_v27 = vpop.f32.mrf.mxu0 }
 0x3b8   : > { %v5016_v17 = vmul.f32 %v9026_v27, %v9026_v27  ;;  %v4995_v21 = vadd.f32 %v4994_v46, %v9026_v27 }
 0x3ba   : > { %v5031_v62 = vadd.f32 %v5030_v4, %v5016_v17 }
 0x3be   : > { %v9046_v9 = vpop.f32.mrf.mxu3 }
 0x3bf   : > { %v9057_v59 = vpop.f32.mrf.mxu0  ;;  %v5019_v50 = vmul.f32 %v9046_v9, %v9046_v9 }
 0x3c0   : > { %v5024_v34 = vmul.f32 %v9057_v59, %v9057_v59  ;;  %v5004_v55 = vadd.f32 %v5003_v25, %v9057_v59 }
 0x3c2   : > { %v9048_v5 = vpop.f32.mrf.mxu1  ;;  %v5040_v36 = vadd.f32 %v5039_v60, %v5024_v34 }
 0x3c3   : > { %v4996_v24 = vadd.f32 %v4995_v21, %v9048_v5  ;;  %v5017_v32 = vmul.f32 %v9048_v5, %v9048_v5 }
 0x3c5   : > { %v4997_v26 = vadd.f32 %v4996_v24, %v9040_v56  ;;  %v5032_v13 = vadd.f32 %v5031_v62, %v5017_v32 }
 0x3c6   : > { %v9074_v42 = vpop.f32.mrf.mxu3 }
 0x3c7   : > { %v4998_v22 = vadd.f32 %v4997_v26, %v9046_v9  ;;  %v5033_v1 = vadd.f32 %v5032_v13, %v5018_v45  ;;  %v5027_v33 = vmul.f32 %v9074_v42, %v9074_v42 }
 0x3c9   : > { %4999 = vadd.xlane.f32.xlu2 %v4998_v22  ;;  %v5034_v54 = vadd.f32 %v5033_v1, %v5019_v50 }
 0x3ca   : > { %v9069_v15 = vpop.f32.mrf.mxu1 }
 0x3cb   : > { %v5005_v16 = vadd.f32 %v5004_v55, %v9069_v15  ;;  %v5025_v8 = vmul.f32 %v9069_v15, %v9069_v15  ;;  %5035 = vadd.xlane.f32.xlu1 %v5034_v54 }
 0x3cd   : > { %v5006_v2 = vadd.f32 %v5005_v16, %v9067_v11  ;;  %v5041_v39 = vadd.f32 %v5040_v36, %v5025_v8 }
 0x3cf   : > { %v5042_v0 = vadd.f32 %v5041_v39, %v5026_v63  ;;  %v5007_v43 = vadd.f32 %v5006_v2, %v9074_v42 }
 0x3d1   : > { %5008 = vadd.xlane.f32.xlu0 %v5007_v43  ;;  %v5043_v31 = vadd.f32 %v5042_v0, %v5027_v33 }
 0x3d3   : > { %5044 = vadd.xlane.f32.xlu2 %v5043_v31 }
 0x43c   : > { %v5000_v40 = vpop.xlane.xlu2 %4999 }
 0x43d   : > { %v5064_v49 = vmul.f32 0.0009765625, %v5000_v40 }
 0x43e   : > { %v5036_v18 = vpop.xlane.xlu1 %5035 }
 0x43f   : > { %v5066_v28 = vmul.f32 0.0009765625, %v5036_v18  ;;  %v5068_v20 = vmul.f32 %v5064_v49, %v5064_v49  ;;  %v5112_v62 = vsub.f32 %v9002_v57, %v5064_v49  ;;  %v5113_v45 = vsub.f32 %v9006_v23, %v5064_v49 }
 0x440   : > { %v5114_v24 = vsub.f32 %v9004_v3, %v5064_v49  ;;  %v5115_v32 = vsub.f32 %v9008_v38, %v5064_v49  ;;  %v5116_v30 = vsub.f32 %v9026_v27, %v5064_v49  ;;  %v5117_v50 = vsub.f32 %v9048_v5, %v5064_v49 }
 0x441   : > { %v5070_v12 = vsub.f32 %v5066_v28, %v5068_v20  ;;  %v5118_v26 = vsub.f32 %v9040_v56, %v5064_v49  ;;  %v5119_v13 = vsub.f32 %v9046_v9, %v5064_v49 }
 0x443   : > { %v5072_v44 = vmax.f32 %v5070_v12, 0.0 }
 0x444   : > { %v5009_v48 = vpop.xlane.xlu0 %5008 }
 0x445   : > { %v5074_v6 = vadd.f32 1e-05, %v5072_v44  ;;  %v9082_v14 = vmul.f32 0.0009765625, %v5009_v48 }
 0x446   : > { %v5045_v29 = vpop.xlane.xlu2 %5044 }
 0x447   : > { %5362 = vrsqrt.f32 %v5074_v6  ;;  %v5067_v51 = vmul.f32 0.0009765625, %v5045_v29  ;;  %v5069_v47 = vmul.f32 %v9082_v14, %v9082_v14  ;;  %vm5082_vm8 = vweird.f32 %v5074_v6 }
 0x448   : > { %v5120_v12 = vsub.f32 %v9010_v19, %v9082_v14  ;;  %v5121_v44 = vsub.f32 %v9022_v58, %v9082_v14  ;;  %v5123_v48 = vsub.f32 %v9024_v52, %v9082_v14  ;;  %v5124_v29 = vsub.f32 %v9057_v59, %v9082_v14 }
 0x449   : > { %v5071_v10 = vsub.f32 %v5067_v51, %v5069_v47  ;;  %v5125_v47 = vsub.f32 %v9069_v15, %v9082_v14  ;;  %v5126_v19 = vsub.f32 %v9067_v11, %v9082_v14 }
 0x44b   : > { %v5073_v17 = vmax.f32 %v5071_v10, 0.0  ;;  %v5127_v10 = vsub.f32 %v9074_v42, %v9082_v14 }
 0x44d   : > { %v5363_v41 = vpop.eup %5362  ;;  %v9086_v7 = vadd.f32 1e-05, %v5073_v17 }
 0x44e   : > { %v5077_v46 = vmul.f32 %v5363_v41, %v5074_v6  ;;  %vm5083_vm7 = vweird.f32 %v5363_v41  ;;  %v5122_v6 = vsub.f32 %v9018_v35, %v9082_v14 }
 0x44f   : > { %5364 = vrsqrt.f32 %v9086_v7  ;;  %vm5084_vm9 = vmor %vm5082_vm8, %vm5083_vm7  ;;  %vm5092_vm3 = vweird.f32 %v9086_v7 }
 0x450   : > { %v5078_v4 = vmul.f32 %v5363_v41, %v5077_v46 }
 0x452   : > { %v5079_v37 = vmul.f32 0.5, %v5078_v4 }
 0x454   : > { %v5080_v21 = vsub.f32 1.5, %v5079_v37 }
 0x455   : > { %v5365_v1 = vpop.eup %5364 }
 0x456   : > { %v5081_v53 = vmul.f32 %v5363_v41, %v5080_v21  ;;  %v5087_v9 = vmul.f32 %v5365_v1, %v9086_v7  ;;  %vm5093_vm2 = vweird.f32 %v5365_v1 }
 0x457   : > { %vm5094_vm4 = vmor %vm5092_vm3, %vm5093_vm2 }
 0x458   : > { %v5085_v61 = vsel %vm5084_vm9, %v5363_v41, %v5081_v53  ;;  %v5088_v43 = vmul.f32 %v5365_v1, %v5087_v9 }
 0x459   : > { %v5128_v25 = vmul.f32 %v5112_v62, %v5085_v61  ;;  %v5129_v34 = vmul.f32 %v5113_v45, %v5085_v61  ;;  %v5130_v22 = vmul.f32 %v5114_v24, %v5085_v61  ;;  %v5131_v57 = vmul.f32 %v5115_v32, %v5085_v61 }
 0x45a   : > { %v5132_v23 = vmul.f32 %v5116_v30, %v5085_v61  ;;  %v5133_v60 = vmul.f32 %v5117_v50, %v5085_v61  ;;  %v5134_v3 = vmul.f32 %v5118_v26, %v5085_v61  ;;  %v5135_v55 = vmul.f32 %v5119_v13, %v5085_v61 }
 0x45b   : > { %vm5144_vm10 = vcmp.gt.f32.partialorder %v5128_v25, 0.0  ;;  %vm5145_vm11 = vcmp.gt.f32.partialorder %v5129_v34, 0.0  ;;  %vm5146_vm12 = vcmp.gt.f32.partialorder %v5130_v22, 0.0  ;;  %vm5147_vm13 = vcmp.gt.f32.partialorder %v5131_v57, 0.0 }
 0x45c   : > { %vm5148_vm14 = vcmp.gt.f32.partialorder %v5132_v23, 0.0  ;;  %v5160_v38 = vmul.f32 0.2, %v5128_v25  ;;  %v5161_v27 = vmul.f32 0.2, %v5129_v34  ;;  %vm5149_vm15 = vcmp.gt.f32.partialorder %v5133_v60, 0.0 }
 0x45d   : > { %v5162_v56 = vmul.f32 0.2, %v5130_v22  ;;  %v5163_v5 = vmul.f32 0.2, %v5131_v57  ;;  %v5164_v54 = vmul.f32 0.2, %v5132_v23 }
 0x45e   : > { %v5165_v36 = vmul.f32 0.2, %v5133_v60  ;;  %v5166_v16 = vmul.f32 0.2, %v5134_v3  ;;  %v5176_v8 = vsel %vm5144_vm10, %v5128_v25, %v5160_v38  ;;  %v5177_v63 = vsel %vm5145_vm11, %v5129_v34, %v5161_v27 }
 0x45f   : > { %vm5150_vm0 = vcmp.gt.f32.partialorder %v5134_v3, 0.0  ;;  %v5167_v2 = vmul.f32 0.2, %v5135_v55  ;;  %v5178_v39 = vsel %vm5146_vm12, %v5130_v22, %v5162_v56  ;;  %v5179_v33 = vsel %vm5147_vm13, %v5131_v57, %v5163_v5  ;;  %5192 = vst [vmem:[%s9101_s26] sm:$0xff] %v5176_v8 }
 0x460   : > { %vm5151_vm1 = vcmp.gt.f32.partialorder %v5135_v55, 0.0  ;;  %v5180_v0 = vsel %vm5148_vm14, %v5132_v23, %v5164_v54  ;;  %5193 = vst [vmem:[%s9101_s26 + $0x8] sm:$0xff] %v5177_v63  ;;  %v5181_v31 = vsel %vm5149_vm15, %v5133_v60, %v5165_v36  ;;  %v5182_v40 = vsel %vm5150_vm0, %v5134_v3, %v5166_v16 }
 0x461   : > { %5194 = vst [vmem:[%s9101_s26 + $0x10] sm:$0xff] %v5178_v39  ;;  %v5089_v49 = vmul.f32 0.5, %v5088_v43  ;;  %v5183_v18 = vsel %vm5151_vm1, %v5135_v55, %v5167_v2 }
 0x462   : > { %5195 = vst [vmem:[%s9101_s26 + $0x18] sm:$0xff] %v5179_v33 }
 0x463   : > { %5196 = vst [vmem:[%s9101_s26 + $0x20] sm:$0xff] %v5180_v0  ;;  %v5090_v28 = vsub.f32 1.5, %v5089_v49 }
 0x464   : > { %5197 = vst [vmem:[%s9101_s26 + $0x28] sm:$0xff] %v5181_v31 }
 0x465   : > { %5198 = vst [vmem:[%s9101_s26 + $0x30] sm:$0xff] %v5182_v40  ;;  %v5091_v20 = vmul.f32 %v5365_v1, %v5090_v28 }
 0x466   : > { %5199 = vst [vmem:[%s9101_s26 + $0x38] sm:$0xff] %v5183_v18 }
 0x467   : > { %v5095_v51 = vsel %vm5094_vm4, %v5365_v1, %v5091_v20 }
 0x468   : > { %v5136_v58 = vmul.f32 %v5120_v12, %v5095_v51  ;;  %v5137_v41 = vmul.f32 %v5121_v44, %v5095_v51  ;;  %v5138_v46 = vmul.f32 %v5122_v6, %v5095_v51  ;;  %v5139_v35 = vmul.f32 %v5123_v48, %v5095_v51 }
 0x469   : > { %v5140_v17 = vmul.f32 %v5124_v29, %v5095_v51  ;;  %v5141_v4 = vmul.f32 %v5125_v47, %v5095_v51  ;;  %v5142_v52 = vmul.f32 %v5126_v19, %v5095_v51  ;;  %v5143_v7 = vmul.f32 %v5127_v10, %v5095_v51 }
 0x46a   : > { %vm5152_vm5 = vcmp.gt.f32.partialorder %v5136_v58, 0.0  ;;  %vm5153_vm6 = vcmp.gt.f32.partialorder %v5137_v41, 0.0  ;;  %vm5154_vm7 = vcmp.gt.f32.partialorder %v5138_v46, 0.0  ;;  %vm5155_vm8 = vcmp.gt.f32.partialorder %v5139_v35, 0.0 }
 0x46b   : > { %vm5156_vm9 = vcmp.gt.f32.partialorder %v5140_v17, 0.0  ;;  %v5168_v59 = vmul.f32 0.2, %v5136_v58  ;;  %v5169_v15 = vmul.f32 0.2, %v5137_v41  ;;  %vm5157_vm10 = vcmp.gt.f32.partialorder %v5141_v4, 0.0 }
 0x46c   : > { %v5170_v11 = vmul.f32 0.2, %v5138_v46  ;;  %v5171_v37 = vmul.f32 0.2, %v5139_v35  ;;  %v5172_v42 = vmul.f32 0.2, %v5140_v17 }
 0x46d   : > { %v5173_v14 = vmul.f32 0.2, %v5141_v4  ;;  %v5174_v21 = vmul.f32 0.2, %v5142_v52  ;;  %v5184_v53 = vsel %vm5152_vm5, %v5136_v58, %v5168_v59  ;;  %v5185_v62 = vsel %vm5153_vm6, %v5137_v41, %v5169_v15 }
 0x46e   : > { %vm5158_vm11 = vcmp.gt.f32.partialorder %v5142_v52, 0.0  ;;  %v5175_v45 = vmul.f32 0.2, %v5143_v7  ;;  %v5186_v24 = vsel %vm5154_vm7, %v5138_v46, %v5170_v11  ;;  %v5187_v32 = vsel %vm5155_vm8, %v5139_v35, %v5171_v37  ;;  %5200 = vst [vmem:[%s9101_s26 + $0x40] sm:$0xff] %v5184_v53 }
 0x46f   : > { %vm5159_vm12 = vcmp.gt.f32.partialorder %v5143_v7, 0.0  ;;  %v5188_v30 = vsel %vm5156_vm9, %v5140_v17, %v5172_v42  ;;  %5201 = vst [vmem:[%s9101_s26 + $0x48] sm:$0xff] %v5185_v62  ;;  %v5189_v61 = vsel %vm5157_vm10, %v5141_v4, %v5173_v14  ;;  %v5190_v50 = vsel %vm5158_vm11, %v5142_v52, %v5174_v21 }
 0x470   : > { %5202 = vst [vmem:[%s9101_s26 + $0x50] sm:$0xff] %v5186_v24  ;;  %v5191_v26 = vsel %vm5159_vm12, %v5143_v7, %v5175_v45 }
 0x471   : > { %5203 = vst [vmem:[%s9101_s26 + $0x58] sm:$0xff] %v5187_v32 }
 0x472   : > { %5204 = vst [vmem:[%s9101_s26 + $0x60] sm:$0xff] %v5188_v30 }
 0x473   : > { %5205 = vst [vmem:[%s9101_s26 + $0x68] sm:$0xff] %v5189_v61 }
 0x474   : > { %5206 = vst [vmem:[%s9101_s26 + $0x70] sm:$0xff] %v5190_v50 }
 0x475   : > { %5207 = vst [vmem:[%s9101_s26 + $0x78] sm:$0xff] %v5191_v26 }
 0x476 PF: > { %s13_s12 = sadd.s32 1, %s5414_s12  }
 0x477   : > { %p10_p4 = scmp.ge.s32.totalorder %s13_s12, 4  }
 0x479   :  { %12 = sbr.rel (!%p10_p4) target bundleno = 1 (0x1), region = 65 }

</bundles_post_ra>
